<compile_context>
chip_gen: v6e
topology: v6e:2x2x1
jax: 0.10.0
libtpu: 0.0.40
codegen_flags: <defaults>
</compile_context>

<pallas_src>
import functools

import jax
import jax.numpy as jnp
import numpy as np
from jax.experimental import pallas as pl
from jax.experimental.pallas import tpu as pltpu


# --------------------------------- fused kernel --------------------------------

def simsero_kernel(x_ref, emb_ref, sero_ref,
                   scal_ref, mmask_ref, pmask_ref,
                   wqkv_ref, bqkv_ref, wo_ref, bo_ref,
                   w1_ref, b1_ref,
                   bn1s_ref, bn1b_ref, w1c_ref, b1c_ref,
                   bn2s_ref, bn2b_ref, w2c_ref, b2c_ref,
                   we1_ref, be1_ref, we2_ref, be2_ref,
                   w3_ref, b3_ref, w4_ref, b4_ref, wnb_ref, bnb_ref,
                   wphi_ref, bphi_ref,
                   wp1_ref, bp1_ref, wp2_ref, bp2_ref, wp3_ref, bp3_ref,
                   wf1_ref, bf1_ref, wf2_ref, bf2_ref, wf3_ref, bf3_ref,
                   wf4_ref, bf4_ref,
                   out_ref, *, T):
    f32 = jnp.float32
    bf16 = jnp.bfloat16
    D = x_ref.shape[2]

    def silu(v):
        # sigmoid via EUP exp + approximate reciprocal (never affects exact zeros)
        return v * pl.reciprocal(1.0 + jnp.exp(-v), approx=True)

    def softplus(v):
        # matches torch.nn.Softplus (beta=1, threshold=20)
        return jnp.where(v > 20.0, v, jnp.log(1.0 + jnp.exp(jnp.minimum(v, 20.0))))

    def im2col_taps(act, offs, mask_ref):
        # Build one lane-dense (rows, ntaps*C) patch slab: shifted copies of `act`
        # via pltpu.roll (XLU slot, semantics match jnp.roll) and a static 0/1
        # mask column that implements 'same' zero padding for out-of-range taps.
        rows = act.shape[0]
        taps = []
        for idx, off in enumerate(offs):
            if off == 0:
                taps.append(act)
            else:
                rolled = pltpu.roll(act, shift=(-off) % rows, axis=0)
                taps.append(rolled * mask_ref[:, idx:idx + 1])
        return jnp.concatenate(taps, axis=-1)

    # ---------------- attention (1 head, batch_first) with fused QKV ----------------
    x = x_ref[0]                                                   # (M, D) f32
    qkv = jnp.dot(x.astype(bf16), wqkv_ref[...],
                  preferred_element_type=f32) + bqkv_ref[...]      # (M, 3D)
    q, k, v = qkv[:, 0:D], qkv[:, D:2 * D], qkv[:, 2 * D:3 * D]
    s = jax.lax.dot_general(q.astype(bf16), k.astype(bf16),
                            (((1,), (1,)), ((), ())),
                            preferred_element_type=f32) * (1.0 / float(D) ** 0.5)
    s = s - jnp.max(s, axis=-1, keepdims=True)
    e = jnp.exp(s)
    attn = e / jnp.sum(e, axis=-1, keepdims=True)                  # exact divide
    ctx = jnp.dot(attn.astype(bf16), v.astype(bf16), preferred_element_type=f32)
    a = jnp.dot(ctx.astype(bf16), wo_ref[...],
                preferred_element_type=f32) + bo_ref[...]          # (M, D)

    # ---------------- fc1 along M (single un-batched matmul) + SiLU + residual ------
    f = jnp.dot(w1_ref[...], a.astype(bf16), preferred_element_type=f32) + b1_ref[...]
    r = silu(f) + x                                                # (M, D)

    # ---------------- conv1 (D->C0, k=7, 'same'): bnorm1 affine + 1 im2col matmul ---
    conv1d_offs = tuple(j - 3 for j in range(7))
    xn1 = r * bn1s_ref[...] + bn1b_ref[...]                        # eval-mode bnorm1
    patch1 = im2col_taps(xn1, conv1d_offs, mmask_ref)              # (M, 7*D)
    z1 = silu(jnp.dot(patch1.astype(bf16), w1c_ref[...],
                      preferred_element_type=f32) + b1c_ref[...])  # (M, C0)

    # ---------------- conv2 (C0->1, k=7, 'same'): VPU MAC + single lane reduce ------
    xn2 = z1 * bn2s_ref[...] + bn2b_ref[...]                       # eval-mode bnorm2
    patch2 = im2col_taps(xn2, conv1d_offs, mmask_ref)              # (M, 7*C0)
    x_main = silu(jnp.sum(patch2 * w2c_ref[...], axis=-1, keepdims=True)
                  + b2c_ref[...])                                  # (M, 1)

    # ---------------- embedding branch + MLP head (BN folded), column vectors -------
    emb = emb_ref[0]                                               # (E, 1)
    e1 = silu(jnp.dot(we1_ref[...], emb.astype(bf16),
                      preferred_element_type=f32) + be1_ref[...])  # (2E, 1)
    e2 = silu(jnp.dot(we2_ref[...], e1.astype(bf16),
                      preferred_element_type=f32) + be2_ref[...])  # (M, 1)
    xh = x_main + e2                                               # drop1 == identity
    h = silu(jnp.dot(w3_ref[...], xh.astype(bf16),
                     preferred_element_type=f32) + b3_ref[...])    # (H0, 1)
    h = silu(jnp.dot(w4_ref[...], h.astype(bf16),
                     preferred_element_type=f32) + b4_ref[...])    # (H1, 1)
    out2 = jnp.dot(wnb_ref[...], h.astype(bf16),
                   preferred_element_type=f32) + bnb_ref[...]      # (2, 1)
    scal = scal_ref[...]                                           # (1, 2)
    lbda = scal[:, 0:1] * softplus(out2[0:1, :])                   # (1, 1)
    phi = scal[:, 1:2] * softplus(silu(out2[1:2, :]) * wphi_ref[...]
                                  + bphi_ref[...]) + 1e-5          # (1, N)

    # ---------------- proportion branch: 3x Conv2d(3x3, pad=1) as im2col matmuls ----
    sero = sero_ref[0]                                             # (S, N) channel-last
    conv2d_offs = tuple(dq * T + dt for dq in (-1, 0, 1) for dt in (-1, 0, 1))

    def conv3x3(act, w_flat_ref, b_ref):
        patch = im2col_taps(act, conv2d_offs, pmask_ref)           # (S, 9*cin) lane-dense
        return jnp.dot(patch.astype(bf16), w_flat_ref[...],
                       preferred_element_type=f32) + b_ref[...]

    o1 = conv3x3(sero, wp1_ref, bp1_ref)                           # (S, 16)
    o2 = conv3x3(o1, wp2_ref, bp2_ref)                             # (S, 8)  (drop == id)
    o3 = conv3x3(o2, wp3_ref, bp3_ref)                             # (S, N)
    xs = o3 + sero                                                 # residual

    # ---------------- fc_prop chain: torch (out,in) weights as LHS, no transposes ---
    h1 = silu(jnp.dot(wf1_ref[...], xs.astype(bf16),
                      preferred_element_type=f32) + bf1_ref[...])  # (H0, N)
    h2 = silu(jnp.dot(wf2_ref[...], h1.astype(bf16),
                      preferred_element_type=f32) + bf2_ref[...])  # (H1, N)
    h3 = silu(jnp.dot(wf3_ref[...], h2.astype(bf16),
                      preferred_element_type=f32) + bf3_ref[...])  # (H1, N)
    logits = silu(jnp.dot(wf4_ref[...], h3.astype(bf16),
                          preferred_element_type=f32) + bf4_ref[...])   # (1, N)

    # ---------------- sparsemax over N (dim=1), sort-free O(N^2), exact divides -----
    z = logits / 0.7                                               # (1, N)
    zc = jnp.transpose(z)                                          # (N, 1)
    ge = (z >= zc).astype(f32)                                     # ge[i, j] = z_j >= z_i
    k_i = jnp.sum(ge, axis=1, keepdims=True)                       # (N, 1)
    s_i = jnp.sum(ge * z, axis=1, keepdims=True)                   # (N, 1)
    support = (1.0 + k_i * zc > s_i).astype(f32)                   # (N, 1)
    ssum = jnp.sum(support * zc, axis=0, keepdims=True)            # (1, 1)
    scnt = jnp.sum(support, axis=0, keepdims=True)                 # (1, 1)
    tau = (ssum - 1.0) / scnt                                      # exact divide
    p = jnp.maximum(z - tau, 0.0)                                  # (1, N)
    mu = p * lbda                                                  # (1, N)

    # one packed lane-contiguous store: [p | mu | phi | lbda]
    out_ref[0] = jnp.concatenate([p, mu, phi, lbda], axis=-1)


# --------------------------- parameters (BN folded, bf16 MXU weights) -----------

def _bn_eval_affine(num, eps=1e-5):
    """Eval-mode BatchNorm as per-channel (scale, shift), default init.
    TODO(synk): plumb real trained gamma/beta/running stats here before comparing
    against a trained PyTorch checkpoint."""
    gamma = jnp.ones((num,), jnp.float32)
    beta = jnp.zeros((num,), jnp.float32)
    running_mean = jnp.zeros((num,), jnp.float32)
    running_var = jnp.ones((num,), jnp.float32)
    scale = gamma / jnp.sqrt(running_var + eps)
    shift = beta - running_mean * scale
    return scale, shift


def init_params(key, M, D, T, Q, N, hidden=(16, 8), conv_ch=(16, 1), E=10):
    keys = iter(jax.random.split(key, 64))
    bf16 = jnp.bfloat16

    def w(shape, scale=0.2):
        return scale * jax.random.normal(next(keys), shape, jnp.float32)

    H0, H1 = hidden
    C0, C1 = conv_ch
    S = Q * T
    p = {}

    # --- attention (1 head): fused, pre-transposed QKV + output projection ---
    wq, wk, wv = w((D, D)), w((D, D)), w((D, D))                 # torch (out, in)
    bq, bk, bv = w((1, D)), w((1, D)), w((1, D))
    p['wqkv_t'] = jnp.concatenate([wq.T, wk.T, wv.T], axis=1).astype(bf16)   # (D, 3D)
    p['bqkv'] = jnp.concatenate([bq, bk, bv], axis=1)            # (1, 3D)
    p['wo_t'] = w((D, D)).T.astype(bf16)
    p['bo'] = w((1, D))

    # --- fc1 (acts along M), used as matmul LHS in torch (out, in) orientation ---
    p['w1'] = w((M, M)).astype(bf16)
    p['b1'] = w((M, 1))

    # --- bnorm1 affine + conv1 (D->C0, k=7, 'same'), tap-major flat (7*D, C0) ---
    s1, sh1 = _bn_eval_affine(D)
    p['bn1_s'], p['bn1_b'] = s1[None, :], sh1[None, :]
    c1w, c1b = w((C0, D, 7)), w((C0,))
    p['w1c'] = jnp.transpose(c1w, (2, 1, 0)).reshape(7 * D, C0).astype(bf16)
    p['b1c'] = c1b[None, :]

    # --- bnorm2 affine + conv2 (C0->1, k=7, 'same'), VPU row (1, 7*C0) ---
    s2, sh2 = _bn_eval_affine(C0)
    p['bn2_s'], p['bn2_b'] = s2[None, :], sh2[None, :]
    c2w, c2b = w((C1, C0, 7)), w((C1,))
    p['w2c'] = jnp.transpose(c2w[0], (1, 0)).reshape(1, 7 * C0)   # f32 (VPU path)
    p['b2c'] = c2b.reshape(1, 1)

    # --- embedding branch (bnorm_embed folded into fc_embed2), column-vector form ---
    p['embed'] = w((7, E), 1.0)
    p['we1'] = w((2 * E, E)).astype(bf16)
    p['be1'] = w((2 * E, 1))
    se, she = _bn_eval_affine(2 * E)
    we2, be2 = w((M, 2 * E)), w((M,))
    p['we2f'] = (we2 * se[None, :]).astype(bf16)
    p['be2f'] = (be2 + we2 @ she)[:, None]

    # --- MLP head (bnorm5/6/final folded into fc3/fc4/fcnb) ---
    s5, sh5 = _bn_eval_affine(M)
    w3, b3 = w((H0, M)), w((H0,))
    p['w3f'] = (w3 * s5[None, :]).astype(bf16)
    p['b3f'] = (b3 + w3 @ sh5)[:, None]
    s6, sh6 = _bn_eval_affine(H0)
    w4, b4 = w((H1, H0)), w((H1,))
    p['w4f'] = (w4 * s6[None, :]).astype(bf16)
    p['b4f'] = (b4 + w4 @ sh6)[:, None]
    sf, shf = _bn_eval_affine(H1)
    wnb, bnb = w((2, H1)), w((2,))
    p['wnbf'] = (wnb * sf[None, :]).astype(bf16)
    p['bnbf'] = (bnb + wnb @ shf)[:, None]
    p['lbda_scale'] = jnp.asarray(10000.0, jnp.float32)
    p['phi_scale'] = jnp.asarray(10000.0 ** 2, jnp.float32)
    wphi, bphi = w((N, 1)), w((N,))
    p['wphi'], p['bphi'] = wphi.T, bphi[None, :]                 # (1, N) f32 each

    # --- proportion branch: 3x Conv2d(3x3, pad=1), tap-major (9*Cin, Cout) ---
    def conv2d_flat(wt):                                         # (Cout,Cin,3,3)->(9*Cin,Cout)
        co, ci = wt.shape[0], wt.shape[1]
        return jnp.transpose(wt, (2, 3, 1, 0)).reshape(9 * ci, co).astype(bf16)

    cp1 = w((16, N, 3, 3)); p['wp1'], p['bp1'] = conv2d_flat(cp1), w((1, 16))
    cp2 = w((8, 16, 3, 3)); p['wp2'], p['bp2'] = conv2d_flat(cp2), w((1, 8))
    cp3 = w((N, 8, 3, 3)); p['wp3'], p['bp3'] = conv2d_flat(cp3), w((1, N))

    # --- proportion fc chain, torch (out, in) orientation, column biases ---
    p['wf1'], p['bf1'] = w((H0, S)).astype(bf16), w((H0, 1))
    p['wf2'], p['bf2'] = w((H1, H0)).astype(bf16), w((H1, 1))
    p['wf3'], p['bf3'] = w((H1, H1)).astype(bf16), w((H1, 1))
    p['wf4'], p['bf4'] = w((1, H1)).astype(bf16), w((1, 1))

    # --- static 'same'-padding validity masks multiplied into the rolled conv taps ---
    mmask = np.zeros((M, 7), np.float32)
    for m in range(M):
        for j in range(7):
            mmask[m, j] = 1.0 if 0 <= m + j - 3 < M else 0.0
    p['mmask'] = jnp.asarray(mmask)
    pmask = np.zeros((S, 9), np.float32)
    for s in range(S):
        qq, tt = s // T, s % T
        for ki in range(3):
            for kj in range(3):
                ok = (0 <= qq + ki - 1 < Q) and (0 <= tt + kj - 1 < T)
                pmask[s, ki * 3 + kj] = 1.0 if ok else 0.0
    p['pmask'] = jnp.asarray(pmask)

    # NOTE: temperature_raw / fc_temp1 / fc_temp2 are unused by the reference forward.
    return p


# ----------------------------------- wrapper -----------------------------------

def _full_spec(arr):
    nd = arr.ndim
    return pl.BlockSpec(arr.shape, lambda b: (0,) * nd)


@jax.jit
def simsero_forward(params, rep_tri, dow, sero_obs):
    B, M, D = rep_tri.shape
    _, N, T, Q = sero_obs.shape
    S = Q * T
    OUT = 3 * N + 1
    E = params['embed'].shape[1]

    x = rep_tri.astype(jnp.float32)                                       # (B, M, D)
    dow = jnp.atleast_1d(dow)
    emb_col = jnp.take(params['embed'], dow.astype(jnp.int32), axis=0)[:, :, None]   # (B, E, 1)
    sero_cl = jnp.transpose(sero_obs.astype(jnp.float32),
                            (0, 3, 2, 1)).reshape(B, S, N)                # (B, Q*T, N)
    scal = jnp.stack([params['lbda_scale'], params['phi_scale']]).reshape(1, 2)

    weight_names = (
        'wqkv_t', 'bqkv', 'wo_t', 'bo',
        'w1', 'b1',
        'bn1_s', 'bn1_b', 'w1c', 'b1c',
        'bn2_s', 'bn2_b', 'w2c', 'b2c',
        'we1', 'be1', 'we2f', 'be2f',
        'w3f', 'b3f', 'w4f', 'b4f', 'wnbf', 'bnbf',
        'wphi', 'bphi',
        'wp1', 'bp1', 'wp2', 'bp2', 'wp3', 'bp3',
        'wf1', 'bf1', 'wf2', 'bf2', 'wf3', 'bf3',
        'wf4', 'bf4')
    consts = (scal, params['mmask'], params['pmask']) + tuple(params[n] for n in weight_names)

    # One sample per grid step: activations pipelined / megacore-sharded over B,
    # weights are constant-index full blocks (fetched once, VMEM-resident).
    # TODO(synk): at production batch sizes widen the batch tile (>1 sample per step)
    # to amortize per-step overhead; re-derive against v7x's 64 MiB VMEM.
    grid = (B,)
    in_specs = (
        [pl.BlockSpec((1, M, D), lambda b: (b, 0, 0)),
         pl.BlockSpec((1, E, 1), lambda b: (b, 0, 0)),
         pl.BlockSpec((1, S, N), lambda b: (b, 0, 0))] +
        [_full_spec(c) for c in consts])

    kernel = functools.partial(simsero_kernel, T=T)

    out = pl.pallas_call(
        kernel,
        out_shape=jax.ShapeDtypeStruct((B, 1, OUT), jnp.float32),
        grid=grid,
        in_specs=in_specs,
        out_specs=pl.BlockSpec((1, 1, OUT), lambda b: (b, 0, 0)),
        compiler_params=pltpu.CompilerParams(
            dimension_semantics=("parallel",),
            vmem_limit_bytes=32 * 1024 * 1024),
    )(x, emb_col, sero_cl, *consts)

    out = out[:, 0, :]
    p_spm = out[:, 0:N]
    mu = out[:, N:2 * N]
    phi = out[:, 2 * N:3 * N]
    lbda = out[:, 3 * N:3 * N + 1]
    # TODO(synk): torch returns Independent(NB(mu[active], phi[active]), 1) built from
    # boolean-masked (dynamic-shape) tensors; we return the dense NB parameters instead.
    return {'mu': mu, 'phi': phi, 'p': p_spm, 'lbda': lbda, 'active_sero': mu > 0.0}


if __name__ == "__main__":
    M, D, T, Q, N = 16, 4, 8, 4, 4
    B = 2
    key = jax.random.PRNGKey(0)
    kp, kx, ks, kd = jax.random.split(key, 4)

    params = init_params(kp, M, D, T, Q, N)
    rep_tri = jax.random.normal(kx, (B, M, D), jnp.float32)      # (B, M, D)
    sero_obs = jax.random.normal(ks, (B, N, T, Q), jnp.float32)  # (B, N, T, Q)
    dow = jax.random.randint(kd, (B,), 0, 7)                     # day-of-week indices

    out = simsero_forward(params, rep_tri, dow, sero_obs)
    out = jax.tree_util.tree_map(jax.block_until_ready, out)
    print("KERNEL_OK")
</pallas_src>

<mosaic_0001>
module attributes {stable_mosaic.version = 11 : i64} {
  func.func @simsero_kernel(%arg0: i32, %arg1: memref<1x16x4xf32, #tpu.memory_space<vmem>>, %arg2: memref<1x10x1xf32, #tpu.memory_space<vmem>>, %arg3: memref<1x32x4xf32, #tpu.memory_space<vmem>>, %arg4: memref<1x2xf32, #tpu.memory_space<vmem>>, %arg5: memref<16x7xf32, #tpu.memory_space<vmem>>, %arg6: memref<32x9xf32, #tpu.memory_space<vmem>>, %arg7: memref<4x12xbf16, #tpu.memory_space<vmem>>, %arg8: memref<1x12xf32, #tpu.memory_space<vmem>>, %arg9: memref<4x4xbf16, #tpu.memory_space<vmem>>, %arg10: memref<1x4xf32, #tpu.memory_space<vmem>>, %arg11: memref<16x16xbf16, #tpu.memory_space<vmem>>, %arg12: memref<16x1xf32, #tpu.memory_space<vmem>>, %arg13: memref<1x4xf32, #tpu.memory_space<vmem>>, %arg14: memref<1x4xf32, #tpu.memory_space<vmem>>, %arg15: memref<28x16xbf16, #tpu.memory_space<vmem>>, %arg16: memref<1x16xf32, #tpu.memory_space<vmem>>, %arg17: memref<1x16xf32, #tpu.memory_space<vmem>>, %arg18: memref<1x16xf32, #tpu.memory_space<vmem>>, %arg19: memref<1x112xf32, #tpu.memory_space<vmem>>, %arg20: memref<1x1xf32, #tpu.memory_space<vmem>>, %arg21: memref<20x10xbf16, #tpu.memory_space<vmem>>, %arg22: memref<20x1xf32, #tpu.memory_space<vmem>>, %arg23: memref<16x20xbf16, #tpu.memory_space<vmem>>, %arg24: memref<16x1xf32, #tpu.memory_space<vmem>>, %arg25: memref<16x16xbf16, #tpu.memory_space<vmem>>, %arg26: memref<16x1xf32, #tpu.memory_space<vmem>>, %arg27: memref<8x16xbf16, #tpu.memory_space<vmem>>, %arg28: memref<8x1xf32, #tpu.memory_space<vmem>>, %arg29: memref<2x8xbf16, #tpu.memory_space<vmem>>, %arg30: memref<2x1xf32, #tpu.memory_space<vmem>>, %arg31: memref<1x4xf32, #tpu.memory_space<vmem>>, %arg32: memref<1x4xf32, #tpu.memory_space<vmem>>, %arg33: memref<36x16xbf16, #tpu.memory_space<vmem>>, %arg34: memref<1x16xf32, #tpu.memory_space<vmem>>, %arg35: memref<144x8xbf16, #tpu.memory_space<vmem>>, %arg36: memref<1x8xf32, #tpu.memory_space<vmem>>, %arg37: memref<72x4xbf16, #tpu.memory_space<vmem>>, %arg38: memref<1x4xf32, #tpu.memory_space<vmem>>, %arg39: memref<16x32xbf16, #tpu.memory_space<vmem>>, %arg40: memref<16x1xf32, #tpu.memory_space<vmem>>, %arg41: memref<8x16xbf16, #tpu.memory_space<vmem>>, %arg42: memref<8x1xf32, #tpu.memory_space<vmem>>, %arg43: memref<8x8xbf16, #tpu.memory_space<vmem>>, %arg44: memref<8x1xf32, #tpu.memory_space<vmem>>, %arg45: memref<1x8xbf16, #tpu.memory_space<vmem>>, %arg46: memref<1x1xf32, #tpu.memory_space<vmem>>, %arg47: memref<1x1x13xf32, #tpu.memory_space<vmem>>) attributes {dimension_semantics = [#tpu.dimension_semantics<parallel>], iteration_bounds = array<i64: 2>, scalar_prefetch = 0 : i64, scratch_operands = 0 : i64, tpu.core_type = #tpu.core_type<tc>, window_params = [{transform_indices = @transform_0, window_bounds = array<i64: 1, 16, 4>}, {transform_indices = @transform_1, window_bounds = array<i64: 1, 10, 1>}, {transform_indices = @transform_2, window_bounds = array<i64: 1, 32, 4>}, {pipeline_mode = #tpu.pipeline_mode<synchronous>, transform_indices = @transform_3, window_bounds = array<i64: 1, 2>}, {pipeline_mode = #tpu.pipeline_mode<synchronous>, transform_indices = @transform_4, window_bounds = array<i64: 16, 7>}, {pipeline_mode = #tpu.pipeline_mode<synchronous>, transform_indices = @transform_5, window_bounds = array<i64: 32, 9>}, {pipeline_mode = #tpu.pipeline_mode<synchronous>, transform_indices = @transform_6, window_bounds = array<i64: 4, 12>}, {pipeline_mode = #tpu.pipeline_mode<synchronous>, transform_indices = @transform_7, window_bounds = array<i64: 1, 12>}, {pipeline_mode = #tpu.pipeline_mode<synchronous>, transform_indices = @transform_8, window_bounds = array<i64: 4, 4>}, {pipeline_mode = #tpu.pipeline_mode<synchronous>, transform_indices = @transform_9, window_bounds = array<i64: 1, 4>}, {pipeline_mode = #tpu.pipeline_mode<synchronous>, transform_indices = @transform_10, window_bounds = array<i64: 16, 16>}, {pipeline_mode = #tpu.pipeline_mode<synchronous>, transform_indices = @transform_11, window_bounds = array<i64: 16, 1>}, {pipeline_mode = #tpu.pipeline_mode<synchronous>, transform_indices = @transform_12, window_bounds = array<i64: 1, 4>}, {pipeline_mode = #tpu.pipeline_mode<synchronous>, transform_indices = @transform_13, window_bounds = array<i64: 1, 4>}, {pipeline_mode = #tpu.pipeline_mode<synchronous>, transform_indices = @transform_14, window_bounds = array<i64: 28, 16>}, {pipeline_mode = #tpu.pipeline_mode<synchronous>, transform_indices = @transform_15, window_bounds = array<i64: 1, 16>}, {pipeline_mode = #tpu.pipeline_mode<synchronous>, transform_indices = @transform_16, window_bounds = array<i64: 1, 16>}, {pipeline_mode = #tpu.pipeline_mode<synchronous>, transform_indices = @transform_17, window_bounds = array<i64: 1, 16>}, {pipeline_mode = #tpu.pipeline_mode<synchronous>, transform_indices = @transform_18, window_bounds = array<i64: 1, 112>}, {pipeline_mode = #tpu.pipeline_mode<synchronous>, transform_indices = @transform_19, window_bounds = array<i64: 1, 1>}, {pipeline_mode = #tpu.pipeline_mode<synchronous>, transform_indices = @transform_20, window_bounds = array<i64: 20, 10>}, {pipeline_mode = #tpu.pipeline_mode<synchronous>, transform_indices = @transform_21, window_bounds = array<i64: 20, 1>}, {pipeline_mode = #tpu.pipeline_mode<synchronous>, transform_indices = @transform_22, window_bounds = array<i64: 16, 20>}, {pipeline_mode = #tpu.pipeline_mode<synchronous>, transform_indices = @transform_23, window_bounds = array<i64: 16, 1>}, {pipeline_mode = #tpu.pipeline_mode<synchronous>, transform_indices = @transform_24, window_bounds = array<i64: 16, 16>}, {pipeline_mode = #tpu.pipeline_mode<synchronous>, transform_indices = @transform_25, window_bounds = array<i64: 16, 1>}, {pipeline_mode = #tpu.pipeline_mode<synchronous>, transform_indices = @transform_26, window_bounds = array<i64: 8, 16>}, {pipeline_mode = #tpu.pipeline_mode<synchronous>, transform_indices = @transform_27, window_bounds = array<i64: 8, 1>}, {pipeline_mode = #tpu.pipeline_mode<synchronous>, transform_indices = @transform_28, window_bounds = array<i64: 2, 8>}, {pipeline_mode = #tpu.pipeline_mode<synchronous>, transform_indices = @transform_29, window_bounds = array<i64: 2, 1>}, {pipeline_mode = #tpu.pipeline_mode<synchronous>, transform_indices = @transform_30, window_bounds = array<i64: 1, 4>}, {pipeline_mode = #tpu.pipeline_mode<synchronous>, transform_indices = @transform_31, window_bounds = array<i64: 1, 4>}, {pipeline_mode = #tpu.pipeline_mode<synchronous>, transform_indices = @transform_32, window_bounds = array<i64: 36, 16>}, {pipeline_mode = #tpu.pipeline_mode<synchronous>, transform_indices = @transform_33, window_bounds = array<i64: 1, 16>}, {pipeline_mode = #tpu.pipeline_mode<synchronous>, transform_indices = @transform_34, window_bounds = array<i64: 144, 8>}, {pipeline_mode = #tpu.pipeline_mode<synchronous>, transform_indices = @transform_35, window_bounds = array<i64: 1, 8>}, {pipeline_mode = #tpu.pipeline_mode<synchronous>, transform_indices = @transform_36, window_bounds = array<i64: 72, 4>}, {pipeline_mode = #tpu.pipeline_mode<synchronous>, transform_indices = @transform_37, window_bounds = array<i64: 1, 4>}, {pipeline_mode = #tpu.pipeline_mode<synchronous>, transform_indices = @transform_38, window_bounds = array<i64: 16, 32>}, {pipeline_mode = #tpu.pipeline_mode<synchronous>, transform_indices = @transform_39, window_bounds = array<i64: 16, 1>}, {pipeline_mode = #tpu.pipeline_mode<synchronous>, transform_indices = @transform_40, window_bounds = array<i64: 8, 16>}, {pipeline_mode = #tpu.pipeline_mode<synchronous>, transform_indices = @transform_41, window_bounds = array<i64: 8, 1>}, {pipeline_mode = #tpu.pipeline_mode<synchronous>, transform_indices = @transform_42, window_bounds = array<i64: 8, 8>}, {pipeline_mode = #tpu.pipeline_mode<synchronous>, transform_indices = @transform_43, window_bounds = array<i64: 8, 1>}, {pipeline_mode = #tpu.pipeline_mode<synchronous>, transform_indices = @transform_44, window_bounds = array<i64: 1, 8>}, {pipeline_mode = #tpu.pipeline_mode<synchronous>, transform_indices = @transform_45, window_bounds = array<i64: 1, 1>}, {transform_indices = @transform_46, window_bounds = array<i64: 1, 1, 13>}]} {
    %c0 = arith.constant 0 : index
    %c0_0 = arith.constant 0 : index
    %c0_1 = arith.constant 0 : index
    %0 = vector.load %arg1[%c0, %c0_0, %c0_1] : memref<1x16x4xf32, #tpu.memory_space<vmem>>, vector<1x16x4xf32>
    %1 = vector.shape_cast %0 : vector<1x16x4xf32> to vector<16x4xf32>
    %2 = arith.truncf %1 : vector<16x4xf32> to vector<16x4xbf16>
    %c0_2 = arith.constant 0 : index
    %c0_3 = arith.constant 0 : index
    %3 = vector.load %arg7[%c0_2, %c0_3] : memref<4x12xbf16, #tpu.memory_space<vmem>>, vector<4x12xbf16>
    %cst = arith.constant dense<0.000000e+00> : vector<16x12xf32>
    %4 = tpu.matmul %2, %3, %cst {dimension_numbers = #tpu.dot_dimension_numbers<[1], [0], [0], [1], [0, 0, 1, 1], [], []>} : vector<16x4xbf16>, vector<4x12xbf16>, vector<16x12xf32> -> vector<16x12xf32>
    %c0_4 = arith.constant 0 : index
    %c0_5 = arith.constant 0 : index
    %5 = vector.load %arg8[%c0_4, %c0_5] : memref<1x12xf32, #tpu.memory_space<vmem>>, vector<1x12xf32>
    %6 = vector.broadcast %5 : vector<1x12xf32> to vector<16x12xf32>
    %7 = arith.addf %4, %6 : vector<16x12xf32>
    %8 = vector.extract_strided_slice %7 {offsets = [0, 0], sizes = [16, 4], strides = [1, 1]} : vector<16x12xf32> to vector<16x4xf32>
    %9 = vector.extract_strided_slice %7 {offsets = [0, 4], sizes = [16, 4], strides = [1, 1]} : vector<16x12xf32> to vector<16x4xf32>
    %10 = vector.extract_strided_slice %7 {offsets = [0, 8], sizes = [16, 4], strides = [1, 1]} : vector<16x12xf32> to vector<16x4xf32>
    %11 = arith.truncf %8 : vector<16x4xf32> to vector<16x4xbf16>
    %12 = arith.truncf %9 : vector<16x4xf32> to vector<16x4xbf16>
    %cst_6 = arith.constant dense<0.000000e+00> : vector<16x16xf32>
    %13 = tpu.matmul %11, %12, %cst_6 {dimension_numbers = #tpu.dot_dimension_numbers<[1], [1], [0], [0], [0, 0, 1, 0], [], []>} : vector<16x4xbf16>, vector<16x4xbf16>, vector<16x16xf32> -> vector<16x16xf32>
    %cst_7 = arith.constant 5.000000e-01 : f32
    %14 = vector.broadcast %cst_7 : f32 to vector<16x16xf32>
    %15 = arith.mulf %13, %14 : vector<16x16xf32>
    %cst_8 = arith.constant dense<0xFF800000> : vector<16xf32>
    %16 = vector.multi_reduction <maximumf>, %15, %cst_8 [1] : vector<16x16xf32> to vector<16xf32>
    %17 = vector.shape_cast %16 : vector<16xf32> to vector<16x1xf32>
    %18 = vector.broadcast %17 : vector<16x1xf32> to vector<16x16xf32>
    %19 = arith.subf %15, %18 : vector<16x16xf32>
    %20 = math.exp %19 : vector<16x16xf32>
    %cst_9 = arith.constant dense<0.000000e+00> : vector<16xf32>
    %21 = vector.multi_reduction <add>, %20, %cst_9 [1] : vector<16x16xf32> to vector<16xf32>
    %22 = vector.shape_cast %21 : vector<16xf32> to vector<16x1xf32>
    %23 = vector.broadcast %22 : vector<16x1xf32> to vector<16x16xf32>
    %24 = arith.divf %20, %23 : vector<16x16xf32>
    %25 = arith.truncf %24 : vector<16x16xf32> to vector<16x16xbf16>
    %26 = arith.truncf %10 : vector<16x4xf32> to vector<16x4xbf16>
    %cst_10 = arith.constant dense<0.000000e+00> : vector<16x4xf32>
    %27 = tpu.matmul %25, %26, %cst_10 {dimension_numbers = #tpu.dot_dimension_numbers<[1], [0], [0], [1], [0, 0, 1, 1], [], []>} : vector<16x16xbf16>, vector<16x4xbf16>, vector<16x4xf32> -> vector<16x4xf32>
    %28 = arith.truncf %27 : vector<16x4xf32> to vector<16x4xbf16>
    %c0_11 = arith.constant 0 : index
    %c0_12 = arith.constant 0 : index
    %29 = vector.load %arg9[%c0_11, %c0_12] : memref<4x4xbf16, #tpu.memory_space<vmem>>, vector<4x4xbf16>
    %cst_13 = arith.constant dense<0.000000e+00> : vector<16x4xf32>
    %30 = tpu.matmul %28, %29, %cst_13 {dimension_numbers = #tpu.dot_dimension_numbers<[1], [0], [0], [1], [0, 0, 1, 1], [], []>} : vector<16x4xbf16>, vector<4x4xbf16>, vector<16x4xf32> -> vector<16x4xf32>
    %c0_14 = arith.constant 0 : index
    %c0_15 = arith.constant 0 : index
    %31 = vector.load %arg10[%c0_14, %c0_15] : memref<1x4xf32, #tpu.memory_space<vmem>>, vector<1x4xf32>
    %32 = vector.broadcast %31 : vector<1x4xf32> to vector<16x4xf32>
    %33 = arith.addf %30, %32 : vector<16x4xf32>
    %c0_16 = arith.constant 0 : index
    %c0_17 = arith.constant 0 : index
    %34 = vector.load %arg11[%c0_16, %c0_17] : memref<16x16xbf16, #tpu.memory_space<vmem>>, vector<16x16xbf16>
    %35 = arith.truncf %33 : vector<16x4xf32> to vector<16x4xbf16>
    %cst_18 = arith.constant dense<0.000000e+00> : vector<16x4xf32>
    %36 = tpu.matmul %34, %35, %cst_18 {dimension_numbers = #tpu.dot_dimension_numbers<[1], [0], [0], [1], [0, 0, 1, 1], [], []>} : vector<16x16xbf16>, vector<16x4xbf16>, vector<16x4xf32> -> vector<16x4xf32>
    %c0_19 = arith.constant 0 : index
    %c0_20 = arith.constant 0 : index
    %37 = vector.load %arg12[%c0_19, %c0_20] : memref<16x1xf32, #tpu.memory_space<vmem>>, vector<16x1xf32>
    %38 = vector.broadcast %37 : vector<16x1xf32> to vector<16x4xf32>
    %39 = arith.addf %36, %38 : vector<16x4xf32>
    %cst_21 = arith.constant 0.000000e+00 : f32
    %40 = vector.broadcast %cst_21 : f32 to vector<16x4xf32>
    %41 = arith.subf %40, %39 : vector<16x4xf32>
    %42 = math.exp %41 : vector<16x4xf32>
    %cst_22 = arith.constant 1.000000e+00 : f32
    %43 = vector.broadcast %cst_22 : f32 to vector<16x4xf32>
    %44 = arith.addf %43, %42 : vector<16x4xf32>
    %45 = tpu.reciprocal %44 {approx = true} : vector<16x4xf32> -> vector<16x4xf32>
    %46 = arith.mulf %39, %45 : vector<16x4xf32>
    %47 = arith.addf %46, %1 : vector<16x4xf32>
    %c0_23 = arith.constant 0 : index
    %c0_24 = arith.constant 0 : index
    %48 = vector.load %arg13[%c0_23, %c0_24] : memref<1x4xf32, #tpu.memory_space<vmem>>, vector<1x4xf32>
    %49 = vector.broadcast %48 : vector<1x4xf32> to vector<16x4xf32>
    %50 = arith.mulf %47, %49 : vector<16x4xf32>
    %c0_25 = arith.constant 0 : index
    %c0_26 = arith.constant 0 : index
    %51 = vector.load %arg14[%c0_25, %c0_26] : memref<1x4xf32, #tpu.memory_space<vmem>>, vector<1x4xf32>
    %52 = vector.broadcast %51 : vector<1x4xf32> to vector<16x4xf32>
    %53 = arith.addf %50, %52 : vector<16x4xf32>
    %c3_i32 = arith.constant 3 : i32
    %54 = tpu.dynamic_rotate %53 by %c3_i32 dim 0 : vector<16x4xf32>, i32 -> vector<16x4xf32>
    %c0_27 = arith.constant 0 : index
    %c0_28 = arith.constant 0 : index
    %55 = vector.load %arg5[%c0_27, %c0_28] : memref<16x7xf32, #tpu.memory_space<vmem>>, vector<16x1xf32>
    %56 = vector.broadcast %55 : vector<16x1xf32> to vector<16x4xf32>
    %57 = arith.mulf %54, %56 : vector<16x4xf32>
    %c2_i32 = arith.constant 2 : i32
    %58 = tpu.dynamic_rotate %53 by %c2_i32 dim 0 : vector<16x4xf32>, i32 -> vector<16x4xf32>
    %c0_29 = arith.constant 0 : index
    %c1 = arith.constant 1 : index
    %59 = vector.load %arg5[%c0_29, %c1] : memref<16x7xf32, #tpu.memory_space<vmem>>, vector<16x1xf32>
    %60 = vector.broadcast %59 : vector<16x1xf32> to vector<16x4xf32>
    %61 = arith.mulf %58, %60 : vector<16x4xf32>
    %c1_i32 = arith.constant 1 : i32
    %62 = tpu.dynamic_rotate %53 by %c1_i32 dim 0 : vector<16x4xf32>, i32 -> vector<16x4xf32>
    %c0_30 = arith.constant 0 : index
    %c2 = arith.constant 2 : index
    %63 = vector.load %arg5[%c0_30, %c2] : memref<16x7xf32, #tpu.memory_space<vmem>>, vector<16x1xf32>
    %64 = vector.broadcast %63 : vector<16x1xf32> to vector<16x4xf32>
    %65 = arith.mulf %62, %64 : vector<16x4xf32>
    %c15_i32 = arith.constant 15 : i32
    %66 = tpu.dynamic_rotate %53 by %c15_i32 dim 0 : vector<16x4xf32>, i32 -> vector<16x4xf32>
    %c0_31 = arith.constant 0 : index
    %c4 = arith.constant 4 : index
    %67 = vector.load %arg5[%c0_31, %c4] : memref<16x7xf32, #tpu.memory_space<vmem>>, vector<16x1xf32>
    %68 = vector.broadcast %67 : vector<16x1xf32> to vector<16x4xf32>
    %69 = arith.mulf %66, %68 : vector<16x4xf32>
    %c14_i32 = arith.constant 14 : i32
    %70 = tpu.dynamic_rotate %53 by %c14_i32 dim 0 : vector<16x4xf32>, i32 -> vector<16x4xf32>
    %c0_32 = arith.constant 0 : index
    %c5 = arith.constant 5 : index
    %71 = vector.load %arg5[%c0_32, %c5] : memref<16x7xf32, #tpu.memory_space<vmem>>, vector<16x1xf32>
    %72 = vector.broadcast %71 : vector<16x1xf32> to vector<16x4xf32>
    %73 = arith.mulf %70, %72 : vector<16x4xf32>
    %c13_i32 = arith.constant 13 : i32
    %74 = tpu.dynamic_rotate %53 by %c13_i32 dim 0 : vector<16x4xf32>, i32 -> vector<16x4xf32>
    %c0_33 = arith.constant 0 : index
    %c6 = arith.constant 6 : index
    %75 = vector.load %arg5[%c0_33, %c6] : memref<16x7xf32, #tpu.memory_space<vmem>>, vector<16x1xf32>
    %76 = vector.broadcast %75 : vector<16x1xf32> to vector<16x4xf32>
    %77 = arith.mulf %74, %76 : vector<16x4xf32>
    %78 = tpu.concatenate %57, %61, %65, %53, %69, %73, %77 in 1 : vector<16x4xf32>, vector<16x4xf32>, vector<16x4xf32>, vector<16x4xf32>, vector<16x4xf32>, vector<16x4xf32>, vector<16x4xf32> -> vector<16x28xf32>
    %79 = arith.truncf %78 : vector<16x28xf32> to vector<16x28xbf16>
    %c0_34 = arith.constant 0 : index
    %c0_35 = arith.constant 0 : index
    %80 = vector.load %arg15[%c0_34, %c0_35] : memref<28x16xbf16, #tpu.memory_space<vmem>>, vector<28x16xbf16>
    %cst_36 = arith.constant dense<0.000000e+00> : vector<16x16xf32>
    %81 = tpu.matmul %79, %80, %cst_36 {dimension_numbers = #tpu.dot_dimension_numbers<[1], [0], [0], [1], [0, 0, 1, 1], [], []>} : vector<16x28xbf16>, vector<28x16xbf16>, vector<16x16xf32> -> vector<16x16xf32>
    %c0_37 = arith.constant 0 : index
    %c0_38 = arith.constant 0 : index
    %82 = vector.load %arg16[%c0_37, %c0_38] : memref<1x16xf32, #tpu.memory_space<vmem>>, vector<1x16xf32>
    %83 = vector.broadcast %82 : vector<1x16xf32> to vector<16x16xf32>
    %84 = arith.addf %81, %83 : vector<16x16xf32>
    %cst_39 = arith.constant 0.000000e+00 : f32
    %85 = vector.broadcast %cst_39 : f32 to vector<16x16xf32>
    %86 = arith.subf %85, %84 : vector<16x16xf32>
    %87 = math.exp %86 : vector<16x16xf32>
    %cst_40 = arith.constant 1.000000e+00 : f32
    %88 = vector.broadcast %cst_40 : f32 to vector<16x16xf32>
    %89 = arith.addf %88, %87 : vector<16x16xf32>
    %90 = tpu.reciprocal %89 {approx = true} : vector<16x16xf32> -> vector<16x16xf32>
    %91 = arith.mulf %84, %90 : vector<16x16xf32>
    %c0_41 = arith.constant 0 : index
    %c0_42 = arith.constant 0 : index
    %92 = vector.load %arg17[%c0_41, %c0_42] : memref<1x16xf32, #tpu.memory_space<vmem>>, vector<1x16xf32>
    %93 = vector.broadcast %92 : vector<1x16xf32> to vector<16x16xf32>
    %94 = arith.mulf %91, %93 : vector<16x16xf32>
    %c0_43 = arith.constant 0 : index
    %c0_44 = arith.constant 0 : index
    %95 = vector.load %arg18[%c0_43, %c0_44] : memref<1x16xf32, #tpu.memory_space<vmem>>, vector<1x16xf32>
    %96 = vector.broadcast %95 : vector<1x16xf32> to vector<16x16xf32>
    %97 = arith.addf %94, %96 : vector<16x16xf32>
    %c3_i32_45 = arith.constant 3 : i32
    %98 = tpu.dynamic_rotate %97 by %c3_i32_45 dim 0 : vector<16x16xf32>, i32 -> vector<16x16xf32>
    %c0_46 = arith.constant 0 : index
    %c0_47 = arith.constant 0 : index
    %99 = vector.load %arg5[%c0_46, %c0_47] : memref<16x7xf32, #tpu.memory_space<vmem>>, vector<16x1xf32>
    %100 = vector.broadcast %99 : vector<16x1xf32> to vector<16x16xf32>
    %101 = arith.mulf %98, %100 : vector<16x16xf32>
    %c2_i32_48 = arith.constant 2 : i32
    %102 = tpu.dynamic_rotate %97 by %c2_i32_48 dim 0 : vector<16x16xf32>, i32 -> vector<16x16xf32>
    %c0_49 = arith.constant 0 : index
    %c1_50 = arith.constant 1 : index
    %103 = vector.load %arg5[%c0_49, %c1_50] : memref<16x7xf32, #tpu.memory_space<vmem>>, vector<16x1xf32>
    %104 = vector.broadcast %103 : vector<16x1xf32> to vector<16x16xf32>
    %105 = arith.mulf %102, %104 : vector<16x16xf32>
    %c1_i32_51 = arith.constant 1 : i32
    %106 = tpu.dynamic_rotate %97 by %c1_i32_51 dim 0 : vector<16x16xf32>, i32 -> vector<16x16xf32>
    %c0_52 = arith.constant 0 : index
    %c2_53 = arith.constant 2 : index
    %107 = vector.load %arg5[%c0_52, %c2_53] : memref<16x7xf32, #tpu.memory_space<vmem>>, vector<16x1xf32>
    %108 = vector.broadcast %107 : vector<16x1xf32> to vector<16x16xf32>
    %109 = arith.mulf %106, %108 : vector<16x16xf32>
    %c15_i32_54 = arith.constant 15 : i32
    %110 = tpu.dynamic_rotate %97 by %c15_i32_54 dim 0 : vector<16x16xf32>, i32 -> vector<16x16xf32>
    %c0_55 = arith.constant 0 : index
    %c4_56 = arith.constant 4 : index
    %111 = vector.load %arg5[%c0_55, %c4_56] : memref<16x7xf32, #tpu.memory_space<vmem>>, vector<16x1xf32>
    %112 = vector.broadcast %111 : vector<16x1xf32> to vector<16x16xf32>
    %113 = arith.mulf %110, %112 : vector<16x16xf32>
    %c14_i32_57 = arith.constant 14 : i32
    %114 = tpu.dynamic_rotate %97 by %c14_i32_57 dim 0 : vector<16x16xf32>, i32 -> vector<16x16xf32>
    %c0_58 = arith.constant 0 : index
    %c5_59 = arith.constant 5 : index
    %115 = vector.load %arg5[%c0_58, %c5_59] : memref<16x7xf32, #tpu.memory_space<vmem>>, vector<16x1xf32>
    %116 = vector.broadcast %115 : vector<16x1xf32> to vector<16x16xf32>
    %117 = arith.mulf %114, %116 : vector<16x16xf32>
    %c13_i32_60 = arith.constant 13 : i32
    %118 = tpu.dynamic_rotate %97 by %c13_i32_60 dim 0 : vector<16x16xf32>, i32 -> vector<16x16xf32>
    %c0_61 = arith.constant 0 : index
    %c6_62 = arith.constant 6 : index
    %119 = vector.load %arg5[%c0_61, %c6_62] : memref<16x7xf32, #tpu.memory_space<vmem>>, vector<16x1xf32>
    %120 = vector.broadcast %119 : vector<16x1xf32> to vector<16x16xf32>
    %121 = arith.mulf %118, %120 : vector<16x16xf32>
    %122 = tpu.concatenate %101, %105, %109, %97, %113, %117, %121 in 1 : vector<16x16xf32>, vector<16x16xf32>, vector<16x16xf32>, vector<16x16xf32>, vector<16x16xf32>, vector<16x16xf32>, vector<16x16xf32> -> vector<16x112xf32>
    %c0_63 = arith.constant 0 : index
    %c0_64 = arith.constant 0 : index
    %123 = vector.load %arg19[%c0_63, %c0_64] : memref<1x112xf32, #tpu.memory_space<vmem>>, vector<1x112xf32>
    %124 = vector.broadcast %123 : vector<1x112xf32> to vector<16x112xf32>
    %125 = arith.mulf %122, %124 : vector<16x112xf32>
    %cst_65 = arith.constant dense<0.000000e+00> : vector<16xf32>
    %126 = vector.multi_reduction <add>, %125, %cst_65 [1] : vector<16x112xf32> to vector<16xf32>
    %127 = vector.shape_cast %126 : vector<16xf32> to vector<16x1xf32>
    %c0_66 = arith.constant 0 : index
    %c0_67 = arith.constant 0 : index
    %128 = vector.load %arg20[%c0_66, %c0_67] : memref<1x1xf32, #tpu.memory_space<vmem>>, vector<1x1xf32>
    %129 = vector.broadcast %128 : vector<1x1xf32> to vector<16x1xf32>
    %130 = arith.addf %127, %129 : vector<16x1xf32>
    %cst_68 = arith.constant 0.000000e+00 : f32
    %131 = vector.broadcast %cst_68 : f32 to vector<16x1xf32>
    %132 = arith.subf %131, %130 : vector<16x1xf32>
    %133 = math.exp %132 : vector<16x1xf32>
    %cst_69 = arith.constant 1.000000e+00 : f32
    %134 = vector.broadcast %cst_69 : f32 to vector<16x1xf32>
    %135 = arith.addf %134, %133 : vector<16x1xf32>
    %136 = tpu.reciprocal %135 {approx = true} : vector<16x1xf32> -> vector<16x1xf32>
    %137 = arith.mulf %130, %136 : vector<16x1xf32>
    %c0_70 = arith.constant 0 : index
    %c0_71 = arith.constant 0 : index
    %c0_72 = arith.constant 0 : index
    %138 = vector.load %arg2[%c0_70, %c0_71, %c0_72] : memref<1x10x1xf32, #tpu.memory_space<vmem>>, vector<1x10x1xf32>
    %139 = vector.shape_cast %138 : vector<1x10x1xf32> to vector<10x1xf32>
    %c0_73 = arith.constant 0 : index
    %c0_74 = arith.constant 0 : index
    %140 = vector.load %arg21[%c0_73, %c0_74] : memref<20x10xbf16, #tpu.memory_space<vmem>>, vector<20x10xbf16>
    %141 = arith.truncf %139 : vector<10x1xf32> to vector<10x1xbf16>
    %cst_75 = arith.constant dense<0.000000e+00> : vector<20x1xf32>
    %142 = tpu.matmul %140, %141, %cst_75 {dimension_numbers = #tpu.dot_dimension_numbers<[1], [0], [0], [1], [0, 0, 1, 1], [], []>} : vector<20x10xbf16>, vector<10x1xbf16>, vector<20x1xf32> -> vector<20x1xf32>
    %c0_76 = arith.constant 0 : index
    %c0_77 = arith.constant 0 : index
    %143 = vector.load %arg22[%c0_76, %c0_77] : memref<20x1xf32, #tpu.memory_space<vmem>>, vector<20x1xf32>
    %144 = arith.addf %142, %143 : vector<20x1xf32>
    %cst_78 = arith.constant 0.000000e+00 : f32
    %145 = vector.broadcast %cst_78 : f32 to vector<20x1xf32>
    %146 = arith.subf %145, %144 : vector<20x1xf32>
    %147 = math.exp %146 : vector<20x1xf32>
    %cst_79 = arith.constant 1.000000e+00 : f32
    %148 = vector.broadcast %cst_79 : f32 to vector<20x1xf32>
    %149 = arith.addf %148, %147 : vector<20x1xf32>
    %150 = tpu.reciprocal %149 {approx = true} : vector<20x1xf32> -> vector<20x1xf32>
    %151 = arith.mulf %144, %150 : vector<20x1xf32>
    %c0_80 = arith.constant 0 : index
    %c0_81 = arith.constant 0 : index
    %152 = vector.load %arg23[%c0_80, %c0_81] : memref<16x20xbf16, #tpu.memory_space<vmem>>, vector<16x20xbf16>
    %153 = arith.truncf %151 : vector<20x1xf32> to vector<20x1xbf16>
    %cst_82 = arith.constant dense<0.000000e+00> : vector<16x1xf32>
    %154 = tpu.matmul %152, %153, %cst_82 {dimension_numbers = #tpu.dot_dimension_numbers<[1], [0], [0], [1], [0, 0, 1, 1], [], []>} : vector<16x20xbf16>, vector<20x1xbf16>, vector<16x1xf32> -> vector<16x1xf32>
    %c0_83 = arith.constant 0 : index
    %c0_84 = arith.constant 0 : index
    %155 = vector.load %arg24[%c0_83, %c0_84] : memref<16x1xf32, #tpu.memory_space<vmem>>, vector<16x1xf32>
    %156 = arith.addf %154, %155 : vector<16x1xf32>
    %cst_85 = arith.constant 0.000000e+00 : f32
    %157 = vector.broadcast %cst_85 : f32 to vector<16x1xf32>
    %158 = arith.subf %157, %156 : vector<16x1xf32>
    %159 = math.exp %158 : vector<16x1xf32>
    %cst_86 = arith.constant 1.000000e+00 : f32
    %160 = vector.broadcast %cst_86 : f32 to vector<16x1xf32>
    %161 = arith.addf %160, %159 : vector<16x1xf32>
    %162 = tpu.reciprocal %161 {approx = true} : vector<16x1xf32> -> vector<16x1xf32>
    %163 = arith.mulf %156, %162 : vector<16x1xf32>
    %164 = arith.addf %137, %163 : vector<16x1xf32>
    %c0_87 = arith.constant 0 : index
    %c0_88 = arith.constant 0 : index
    %165 = vector.load %arg25[%c0_87, %c0_88] : memref<16x16xbf16, #tpu.memory_space<vmem>>, vector<16x16xbf16>
    %166 = arith.truncf %164 : vector<16x1xf32> to vector<16x1xbf16>
    %cst_89 = arith.constant dense<0.000000e+00> : vector<16x1xf32>
    %167 = tpu.matmul %165, %166, %cst_89 {dimension_numbers = #tpu.dot_dimension_numbers<[1], [0], [0], [1], [0, 0, 1, 1], [], []>} : vector<16x16xbf16>, vector<16x1xbf16>, vector<16x1xf32> -> vector<16x1xf32>
    %c0_90 = arith.constant 0 : index
    %c0_91 = arith.constant 0 : index
    %168 = vector.load %arg26[%c0_90, %c0_91] : memref<16x1xf32, #tpu.memory_space<vmem>>, vector<16x1xf32>
    %169 = arith.addf %167, %168 : vector<16x1xf32>
    %cst_92 = arith.constant 0.000000e+00 : f32
    %170 = vector.broadcast %cst_92 : f32 to vector<16x1xf32>
    %171 = arith.subf %170, %169 : vector<16x1xf32>
    %172 = math.exp %171 : vector<16x1xf32>
    %cst_93 = arith.constant 1.000000e+00 : f32
    %173 = vector.broadcast %cst_93 : f32 to vector<16x1xf32>
    %174 = arith.addf %173, %172 : vector<16x1xf32>
    %175 = tpu.reciprocal %174 {approx = true} : vector<16x1xf32> -> vector<16x1xf32>
    %176 = arith.mulf %169, %175 : vector<16x1xf32>
    %c0_94 = arith.constant 0 : index
    %c0_95 = arith.constant 0 : index
    %177 = vector.load %arg27[%c0_94, %c0_95] : memref<8x16xbf16, #tpu.memory_space<vmem>>, vector<8x16xbf16>
    %178 = arith.truncf %176 : vector<16x1xf32> to vector<16x1xbf16>
    %cst_96 = arith.constant dense<0.000000e+00> : vector<8x1xf32>
    %179 = tpu.matmul %177, %178, %cst_96 {dimension_numbers = #tpu.dot_dimension_numbers<[1], [0], [0], [1], [0, 0, 1, 1], [], []>} : vector<8x16xbf16>, vector<16x1xbf16>, vector<8x1xf32> -> vector<8x1xf32>
    %c0_97 = arith.constant 0 : index
    %c0_98 = arith.constant 0 : index
    %180 = vector.load %arg28[%c0_97, %c0_98] : memref<8x1xf32, #tpu.memory_space<vmem>>, vector<8x1xf32>
    %181 = arith.addf %179, %180 : vector<8x1xf32>
    %cst_99 = arith.constant 0.000000e+00 : f32
    %182 = vector.broadcast %cst_99 : f32 to vector<8x1xf32>
    %183 = arith.subf %182, %181 : vector<8x1xf32>
    %184 = math.exp %183 : vector<8x1xf32>
    %cst_100 = arith.constant 1.000000e+00 : f32
    %185 = vector.broadcast %cst_100 : f32 to vector<8x1xf32>
    %186 = arith.addf %185, %184 : vector<8x1xf32>
    %187 = tpu.reciprocal %186 {approx = true} : vector<8x1xf32> -> vector<8x1xf32>
    %188 = arith.mulf %181, %187 : vector<8x1xf32>
    %c0_101 = arith.constant 0 : index
    %c0_102 = arith.constant 0 : index
    %189 = vector.load %arg29[%c0_101, %c0_102] : memref<2x8xbf16, #tpu.memory_space<vmem>>, vector<2x8xbf16>
    %190 = arith.truncf %188 : vector<8x1xf32> to vector<8x1xbf16>
    %cst_103 = arith.constant dense<0.000000e+00> : vector<2x1xf32>
    %191 = tpu.matmul %189, %190, %cst_103 {dimension_numbers = #tpu.dot_dimension_numbers<[1], [0], [0], [1], [0, 0, 1, 1], [], []>} : vector<2x8xbf16>, vector<8x1xbf16>, vector<2x1xf32> -> vector<2x1xf32>
    %c0_104 = arith.constant 0 : index
    %c0_105 = arith.constant 0 : index
    %192 = vector.load %arg30[%c0_104, %c0_105] : memref<2x1xf32, #tpu.memory_space<vmem>>, vector<2x1xf32>
    %193 = arith.addf %191, %192 : vector<2x1xf32>
    %c0_106 = arith.constant 0 : index
    %c0_107 = arith.constant 0 : index
    %194 = vector.load %arg4[%c0_106, %c0_107] : memref<1x2xf32, #tpu.memory_space<vmem>>, vector<1x2xf32>
    %195 = vector.extract_strided_slice %194 {offsets = [0, 0], sizes = [1, 1], strides = [1, 1]} : vector<1x2xf32> to vector<1x1xf32>
    %196 = vector.extract_strided_slice %193 {offsets = [0, 0], sizes = [1, 1], strides = [1, 1]} : vector<2x1xf32> to vector<1x1xf32>
    %cst_108 = arith.constant 2.000000e+01 : f32
    %197 = vector.broadcast %cst_108 : f32 to vector<1x1xf32>
    %198 = arith.cmpf ogt, %196, %197 : vector<1x1xf32>
    %cst_109 = arith.constant 2.000000e+01 : f32
    %199 = vector.broadcast %cst_109 : f32 to vector<1x1xf32>
    %200 = arith.minimumf %196, %199 : vector<1x1xf32>
    %201 = math.exp %200 : vector<1x1xf32>
    %cst_110 = arith.constant 1.000000e+00 : f32
    %202 = vector.broadcast %cst_110 : f32 to vector<1x1xf32>
    %203 = arith.addf %202, %201 : vector<1x1xf32>
    %204 = math.log %203 : vector<1x1xf32>
    %205 = arith.select %198, %196, %204 : vector<1x1xi1>, vector<1x1xf32>
    %206 = arith.mulf %195, %205 : vector<1x1xf32>
    %207 = vector.extract_strided_slice %194 {offsets = [0, 1], sizes = [1, 1], strides = [1, 1]} : vector<1x2xf32> to vector<1x1xf32>
    %208 = vector.extract_strided_slice %193 {offsets = [1, 0], sizes = [1, 1], strides = [1, 1]} : vector<2x1xf32> to vector<1x1xf32>
    %cst_111 = arith.constant 0.000000e+00 : f32
    %209 = vector.broadcast %cst_111 : f32 to vector<1x1xf32>
    %210 = arith.subf %209, %208 : vector<1x1xf32>
    %211 = math.exp %210 : vector<1x1xf32>
    %cst_112 = arith.constant 1.000000e+00 : f32
    %212 = vector.broadcast %cst_112 : f32 to vector<1x1xf32>
    %213 = arith.addf %212, %211 : vector<1x1xf32>
    %214 = tpu.reciprocal %213 {approx = true} : vector<1x1xf32> -> vector<1x1xf32>
    %215 = arith.mulf %208, %214 : vector<1x1xf32>
    %c0_113 = arith.constant 0 : index
    %c0_114 = arith.constant 0 : index
    %216 = vector.load %arg31[%c0_113, %c0_114] : memref<1x4xf32, #tpu.memory_space<vmem>>, vector<1x4xf32>
    %217 = vector.broadcast %215 : vector<1x1xf32> to vector<1x4xf32>
    %218 = arith.mulf %217, %216 : vector<1x4xf32>
    %c0_115 = arith.constant 0 : index
    %c0_116 = arith.constant 0 : index
    %219 = vector.load %arg32[%c0_115, %c0_116] : memref<1x4xf32, #tpu.memory_space<vmem>>, vector<1x4xf32>
    %220 = arith.addf %218, %219 : vector<1x4xf32>
    %cst_117 = arith.constant 2.000000e+01 : f32
    %221 = vector.broadcast %cst_117 : f32 to vector<1x4xf32>
    %222 = arith.cmpf ogt, %220, %221 : vector<1x4xf32>
    %cst_118 = arith.constant 2.000000e+01 : f32
    %223 = vector.broadcast %cst_118 : f32 to vector<1x4xf32>
    %224 = arith.minimumf %220, %223 : vector<1x4xf32>
    %225 = math.exp %224 : vector<1x4xf32>
    %cst_119 = arith.constant 1.000000e+00 : f32
    %226 = vector.broadcast %cst_119 : f32 to vector<1x4xf32>
    %227 = arith.addf %226, %225 : vector<1x4xf32>
    %228 = math.log %227 : vector<1x4xf32>
    %229 = arith.select %222, %220, %228 : vector<1x4xi1>, vector<1x4xf32>
    %230 = vector.broadcast %207 : vector<1x1xf32> to vector<1x4xf32>
    %231 = arith.mulf %230, %229 : vector<1x4xf32>
    %cst_120 = arith.constant 9.99999974E-6 : f32
    %232 = vector.broadcast %cst_120 : f32 to vector<1x4xf32>
    %233 = arith.addf %231, %232 : vector<1x4xf32>
    %c0_121 = arith.constant 0 : index
    %c0_122 = arith.constant 0 : index
    %c0_123 = arith.constant 0 : index
    %234 = vector.load %arg3[%c0_121, %c0_122, %c0_123] : memref<1x32x4xf32, #tpu.memory_space<vmem>>, vector<1x32x4xf32>
    %235 = vector.shape_cast %234 : vector<1x32x4xf32> to vector<32x4xf32>
    %c9_i32 = arith.constant 9 : i32
    %236 = tpu.dynamic_rotate %235 by %c9_i32 dim 0 : vector<32x4xf32>, i32 -> vector<32x4xf32>
    %c0_124 = arith.constant 0 : index
    %c0_125 = arith.constant 0 : index
    %237 = vector.load %arg6[%c0_124, %c0_125] : memref<32x9xf32, #tpu.memory_space<vmem>>, vector<32x1xf32>
    %238 = vector.broadcast %237 : vector<32x1xf32> to vector<32x4xf32>
    %239 = arith.mulf %236, %238 : vector<32x4xf32>
    %c8_i32 = arith.constant 8 : i32
    %240 = tpu.dynamic_rotate %235 by %c8_i32 dim 0 : vector<32x4xf32>, i32 -> vector<32x4xf32>
    %c0_126 = arith.constant 0 : index
    %c1_127 = arith.constant 1 : index
    %241 = vector.load %arg6[%c0_126, %c1_127] : memref<32x9xf32, #tpu.memory_space<vmem>>, vector<32x1xf32>
    %242 = vector.broadcast %241 : vector<32x1xf32> to vector<32x4xf32>
    %243 = arith.mulf %240, %242 : vector<32x4xf32>
    %c7_i32 = arith.constant 7 : i32
    %244 = tpu.dynamic_rotate %235 by %c7_i32 dim 0 : vector<32x4xf32>, i32 -> vector<32x4xf32>
    %c0_128 = arith.constant 0 : index
    %c2_129 = arith.constant 2 : index
    %245 = vector.load %arg6[%c0_128, %c2_129] : memref<32x9xf32, #tpu.memory_space<vmem>>, vector<32x1xf32>
    %246 = vector.broadcast %245 : vector<32x1xf32> to vector<32x4xf32>
    %247 = arith.mulf %244, %246 : vector<32x4xf32>
    %c1_i32_130 = arith.constant 1 : i32
    %248 = tpu.dynamic_rotate %235 by %c1_i32_130 dim 0 : vector<32x4xf32>, i32 -> vector<32x4xf32>
    %c0_131 = arith.constant 0 : index
    %c3 = arith.constant 3 : index
    %249 = vector.load %arg6[%c0_131, %c3] : memref<32x9xf32, #tpu.memory_space<vmem>>, vector<32x1xf32>
    %250 = vector.broadcast %249 : vector<32x1xf32> to vector<32x4xf32>
    %251 = arith.mulf %248, %250 : vector<32x4xf32>
    %c31_i32 = arith.constant 31 : i32
    %252 = tpu.dynamic_rotate %235 by %c31_i32 dim 0 : vector<32x4xf32>, i32 -> vector<32x4xf32>
    %c0_132 = arith.constant 0 : index
    %c5_133 = arith.constant 5 : index
    %253 = vector.load %arg6[%c0_132, %c5_133] : memref<32x9xf32, #tpu.memory_space<vmem>>, vector<32x1xf32>
    %254 = vector.broadcast %253 : vector<32x1xf32> to vector<32x4xf32>
    %255 = arith.mulf %252, %254 : vector<32x4xf32>
    %c25_i32 = arith.constant 25 : i32
    %256 = tpu.dynamic_rotate %235 by %c25_i32 dim 0 : vector<32x4xf32>, i32 -> vector<32x4xf32>
    %c0_134 = arith.constant 0 : index
    %c6_135 = arith.constant 6 : index
    %257 = vector.load %arg6[%c0_134, %c6_135] : memref<32x9xf32, #tpu.memory_space<vmem>>, vector<32x1xf32>
    %258 = vector.broadcast %257 : vector<32x1xf32> to vector<32x4xf32>
    %259 = arith.mulf %256, %258 : vector<32x4xf32>
    %c24_i32 = arith.constant 24 : i32
    %260 = tpu.dynamic_rotate %235 by %c24_i32 dim 0 : vector<32x4xf32>, i32 -> vector<32x4xf32>
    %c0_136 = arith.constant 0 : index
    %c7 = arith.constant 7 : index
    %261 = vector.load %arg6[%c0_136, %c7] : memref<32x9xf32, #tpu.memory_space<vmem>>, vector<32x1xf32>
    %262 = vector.broadcast %261 : vector<32x1xf32> to vector<32x4xf32>
    %263 = arith.mulf %260, %262 : vector<32x4xf32>
    %c23_i32 = arith.constant 23 : i32
    %264 = tpu.dynamic_rotate %235 by %c23_i32 dim 0 : vector<32x4xf32>, i32 -> vector<32x4xf32>
    %c0_137 = arith.constant 0 : index
    %c8 = arith.constant 8 : index
    %265 = vector.load %arg6[%c0_137, %c8] : memref<32x9xf32, #tpu.memory_space<vmem>>, vector<32x1xf32>
    %266 = vector.broadcast %265 : vector<32x1xf32> to vector<32x4xf32>
    %267 = arith.mulf %264, %266 : vector<32x4xf32>
    %268 = tpu.concatenate %239, %243, %247, %251, %235, %255, %259, %263, %267 in 1 : vector<32x4xf32>, vector<32x4xf32>, vector<32x4xf32>, vector<32x4xf32>, vector<32x4xf32>, vector<32x4xf32>, vector<32x4xf32>, vector<32x4xf32>, vector<32x4xf32> -> vector<32x36xf32>
    %269 = arith.truncf %268 : vector<32x36xf32> to vector<32x36xbf16>
    %c0_138 = arith.constant 0 : index
    %c0_139 = arith.constant 0 : index
    %270 = vector.load %arg33[%c0_138, %c0_139] : memref<36x16xbf16, #tpu.memory_space<vmem>>, vector<36x16xbf16>
    %cst_140 = arith.constant dense<0.000000e+00> : vector<32x16xf32>
    %271 = tpu.matmul %269, %270, %cst_140 {dimension_numbers = #tpu.dot_dimension_numbers<[1], [0], [0], [1], [0, 0, 1, 1], [], []>} : vector<32x36xbf16>, vector<36x16xbf16>, vector<32x16xf32> -> vector<32x16xf32>
    %c0_141 = arith.constant 0 : index
    %c0_142 = arith.constant 0 : index
    %272 = vector.load %arg34[%c0_141, %c0_142] : memref<1x16xf32, #tpu.memory_space<vmem>>, vector<1x16xf32>
    %273 = vector.broadcast %272 : vector<1x16xf32> to vector<32x16xf32>
    %274 = arith.addf %271, %273 : vector<32x16xf32>
    %c9_i32_143 = arith.constant 9 : i32
    %275 = tpu.dynamic_rotate %274 by %c9_i32_143 dim 0 : vector<32x16xf32>, i32 -> vector<32x16xf32>
    %c0_144 = arith.constant 0 : index
    %c0_145 = arith.constant 0 : index
    %276 = vector.load %arg6[%c0_144, %c0_145] : memref<32x9xf32, #tpu.memory_space<vmem>>, vector<32x1xf32>
    %277 = vector.broadcast %276 : vector<32x1xf32> to vector<32x16xf32>
    %278 = arith.mulf %275, %277 : vector<32x16xf32>
    %c8_i32_146 = arith.constant 8 : i32
    %279 = tpu.dynamic_rotate %274 by %c8_i32_146 dim 0 : vector<32x16xf32>, i32 -> vector<32x16xf32>
    %c0_147 = arith.constant 0 : index
    %c1_148 = arith.constant 1 : index
    %280 = vector.load %arg6[%c0_147, %c1_148] : memref<32x9xf32, #tpu.memory_space<vmem>>, vector<32x1xf32>
    %281 = vector.broadcast %280 : vector<32x1xf32> to vector<32x16xf32>
    %282 = arith.mulf %279, %281 : vector<32x16xf32>
    %c7_i32_149 = arith.constant 7 : i32
    %283 = tpu.dynamic_rotate %274 by %c7_i32_149 dim 0 : vector<32x16xf32>, i32 -> vector<32x16xf32>
    %c0_150 = arith.constant 0 : index
    %c2_151 = arith.constant 2 : index
    %284 = vector.load %arg6[%c0_150, %c2_151] : memref<32x9xf32, #tpu.memory_space<vmem>>, vector<32x1xf32>
    %285 = vector.broadcast %284 : vector<32x1xf32> to vector<32x16xf32>
    %286 = arith.mulf %283, %285 : vector<32x16xf32>
    %c1_i32_152 = arith.constant 1 : i32
    %287 = tpu.dynamic_rotate %274 by %c1_i32_152 dim 0 : vector<32x16xf32>, i32 -> vector<32x16xf32>
    %c0_153 = arith.constant 0 : index
    %c3_154 = arith.constant 3 : index
    %288 = vector.load %arg6[%c0_153, %c3_154] : memref<32x9xf32, #tpu.memory_space<vmem>>, vector<32x1xf32>
    %289 = vector.broadcast %288 : vector<32x1xf32> to vector<32x16xf32>
    %290 = arith.mulf %287, %289 : vector<32x16xf32>
    %c31_i32_155 = arith.constant 31 : i32
    %291 = tpu.dynamic_rotate %274 by %c31_i32_155 dim 0 : vector<32x16xf32>, i32 -> vector<32x16xf32>
    %c0_156 = arith.constant 0 : index
    %c5_157 = arith.constant 5 : index
    %292 = vector.load %arg6[%c0_156, %c5_157] : memref<32x9xf32, #tpu.memory_space<vmem>>, vector<32x1xf32>
    %293 = vector.broadcast %292 : vector<32x1xf32> to vector<32x16xf32>
    %294 = arith.mulf %291, %293 : vector<32x16xf32>
    %c25_i32_158 = arith.constant 25 : i32
    %295 = tpu.dynamic_rotate %274 by %c25_i32_158 dim 0 : vector<32x16xf32>, i32 -> vector<32x16xf32>
    %c0_159 = arith.constant 0 : index
    %c6_160 = arith.constant 6 : index
    %296 = vector.load %arg6[%c0_159, %c6_160] : memref<32x9xf32, #tpu.memory_space<vmem>>, vector<32x1xf32>
    %297 = vector.broadcast %296 : vector<32x1xf32> to vector<32x16xf32>
    %298 = arith.mulf %295, %297 : vector<32x16xf32>
    %c24_i32_161 = arith.constant 24 : i32
    %299 = tpu.dynamic_rotate %274 by %c24_i32_161 dim 0 : vector<32x16xf32>, i32 -> vector<32x16xf32>
    %c0_162 = arith.constant 0 : index
    %c7_163 = arith.constant 7 : index
    %300 = vector.load %arg6[%c0_162, %c7_163] : memref<32x9xf32, #tpu.memory_space<vmem>>, vector<32x1xf32>
    %301 = vector.broadcast %300 : vector<32x1xf32> to vector<32x16xf32>
    %302 = arith.mulf %299, %301 : vector<32x16xf32>
    %c23_i32_164 = arith.constant 23 : i32
    %303 = tpu.dynamic_rotate %274 by %c23_i32_164 dim 0 : vector<32x16xf32>, i32 -> vector<32x16xf32>
    %c0_165 = arith.constant 0 : index
    %c8_166 = arith.constant 8 : index
    %304 = vector.load %arg6[%c0_165, %c8_166] : memref<32x9xf32, #tpu.memory_space<vmem>>, vector<32x1xf32>
    %305 = vector.broadcast %304 : vector<32x1xf32> to vector<32x16xf32>
    %306 = arith.mulf %303, %305 : vector<32x16xf32>
    %307 = tpu.concatenate %278, %282, %286, %290, %274, %294, %298, %302, %306 in 1 : vector<32x16xf32>, vector<32x16xf32>, vector<32x16xf32>, vector<32x16xf32>, vector<32x16xf32>, vector<32x16xf32>, vector<32x16xf32>, vector<32x16xf32>, vector<32x16xf32> -> vector<32x144xf32>
    %308 = arith.truncf %307 : vector<32x144xf32> to vector<32x144xbf16>
    %c0_167 = arith.constant 0 : index
    %c0_168 = arith.constant 0 : index
    %309 = vector.load %arg35[%c0_167, %c0_168] : memref<144x8xbf16, #tpu.memory_space<vmem>>, vector<144x8xbf16>
    %cst_169 = arith.constant dense<0.000000e+00> : vector<32x8xf32>
    %310 = tpu.matmul %308, %309, %cst_169 {dimension_numbers = #tpu.dot_dimension_numbers<[1], [0], [0], [1], [0, 0, 1, 1], [], []>} : vector<32x144xbf16>, vector<144x8xbf16>, vector<32x8xf32> -> vector<32x8xf32>
    %c0_170 = arith.constant 0 : index
    %c0_171 = arith.constant 0 : index
    %311 = vector.load %arg36[%c0_170, %c0_171] : memref<1x8xf32, #tpu.memory_space<vmem>>, vector<1x8xf32>
    %312 = vector.broadcast %311 : vector<1x8xf32> to vector<32x8xf32>
    %313 = arith.addf %310, %312 : vector<32x8xf32>
    %c9_i32_172 = arith.constant 9 : i32
    %314 = tpu.dynamic_rotate %313 by %c9_i32_172 dim 0 : vector<32x8xf32>, i32 -> vector<32x8xf32>
    %c0_173 = arith.constant 0 : index
    %c0_174 = arith.constant 0 : index
    %315 = vector.load %arg6[%c0_173, %c0_174] : memref<32x9xf32, #tpu.memory_space<vmem>>, vector<32x1xf32>
    %316 = vector.broadcast %315 : vector<32x1xf32> to vector<32x8xf32>
    %317 = arith.mulf %314, %316 : vector<32x8xf32>
    %c8_i32_175 = arith.constant 8 : i32
    %318 = tpu.dynamic_rotate %313 by %c8_i32_175 dim 0 : vector<32x8xf32>, i32 -> vector<32x8xf32>
    %c0_176 = arith.constant 0 : index
    %c1_177 = arith.constant 1 : index
    %319 = vector.load %arg6[%c0_176, %c1_177] : memref<32x9xf32, #tpu.memory_space<vmem>>, vector<32x1xf32>
    %320 = vector.broadcast %319 : vector<32x1xf32> to vector<32x8xf32>
    %321 = arith.mulf %318, %320 : vector<32x8xf32>
    %c7_i32_178 = arith.constant 7 : i32
    %322 = tpu.dynamic_rotate %313 by %c7_i32_178 dim 0 : vector<32x8xf32>, i32 -> vector<32x8xf32>
    %c0_179 = arith.constant 0 : index
    %c2_180 = arith.constant 2 : index
    %323 = vector.load %arg6[%c0_179, %c2_180] : memref<32x9xf32, #tpu.memory_space<vmem>>, vector<32x1xf32>
    %324 = vector.broadcast %323 : vector<32x1xf32> to vector<32x8xf32>
    %325 = arith.mulf %322, %324 : vector<32x8xf32>
    %c1_i32_181 = arith.constant 1 : i32
    %326 = tpu.dynamic_rotate %313 by %c1_i32_181 dim 0 : vector<32x8xf32>, i32 -> vector<32x8xf32>
    %c0_182 = arith.constant 0 : index
    %c3_183 = arith.constant 3 : index
    %327 = vector.load %arg6[%c0_182, %c3_183] : memref<32x9xf32, #tpu.memory_space<vmem>>, vector<32x1xf32>
    %328 = vector.broadcast %327 : vector<32x1xf32> to vector<32x8xf32>
    %329 = arith.mulf %326, %328 : vector<32x8xf32>
    %c31_i32_184 = arith.constant 31 : i32
    %330 = tpu.dynamic_rotate %313 by %c31_i32_184 dim 0 : vector<32x8xf32>, i32 -> vector<32x8xf32>
    %c0_185 = arith.constant 0 : index
    %c5_186 = arith.constant 5 : index
    %331 = vector.load %arg6[%c0_185, %c5_186] : memref<32x9xf32, #tpu.memory_space<vmem>>, vector<32x1xf32>
    %332 = vector.broadcast %331 : vector<32x1xf32> to vector<32x8xf32>
    %333 = arith.mulf %330, %332 : vector<32x8xf32>
    %c25_i32_187 = arith.constant 25 : i32
    %334 = tpu.dynamic_rotate %313 by %c25_i32_187 dim 0 : vector<32x8xf32>, i32 -> vector<32x8xf32>
    %c0_188 = arith.constant 0 : index
    %c6_189 = arith.constant 6 : index
    %335 = vector.load %arg6[%c0_188, %c6_189] : memref<32x9xf32, #tpu.memory_space<vmem>>, vector<32x1xf32>
    %336 = vector.broadcast %335 : vector<32x1xf32> to vector<32x8xf32>
    %337 = arith.mulf %334, %336 : vector<32x8xf32>
    %c24_i32_190 = arith.constant 24 : i32
    %338 = tpu.dynamic_rotate %313 by %c24_i32_190 dim 0 : vector<32x8xf32>, i32 -> vector<32x8xf32>
    %c0_191 = arith.constant 0 : index
    %c7_192 = arith.constant 7 : index
    %339 = vector.load %arg6[%c0_191, %c7_192] : memref<32x9xf32, #tpu.memory_space<vmem>>, vector<32x1xf32>
    %340 = vector.broadcast %339 : vector<32x1xf32> to vector<32x8xf32>
    %341 = arith.mulf %338, %340 : vector<32x8xf32>
    %c23_i32_193 = arith.constant 23 : i32
    %342 = tpu.dynamic_rotate %313 by %c23_i32_193 dim 0 : vector<32x8xf32>, i32 -> vector<32x8xf32>
    %c0_194 = arith.constant 0 : index
    %c8_195 = arith.constant 8 : index
    %343 = vector.load %arg6[%c0_194, %c8_195] : memref<32x9xf32, #tpu.memory_space<vmem>>, vector<32x1xf32>
    %344 = vector.broadcast %343 : vector<32x1xf32> to vector<32x8xf32>
    %345 = arith.mulf %342, %344 : vector<32x8xf32>
    %346 = tpu.concatenate %317, %321, %325, %329, %313, %333, %337, %341, %345 in 1 : vector<32x8xf32>, vector<32x8xf32>, vector<32x8xf32>, vector<32x8xf32>, vector<32x8xf32>, vector<32x8xf32>, vector<32x8xf32>, vector<32x8xf32>, vector<32x8xf32> -> vector<32x72xf32>
    %347 = arith.truncf %346 : vector<32x72xf32> to vector<32x72xbf16>
    %c0_196 = arith.constant 0 : index
    %c0_197 = arith.constant 0 : index
    %348 = vector.load %arg37[%c0_196, %c0_197] : memref<72x4xbf16, #tpu.memory_space<vmem>>, vector<72x4xbf16>
    %cst_198 = arith.constant dense<0.000000e+00> : vector<32x4xf32>
    %349 = tpu.matmul %347, %348, %cst_198 {dimension_numbers = #tpu.dot_dimension_numbers<[1], [0], [0], [1], [0, 0, 1, 1], [], []>} : vector<32x72xbf16>, vector<72x4xbf16>, vector<32x4xf32> -> vector<32x4xf32>
    %c0_199 = arith.constant 0 : index
    %c0_200 = arith.constant 0 : index
    %350 = vector.load %arg38[%c0_199, %c0_200] : memref<1x4xf32, #tpu.memory_space<vmem>>, vector<1x4xf32>
    %351 = vector.broadcast %350 : vector<1x4xf32> to vector<32x4xf32>
    %352 = arith.addf %349, %351 : vector<32x4xf32>
    %353 = arith.addf %352, %235 : vector<32x4xf32>
    %c0_201 = arith.constant 0 : index
    %c0_202 = arith.constant 0 : index
    %354 = vector.load %arg39[%c0_201, %c0_202] : memref<16x32xbf16, #tpu.memory_space<vmem>>, vector<16x32xbf16>
    %355 = arith.truncf %353 : vector<32x4xf32> to vector<32x4xbf16>
    %cst_203 = arith.constant dense<0.000000e+00> : vector<16x4xf32>
    %356 = tpu.matmul %354, %355, %cst_203 {dimension_numbers = #tpu.dot_dimension_numbers<[1], [0], [0], [1], [0, 0, 1, 1], [], []>} : vector<16x32xbf16>, vector<32x4xbf16>, vector<16x4xf32> -> vector<16x4xf32>
    %c0_204 = arith.constant 0 : index
    %c0_205 = arith.constant 0 : index
    %357 = vector.load %arg40[%c0_204, %c0_205] : memref<16x1xf32, #tpu.memory_space<vmem>>, vector<16x1xf32>
    %358 = vector.broadcast %357 : vector<16x1xf32> to vector<16x4xf32>
    %359 = arith.addf %356, %358 : vector<16x4xf32>
    %cst_206 = arith.constant 0.000000e+00 : f32
    %360 = vector.broadcast %cst_206 : f32 to vector<16x4xf32>
    %361 = arith.subf %360, %359 : vector<16x4xf32>
    %362 = math.exp %361 : vector<16x4xf32>
    %cst_207 = arith.constant 1.000000e+00 : f32
    %363 = vector.broadcast %cst_207 : f32 to vector<16x4xf32>
    %364 = arith.addf %363, %362 : vector<16x4xf32>
    %365 = tpu.reciprocal %364 {approx = true} : vector<16x4xf32> -> vector<16x4xf32>
    %366 = arith.mulf %359, %365 : vector<16x4xf32>
    %c0_208 = arith.constant 0 : index
    %c0_209 = arith.constant 0 : index
    %367 = vector.load %arg41[%c0_208, %c0_209] : memref<8x16xbf16, #tpu.memory_space<vmem>>, vector<8x16xbf16>
    %368 = arith.truncf %366 : vector<16x4xf32> to vector<16x4xbf16>
    %cst_210 = arith.constant dense<0.000000e+00> : vector<8x4xf32>
    %369 = tpu.matmul %367, %368, %cst_210 {dimension_numbers = #tpu.dot_dimension_numbers<[1], [0], [0], [1], [0, 0, 1, 1], [], []>} : vector<8x16xbf16>, vector<16x4xbf16>, vector<8x4xf32> -> vector<8x4xf32>
    %c0_211 = arith.constant 0 : index
    %c0_212 = arith.constant 0 : index
    %370 = vector.load %arg42[%c0_211, %c0_212] : memref<8x1xf32, #tpu.memory_space<vmem>>, vector<8x1xf32>
    %371 = vector.broadcast %370 : vector<8x1xf32> to vector<8x4xf32>
    %372 = arith.addf %369, %371 : vector<8x4xf32>
    %cst_213 = arith.constant 0.000000e+00 : f32
    %373 = vector.broadcast %cst_213 : f32 to vector<8x4xf32>
    %374 = arith.subf %373, %372 : vector<8x4xf32>
    %375 = math.exp %374 : vector<8x4xf32>
    %cst_214 = arith.constant 1.000000e+00 : f32
    %376 = vector.broadcast %cst_214 : f32 to vector<8x4xf32>
    %377 = arith.addf %376, %375 : vector<8x4xf32>
    %378 = tpu.reciprocal %377 {approx = true} : vector<8x4xf32> -> vector<8x4xf32>
    %379 = arith.mulf %372, %378 : vector<8x4xf32>
    %c0_215 = arith.constant 0 : index
    %c0_216 = arith.constant 0 : index
    %380 = vector.load %arg43[%c0_215, %c0_216] : memref<8x8xbf16, #tpu.memory_space<vmem>>, vector<8x8xbf16>
    %381 = arith.truncf %379 : vector<8x4xf32> to vector<8x4xbf16>
    %cst_217 = arith.constant dense<0.000000e+00> : vector<8x4xf32>
    %382 = tpu.matmul %380, %381, %cst_217 {dimension_numbers = #tpu.dot_dimension_numbers<[1], [0], [0], [1], [0, 0, 1, 1], [], []>} : vector<8x8xbf16>, vector<8x4xbf16>, vector<8x4xf32> -> vector<8x4xf32>
    %c0_218 = arith.constant 0 : index
    %c0_219 = arith.constant 0 : index
    %383 = vector.load %arg44[%c0_218, %c0_219] : memref<8x1xf32, #tpu.memory_space<vmem>>, vector<8x1xf32>
    %384 = vector.broadcast %383 : vector<8x1xf32> to vector<8x4xf32>
    %385 = arith.addf %382, %384 : vector<8x4xf32>
    %cst_220 = arith.constant 0.000000e+00 : f32
    %386 = vector.broadcast %cst_220 : f32 to vector<8x4xf32>
    %387 = arith.subf %386, %385 : vector<8x4xf32>
    %388 = math.exp %387 : vector<8x4xf32>
    %cst_221 = arith.constant 1.000000e+00 : f32
    %389 = vector.broadcast %cst_221 : f32 to vector<8x4xf32>
    %390 = arith.addf %389, %388 : vector<8x4xf32>
    %391 = tpu.reciprocal %390 {approx = true} : vector<8x4xf32> -> vector<8x4xf32>
    %392 = arith.mulf %385, %391 : vector<8x4xf32>
    %c0_222 = arith.constant 0 : index
    %c0_223 = arith.constant 0 : index
    %393 = vector.load %arg45[%c0_222, %c0_223] : memref<1x8xbf16, #tpu.memory_space<vmem>>, vector<1x8xbf16>
    %394 = arith.truncf %392 : vector<8x4xf32> to vector<8x4xbf16>
    %cst_224 = arith.constant dense<0.000000e+00> : vector<1x4xf32>
    %395 = tpu.matmul %393, %394, %cst_224 {dimension_numbers = #tpu.dot_dimension_numbers<[1], [0], [0], [1], [0, 0, 1, 1], [], []>} : vector<1x8xbf16>, vector<8x4xbf16>, vector<1x4xf32> -> vector<1x4xf32>
    %c0_225 = arith.constant 0 : index
    %c0_226 = arith.constant 0 : index
    %396 = vector.load %arg46[%c0_225, %c0_226] : memref<1x1xf32, #tpu.memory_space<vmem>>, vector<1x1xf32>
    %397 = vector.broadcast %396 : vector<1x1xf32> to vector<1x4xf32>
    %398 = arith.addf %395, %397 : vector<1x4xf32>
    %cst_227 = arith.constant 0.000000e+00 : f32
    %399 = vector.broadcast %cst_227 : f32 to vector<1x4xf32>
    %400 = arith.subf %399, %398 : vector<1x4xf32>
    %401 = math.exp %400 : vector<1x4xf32>
    %cst_228 = arith.constant 1.000000e+00 : f32
    %402 = vector.broadcast %cst_228 : f32 to vector<1x4xf32>
    %403 = arith.addf %402, %401 : vector<1x4xf32>
    %404 = tpu.reciprocal %403 {approx = true} : vector<1x4xf32> -> vector<1x4xf32>
    %405 = arith.mulf %398, %404 : vector<1x4xf32>
    %cst_229 = arith.constant 0.699999988 : f32
    %406 = vector.broadcast %cst_229 : f32 to vector<1x4xf32>
    %407 = arith.divf %405, %406 : vector<1x4xf32>
    %408 = tpu.transpose %407, [1, 0] : vector<1x4xf32> -> vector<4x1xf32>
    %409 = vector.broadcast %407 : vector<1x4xf32> to vector<4x4xf32>
    %410 = vector.broadcast %408 : vector<4x1xf32> to vector<4x4xf32>
    %411 = arith.cmpf oge, %409, %410 : vector<4x4xf32>
    %412 = arith.extui %411 : vector<4x4xi1> to vector<4x4xi32>
    %413 = arith.sitofp %412 : vector<4x4xi32> to vector<4x4xf32>
    %cst_230 = arith.constant dense<0.000000e+00> : vector<4xf32>
    %414 = vector.multi_reduction <add>, %413, %cst_230 [1] : vector<4x4xf32> to vector<4xf32>
    %415 = vector.shape_cast %414 : vector<4xf32> to vector<4x1xf32>
    %416 = vector.broadcast %407 : vector<1x4xf32> to vector<4x4xf32>
    %417 = arith.mulf %413, %416 : vector<4x4xf32>
    %cst_231 = arith.constant dense<0.000000e+00> : vector<4xf32>
    %418 = vector.multi_reduction <add>, %417, %cst_231 [1] : vector<4x4xf32> to vector<4xf32>
    %419 = vector.shape_cast %418 : vector<4xf32> to vector<4x1xf32>
    %420 = arith.mulf %415, %408 : vector<4x1xf32>
    %cst_232 = arith.constant 1.000000e+00 : f32
    %421 = vector.broadcast %cst_232 : f32 to vector<4x1xf32>
    %422 = arith.addf %421, %420 : vector<4x1xf32>
    %423 = arith.cmpf ogt, %422, %419 : vector<4x1xf32>
    %424 = arith.extui %423 : vector<4x1xi1> to vector<4x1xi32>
    %425 = arith.sitofp %424 : vector<4x1xi32> to vector<4x1xf32>
    %426 = arith.mulf %425, %408 : vector<4x1xf32>
    %cst_233 = arith.constant dense<0.000000e+00> : vector<1xf32>
    %427 = vector.multi_reduction <add>, %426, %cst_233 [0] : vector<4x1xf32> to vector<1xf32>
    %428 = vector.shape_cast %427 : vector<1xf32> to vector<1x1xf32>
    %cst_234 = arith.constant dense<0.000000e+00> : vector<1xf32>
    %429 = vector.multi_reduction <add>, %425, %cst_234 [0] : vector<4x1xf32> to vector<1xf32>
    %430 = vector.shape_cast %429 : vector<1xf32> to vector<1x1xf32>
    %cst_235 = arith.constant 1.000000e+00 : f32
    %431 = vector.broadcast %cst_235 : f32 to vector<1x1xf32>
    %432 = arith.subf %428, %431 : vector<1x1xf32>
    %433 = arith.divf %432, %430 : vector<1x1xf32>
    %434 = vector.broadcast %433 : vector<1x1xf32> to vector<1x4xf32>
    %435 = arith.subf %407, %434 : vector<1x4xf32>
    %cst_236 = arith.constant 0.000000e+00 : f32
    %436 = vector.broadcast %cst_236 : f32 to vector<1x4xf32>
    %437 = arith.maximumf %435, %436 : vector<1x4xf32>
    %438 = vector.broadcast %206 : vector<1x1xf32> to vector<1x4xf32>
    %439 = arith.mulf %437, %438 : vector<1x4xf32>
    %440 = tpu.concatenate %437, %439, %233, %206 in 1 : vector<1x4xf32>, vector<1x4xf32>, vector<1x4xf32>, vector<1x1xf32> -> vector<1x13xf32>
    %c0_237 = arith.constant 0 : index
    %c0_238 = arith.constant 0 : index
    %c0_239 = arith.constant 0 : index
    %441 = vector.load %arg47[%c0_237, %c0_238, %c0_239] : memref<1x1x13xf32, #tpu.memory_space<vmem>>, vector<1x1x13xf32>
    %442 = vector.shape_cast %441 : vector<1x1x13xf32> to vector<1x13xf32>
    %443 = vector.shape_cast %440 : vector<1x13xf32> to vector<1x1x13xf32>
    tpu.vector_store %arg47[%c0_237, %c0_238, %c0_239], %443 {strides = array<i32>} : memref<1x1x13xf32, #tpu.memory_space<vmem>>, vector<1x1x13xf32>,
    return
  }
  func.func @transform_0(%arg0: i32) -> (i32, i32, i32) {
    %c0_i32 = arith.constant 0 : i32
    %c0_i32_0 = arith.constant 0 : i32
    %c0_i32_1 = arith.constant 0 : i32
    return %arg0, %c0_i32, %c0_i32_0 : i32, i32, i32
  }
  func.func @transform_1(%arg0: i32) -> (i32, i32, i32) {
    %c0_i32 = arith.constant 0 : i32
    %c0_i32_0 = arith.constant 0 : i32
    %c0_i32_1 = arith.constant 0 : i32
    return %arg0, %c0_i32, %c0_i32_0 : i32, i32, i32
  }
  func.func @transform_2(%arg0: i32) -> (i32, i32, i32) {
    %c0_i32 = arith.constant 0 : i32
    %c0_i32_0 = arith.constant 0 : i32
    %c0_i32_1 = arith.constant 0 : i32
    return %arg0, %c0_i32, %c0_i32_0 : i32, i32, i32
  }
  func.func @transform_3(%arg0: i32) -> (i32, i32) {
    %c0_i32 = arith.constant 0 : i32
    %c0_i32_0 = arith.constant 0 : i32
    %c0_i32_1 = arith.constant 0 : i32
    return %c0_i32, %c0_i32_0 : i32, i32
  }
  func.func @transform_4(%arg0: i32) -> (i32, i32) {
    %c0_i32 = arith.constant 0 : i32
    %c0_i32_0 = arith.constant 0 : i32
    %c0_i32_1 = arith.constant 0 : i32
    return %c0_i32, %c0_i32_0 : i32, i32
  }
  func.func @transform_5(%arg0: i32) -> (i32, i32) {
    %c0_i32 = arith.constant 0 : i32
    %c0_i32_0 = arith.constant 0 : i32
    %c0_i32_1 = arith.constant 0 : i32
    return %c0_i32, %c0_i32_0 : i32, i32
  }
  func.func @transform_6(%arg0: i32) -> (i32, i32) {
    %c0_i32 = arith.constant 0 : i32
    %c0_i32_0 = arith.constant 0 : i32
    %c0_i32_1 = arith.constant 0 : i32
    return %c0_i32, %c0_i32_0 : i32, i32
  }
  func.func @transform_7(%arg0: i32) -> (i32, i32) {
    %c0_i32 = arith.constant 0 : i32
    %c0_i32_0 = arith.constant 0 : i32
    %c0_i32_1 = arith.constant 0 : i32
    return %c0_i32, %c0_i32_0 : i32, i32
  }
  func.func @transform_8(%arg0: i32) -> (i32, i32) {
    %c0_i32 = arith.constant 0 : i32
    %c0_i32_0 = arith.constant 0 : i32
    %c0_i32_1 = arith.constant 0 : i32
    return %c0_i32, %c0_i32_0 : i32, i32
  }
  func.func @transform_9(%arg0: i32) -> (i32, i32) {
    %c0_i32 = arith.constant 0 : i32
    %c0_i32_0 = arith.constant 0 : i32
    %c0_i32_1 = arith.constant 0 : i32
    return %c0_i32, %c0_i32_0 : i32, i32
  }
  func.func @transform_10(%arg0: i32) -> (i32, i32) {
    %c0_i32 = arith.constant 0 : i32
    %c0_i32_0 = arith.constant 0 : i32
    %c0_i32_1 = arith.constant 0 : i32
    return %c0_i32, %c0_i32_0 : i32, i32
  }
  func.func @transform_11(%arg0: i32) -> (i32, i32) {
    %c0_i32 = arith.constant 0 : i32
    %c0_i32_0 = arith.constant 0 : i32
    %c0_i32_1 = arith.constant 0 : i32
    return %c0_i32, %c0_i32_0 : i32, i32
  }
  func.func @transform_12(%arg0: i32) -> (i32, i32) {
    %c0_i32 = arith.constant 0 : i32
    %c0_i32_0 = arith.constant 0 : i32
    %c0_i32_1 = arith.constant 0 : i32
    return %c0_i32, %c0_i32_0 : i32, i32
  }
  func.func @transform_13(%arg0: i32) -> (i32, i32) {
    %c0_i32 = arith.constant 0 : i32
    %c0_i32_0 = arith.constant 0 : i32
    %c0_i32_1 = arith.constant 0 : i32
    return %c0_i32, %c0_i32_0 : i32, i32
  }
  func.func @transform_14(%arg0: i32) -> (i32, i32) {
    %c0_i32 = arith.constant 0 : i32
    %c0_i32_0 = arith.constant 0 : i32
    %c0_i32_1 = arith.constant 0 : i32
    return %c0_i32, %c0_i32_0 : i32, i32
  }
  func.func @transform_15(%arg0: i32) -> (i32, i32) {
    %c0_i32 = arith.constant 0 : i32
    %c0_i32_0 = arith.constant 0 : i32
    %c0_i32_1 = arith.constant 0 : i32
    return %c0_i32, %c0_i32_0 : i32, i32
  }
  func.func @transform_16(%arg0: i32) -> (i32, i32) {
    %c0_i32 = arith.constant 0 : i32
    %c0_i32_0 = arith.constant 0 : i32
    %c0_i32_1 = arith.constant 0 : i32
    return %c0_i32, %c0_i32_0 : i32, i32
  }
  func.func @transform_17(%arg0: i32) -> (i32, i32) {
    %c0_i32 = arith.constant 0 : i32
    %c0_i32_0 = arith.constant 0 : i32
    %c0_i32_1 = arith.constant 0 : i32
    return %c0_i32, %c0_i32_0 : i32, i32
  }
  func.func @transform_18(%arg0: i32) -> (i32, i32) {
    %c0_i32 = arith.constant 0 : i32
    %c0_i32_0 = arith.constant 0 : i32
    %c0_i32_1 = arith.constant 0 : i32
    return %c0_i32, %c0_i32_0 : i32, i32
  }
  func.func @transform_19(%arg0: i32) -> (i32, i32) {
    %c0_i32 = arith.constant 0 : i32
    %c0_i32_0 = arith.constant 0 : i32
    %c0_i32_1 = arith.constant 0 : i32
    return %c0_i32, %c0_i32_0 : i32, i32
  }
  func.func @transform_20(%arg0: i32) -> (i32, i32) {
    %c0_i32 = arith.constant 0 : i32
    %c0_i32_0 = arith.constant 0 : i32
    %c0_i32_1 = arith.constant 0 : i32
    return %c0_i32, %c0_i32_0 : i32, i32
  }
  func.func @transform_21(%arg0: i32) -> (i32, i32) {
    %c0_i32 = arith.constant 0 : i32
    %c0_i32_0 = arith.constant 0 : i32
    %c0_i32_1 = arith.constant 0 : i32
    return %c0_i32, %c0_i32_0 : i32, i32
  }
  func.func @transform_22(%arg0: i32) -> (i32, i32) {
    %c0_i32 = arith.constant 0 : i32
    %c0_i32_0 = arith.constant 0 : i32
    %c0_i32_1 = arith.constant 0 : i32
    return %c0_i32, %c0_i32_0 : i32, i32
  }
  func.func @transform_23(%arg0: i32) -> (i32, i32) {
    %c0_i32 = arith.constant 0 : i32
    %c0_i32_0 = arith.constant 0 : i32
    %c0_i32_1 = arith.constant 0 : i32
    return %c0_i32, %c0_i32_0 : i32, i32
  }
  func.func @transform_24(%arg0: i32) -> (i32, i32) {
    %c0_i32 = arith.constant 0 : i32
    %c0_i32_0 = arith.constant 0 : i32
    %c0_i32_1 = arith.constant 0 : i32
    return %c0_i32, %c0_i32_0 : i32, i32
  }
  func.func @transform_25(%arg0: i32) -> (i32, i32) {
    %c0_i32 = arith.constant 0 : i32
    %c0_i32_0 = arith.constant 0 : i32
    %c0_i32_1 = arith.constant 0 : i32
    return %c0_i32, %c0_i32_0 : i32, i32
  }
  func.func @transform_26(%arg0: i32) -> (i32, i32) {
    %c0_i32 = arith.constant 0 : i32
    %c0_i32_0 = arith.constant 0 : i32
    %c0_i32_1 = arith.constant 0 : i32
    return %c0_i32, %c0_i32_0 : i32, i32
  }
  func.func @transform_27(%arg0: i32) -> (i32, i32) {
    %c0_i32 = arith.constant 0 : i32
    %c0_i32_0 = arith.constant 0 : i32
    %c0_i32_1 = arith.constant 0 : i32
    return %c0_i32, %c0_i32_0 : i32, i32
  }
  func.func @transform_28(%arg0: i32) -> (i32, i32) {
    %c0_i32 = arith.constant 0 : i32
    %c0_i32_0 = arith.constant 0 : i32
    %c0_i32_1 = arith.constant 0 : i32
    return %c0_i32, %c0_i32_0 : i32, i32
  }
  func.func @transform_29(%arg0: i32) -> (i32, i32) {
    %c0_i32 = arith.constant 0 : i32
    %c0_i32_0 = arith.constant 0 : i32
    %c0_i32_1 = arith.constant 0 : i32
    return %c0_i32, %c0_i32_0 : i32, i32
  }
  func.func @transform_30(%arg0: i32) -> (i32, i32) {
    %c0_i32 = arith.constant 0 : i32
    %c0_i32_0 = arith.constant 0 : i32
    %c0_i32_1 = arith.constant 0 : i32
    return %c0_i32, %c0_i32_0 : i32, i32
  }
  func.func @transform_31(%arg0: i32) -> (i32, i32) {
    %c0_i32 = arith.constant 0 : i32
    %c0_i32_0 = arith.constant 0 : i32
    %c0_i32_1 = arith.constant 0 : i32
    return %c0_i32, %c0_i32_0 : i32, i32
  }
  func.func @transform_32(%arg0: i32) -> (i32, i32) {
    %c0_i32 = arith.constant 0 : i32
    %c0_i32_0 = arith.constant 0 : i32
    %c0_i32_1 = arith.constant 0 : i32
    return %c0_i32, %c0_i32_0 : i32, i32
  }
  func.func @transform_33(%arg0: i32) -> (i32, i32) {
    %c0_i32 = arith.constant 0 : i32
    %c0_i32_0 = arith.constant 0 : i32
    %c0_i32_1 = arith.constant 0 : i32
    return %c0_i32, %c0_i32_0 : i32, i32
  }
  func.func @transform_34(%arg0: i32) -> (i32, i32) {
    %c0_i32 = arith.constant 0 : i32
    %c0_i32_0 = arith.constant 0 : i32
    %c0_i32_1 = arith.constant 0 : i32
    return %c0_i32, %c0_i32_0 : i32, i32
  }
  func.func @transform_35(%arg0: i32) -> (i32, i32) {
    %c0_i32 = arith.constant 0 : i32
    %c0_i32_0 = arith.constant 0 : i32
    %c0_i32_1 = arith.constant 0 : i32
    return %c0_i32, %c0_i32_0 : i32, i32
  }
  func.func @transform_36(%arg0: i32) -> (i32, i32) {
    %c0_i32 = arith.constant 0 : i32
    %c0_i32_0 = arith.constant 0 : i32
    %c0_i32_1 = arith.constant 0 : i32
    return %c0_i32, %c0_i32_0 : i32, i32
  }
  func.func @transform_37(%arg0: i32) -> (i32, i32) {
    %c0_i32 = arith.constant 0 : i32
    %c0_i32_0 = arith.constant 0 : i32
    %c0_i32_1 = arith.constant 0 : i32
    return %c0_i32, %c0_i32_0 : i32, i32
  }
  func.func @transform_38(%arg0: i32) -> (i32, i32) {
    %c0_i32 = arith.constant 0 : i32
    %c0_i32_0 = arith.constant 0 : i32
    %c0_i32_1 = arith.constant 0 : i32
    return %c0_i32, %c0_i32_0 : i32, i32
  }
  func.func @transform_39(%arg0: i32) -> (i32, i32) {
    %c0_i32 = arith.constant 0 : i32
    %c0_i32_0 = arith.constant 0 : i32
    %c0_i32_1 = arith.constant 0 : i32
    return %c0_i32, %c0_i32_0 : i32, i32
  }
  func.func @transform_40(%arg0: i32) -> (i32, i32) {
    %c0_i32 = arith.constant 0 : i32
    %c0_i32_0 = arith.constant 0 : i32
    %c0_i32_1 = arith.constant 0 : i32
    return %c0_i32, %c0_i32_0 : i32, i32
  }
  func.func @transform_41(%arg0: i32) -> (i32, i32) {
    %c0_i32 = arith.constant 0 : i32
    %c0_i32_0 = arith.constant 0 : i32
    %c0_i32_1 = arith.constant 0 : i32
    return %c0_i32, %c0_i32_0 : i32, i32
  }
  func.func @transform_42(%arg0: i32) -> (i32, i32) {
    %c0_i32 = arith.constant 0 : i32
    %c0_i32_0 = arith.constant 0 : i32
    %c0_i32_1 = arith.constant 0 : i32
    return %c0_i32, %c0_i32_0 : i32, i32
  }
  func.func @transform_43(%arg0: i32) -> (i32, i32) {
    %c0_i32 = arith.constant 0 : i32
    %c0_i32_0 = arith.constant 0 : i32
    %c0_i32_1 = arith.constant 0 : i32
    return %c0_i32, %c0_i32_0 : i32, i32
  }
  func.func @transform_44(%arg0: i32) -> (i32, i32) {
    %c0_i32 = arith.constant 0 : i32
    %c0_i32_0 = arith.constant 0 : i32
    %c0_i32_1 = arith.constant 0 : i32
    return %c0_i32, %c0_i32_0 : i32, i32
  }
  func.func @transform_45(%arg0: i32) -> (i32, i32) {
    %c0_i32 = arith.constant 0 : i32
    %c0_i32_0 = arith.constant 0 : i32
    %c0_i32_1 = arith.constant 0 : i32
    return %c0_i32, %c0_i32_0 : i32, i32
  }
  func.func @transform_46(%arg0: i32) -> (i32, i32, i32) {
    %c0_i32 = arith.constant 0 : i32
    %c0_i32_0 = arith.constant 0 : i32
    %c0_i32_1 = arith.constant 0 : i32
    return %arg0, %c0_i32, %c0_i32_0 : i32, i32, i32
  }
}

</mosaic_0001>

<bundles_post_ra>
// kernel: simsero_forward.1
= control target key start
LH: loop header
LB: loop body
LE: loop exit
PB: predicated region body
PF: predicated region fallthrough
CT: control target
= control target key end

     0   :  { %s4868_s6 = smov 1   ;;  %s4869_s10 = smov 2   ;;  %s6128_s0 = inlined_call_operand.smem [shape: u32[47], index: -1, kind: input, shape index: {}] }
   0x1   :  { %s4950_s5 = sld [smem:[%s6128_s0]]   ;;  %s4870_s14 = smov 3  }
   0x2   :  { %s4955_s9 = sld [smem:[%s6128_s0 + %s4868_s6]]   ;;  %s4871_s18 = smov 4  }
   0x3   :  { %s4960_s13 = sld [smem:[%s6128_s0 + %s4869_s10]]   ;;  %s4872_s22 = smov 5  }
   0x4   :  { %s4965_s17 = sld [smem:[%s6128_s0 + %s4870_s14]]   ;;  %s4873_s26 = smov 6  }
   0x5   :  { %s4970_s21 = sld [smem:[%s6128_s0 + %s4871_s18]]   ;;  %s4874_s30 = smov 7  }
   0x6   :  { %s4975_s25 = sld [smem:[%s6128_s0 + %s4872_s22]]   ;;  %s4875_s4 = smov 8  }
   0x7   :  { %6174 = sst [smem:[#allocation4_spill]] %s4950_s5  ;;  %s4876_s10 = smov 9  }
   0x8   :  { %s4980_s29 = sld [smem:[%s6128_s0 + %s4873_s26]]   ;;  %s4877_s15 = smov 10  }
   0x9   :  { %6175 = sst [smem:[#allocation5_spill]] %s4960_s13  ;;  %s4878_s20 = smov 11  }
   0xa   :  { %6176 = sst [smem:[#allocation6_spill]] %s4965_s17  ;;  %s4879_s26 = smov 12  }
   0xb   :  { %s4985_s3 = sld [smem:[%s6128_s0 + %s4874_s30]]   ;;  %s4880_s1 = smov 13  }
   0xc   :  { %6177 = sst [smem:[#allocation7_spill]] %s4975_s25  ;;  %s4881_s7 = smov 14  }
   0xd   :  { %s4990_s8 = sld [smem:[%s6128_s0 + %s4875_s4]]   ;;  %s4883_s22 = smov 16  }
   0xe   :  { %s4995_s14 = sld [smem:[%s6128_s0 + %s4876_s10]]   ;;  %s4884_s28 = smov 17  }
   0xf   :  { %s5000_s19 = sld [smem:[%s6128_s0 + %s4877_s15]]   ;;  %s4882_s15 = smov 15  }
  0x10   :  { %s5005_s24 = sld [smem:[%s6128_s0 + %s4878_s20]]   ;;  %s4887_s23 = smov 20  }
  0x11   :  { %6178 = sst [smem:[#allocation8_spill]] %s4985_s3  ;;  %s4889_s10 = smov 22  }
  0x12   :  { %s5010_s30 = sld [smem:[%s6128_s0 + %s4879_s26]]   ;;  %s4890_s16 = smov 23  }
  0x13   :  { %s5015_s6 = sld [smem:[%s6128_s0 + %s4880_s1]]   ;;  %s4888_s1 = smov 21  }
  0x14   :  { %s5020_s12 = sld [smem:[%s6128_s0 + %s4881_s7]]   ;;  %s4885_s7 = smov 18  }
  0x15   :  { %s5025_s20 = sld [smem:[%s6128_s0 + %s4882_s15]]   ;;  %s4886_s15 = smov 19  }
  0x16   :  { %s5030_s27 = sld [smem:[%s6128_s0 + %s4883_s22]]   ;;  %s4895_s22 = smov 28  }
  0x17   :  { %s5035_s4 = sld [smem:[%s6128_s0 + %s4884_s28]]  }
  0x18   :  { %s5040_s17 = sld [smem:[%s6128_s0 + %s4885_s7]]  }
  0x19   :  { %s4089_s13 = sld [smem:[%s6128_s0 + %s4886_s15]]  }
  0x1a   :  { %s5048_s25 = sld [smem:[%s6128_s0 + %s4887_s23]]   ;;  %s4891_s23 = smov 24  }
  0x1b   :  { %6179 = sst [smem:[#allocation9_spill]] %s5025_s20 }
  0x1c   :  { %6180 = sst [smem:[#allocation10_spill]] %s5030_s27 }
  0x1d   :  { %6181 = sst [smem:[#allocation11_spill]] %s5035_s4 }
  0x1e   :  { %6182 = sst [smem:[#allocation12_spill]] %s5040_s17 }
  0x1f   :  { %s5053_s4 = sld [smem:[%s6128_s0 + %s4888_s1]]   ;;  %s4892_s1 = smov 25   ;;  %v98_v0 = vstv %s4089_s13 }
  0x20   :  { %s5058_s17 = sld [smem:[%s6128_s0 + %s4889_s10]]   ;;  %s4893_s10 = smov 26   ;;  %99 = vst [vmem:[#allocation2] sm:$0x1] %v98_v0 }
  0x21   :  { %s5063_s27 = sld [smem:[%s6128_s0 + %s4890_s16]]   ;;  %s4894_s16 = smov 27  }
  0x22   :  { %s5068_s20 = sld [smem:[%s6128_s0 + %s4891_s23]]   ;;  %s4896_s13 = smov 29  }
  0x23   :  { %s5078_s15 = sld [smem:[%s6128_s0 + %s4893_s10]]   ;;  %s4897_s10 = smov 30  }
  0x24   :  { %s5083_s23 = sld [smem:[%s6128_s0 + %s4894_s16]]  }
  0x25   :  { %6183 = sst [smem:[#allocation13_spill]] %s5053_s4 }
  0x26   :  { %s5073_s4 = sld [smem:[%s6128_s0 + %s4892_s1]]  }
  0x27   :  { %6184 = sst [smem:[#allocation14_spill]] %s5063_s27  ;;  %s4898_s27 = smov 31  }
  0x28   :  { %6185 = sst [smem:[#allocation15_spill]] %s5068_s20  ;;  %s4899_s20 = smov 32  }
  0x29   :  { %6187 = sst [smem:[#allocation17_spill]] %s5078_s15  ;;  %s4901_s15 = smov 34  }
  0x2a   :  { %6188 = sst [smem:[#allocation18_spill]] %s5083_s23 }
  0x2b   :  { %s5088_s1 = sld [smem:[%s6128_s0 + %s4895_s22]]  }
  0x2c   :  { %6186 = sst [smem:[#allocation16_spill]] %s5073_s4 }
  0x2d   :  { %s5093_s7 = sld [smem:[%s6128_s0 + %s4896_s13]]   ;;  %s4900_s13 = smov 33  }
  0x2e   :  { %s5098_s4 = sld [smem:[%s6128_s0 + %s4897_s10]]  }
  0x2f   :  { %s5103_s23 = sld [smem:[%s6128_s0 + %s4898_s27]]   ;;  %s4902_s27 = smov 35  }
  0x31   :  { %6189 = sst [smem:[#allocation19_spill]] %s5088_s1 }
  0x32   :  { %s5108_s1 = sld [smem:[%s6128_s0 + %s4899_s20]]   ;;  %s4903_s20 = smov 36  }
  0x33   :  { %6190 = sst [smem:[#allocation20_spill]] %s5093_s7 }
  0x34   :  { %6191 = sst [smem:[#allocation21_spill]] %s5098_s4 }
  0x35   :  { %6192 = sst [smem:[#allocation22_spill]] %s5103_s23 }
  0x36   :  { %s5113_s7 = sld [smem:[%s6128_s0 + %s4900_s13]]   ;;  %s4904_s13 = smov 37  }
  0x37   :  { %s5118_s4 = sld [smem:[%s6128_s0 + %s4901_s15]]   ;;  %s4905_s15 = smov 38  }
  0x38   :  { %6193 = sst [smem:[#allocation23_spill]] %s5108_s1 }
  0x39   :  { %s5123_s23 = sld [smem:[%s6128_s0 + %s4902_s27]]   ;;  %s4906_s27 = smov 39  }
  0x3a   :  { %s5128_s1 = sld [smem:[%s6128_s0 + %s4903_s20]]   ;;  %s4907_s20 = smov 40  }
  0x3c   :  { %6194 = sst [smem:[#allocation24_spill]] %s5113_s7 }
  0x3d   :  { %6195 = sst [smem:[#allocation25_spill]] %s5118_s4 }
  0x3e   :  { %s5133_s7 = sld [smem:[%s6128_s0 + %s4904_s13]]   ;;  %s4908_s13 = smov 41  }
  0x3f   :  { %6196 = sst [smem:[#allocation26_spill]] %s5123_s23 }
  0x40   :  { %6197 = sst [smem:[#allocation27_spill]] %s5128_s1 }
  0x41   :  { %s5138_s4 = sld [smem:[%s6128_s0 + %s4905_s15]]   ;;  %s4909_s15 = smov 42  }
  0x42   :  { %s5143_s23 = sld [smem:[%s6128_s0 + %s4906_s27]]   ;;  %s4910_s27 = smov 43  }
  0x43   :  { %s5148_s1 = sld [smem:[%s6128_s0 + %s4907_s20]]   ;;  %s4911_s20 = smov 44  }
  0x44   :  { %6198 = sst [smem:[#allocation28_spill]] %s5133_s7 }
  0x45   :  { %s5153_s7 = sld [smem:[%s6128_s0 + %s4908_s13]]   ;;  %s4912_s13 = smov 46  }
  0x47   :  { %6199 = sst [smem:[#allocation29_spill]] %s5138_s4 }
  0x48   :  { %6200 = sst [smem:[#allocation30_spill]] %s5143_s23 }
  0x49   :  { %6201 = sst [smem:[#allocation31_spill]] %s5148_s1 }
  0x4a   :  { %s5158_s4 = sld [smem:[%s6128_s0 + %s4909_s15]]   ;;  %s4913_s15 = smov 45  }
  0x4b   :  { %6202 = sst [smem:[#allocation32_spill]] %s5153_s7 }
  0x4c   :  { %s5163_s23 = sld [smem:[%s6128_s0 + %s4910_s27]]   ;;  %s5178_s27 = smov 0  }
  0x4d   :  { %s5168_s1 = sld [smem:[%s6128_s0 + %s4911_s20]]  }
  0x4e   :  { %s5173_s7 = sld [smem:[%s6128_s0 + %s4912_s13]]  }
  0x50   :  { %6203 = sst [smem:[#allocation33_spill]] %s5158_s4 }
  0x51   :  { %s4115_s4 = sld [smem:[%s6128_s0 + %s4913_s15]]  }
  0x57   :  { %v100_v1 = vstv %s4115_s4 }
  0x58   :  { %101 = vst [vmem:[#allocation3] sm:$0x1] %v100_v1 }
  0x59 LB: > { %s4117_s16 = sadd.s32 4294967295, %s4866_s27   ;;  %p4121_p0 = scmp.ge.s32.totalorder %s4866_s27, 1  ;;  %s4866_s27 = sphi %s5178_s27, %s107_s27  }
  0x5a   : > { %p1283_p1 = scmp.lt.s32.totalorder %s4866_s27, 3 }
  0x5c   : > { %p1284_p2 = pnand %p4121_p0, %p1283_p1 }
  0x5e   : > { %1287 = sbr.rel (%p1284_p2) target bundleno = 5072 (0x13d0), region = 204 }
  0x63   : > { %s6204_s5 = sld [smem:[#allocation4_spill]]  ;;  %v1423_v2 = vld [vmem:[%s4980_s29] sm:$0x3]  ;;  %vm1435_vm0 = vcmask 1041408   ;;  %p1401_p3 = scmp.lt.s32.totalorder %s4117_s16, 1  ;;  %v6149_v3 = vmov 0.0  }
  0x64   : > { %4243 = vmatprep.subr.bf16.mxu0 %v6149_v3  ;;  %v1437_v4 = vsel %vm1435_vm0, %v1423_v2, 0  ;;  %vm4915_vm1 = vmmov 0   ;;  %s6205_s3 = sld [smem:[#allocation8_spill]]  ;;  %4249 = vmatprep.subr.bf16.mxu1 %v6149_v3  ;;  %vm1431_vm2 = vcmask 31744   ;;  %s4916_s18 = smov 124   ;;  %vm1533_vm3 = vcmask 130048  }
  0x65   : > { %4245 = vmatprep.mubr.msk.bf16.mxu0 %vm4915_vm1, %v6149_v3  ;;  %4244 = vmatpush3.bf16.msra.mxu0 %v1437_v4  ;;  %s6266_s16 = smov (!%p1401_p3, %s4117_s16), 1  ;;  %s4917_s20 = smov 120   ;;  %v1605_v44 = vld [vmem:[%s4990_s8] sm:$0x3]  ;;  %v6151_v52 = vmov 0   ;;  %v6148_v54 = vmov 1  }
  0x66   : > { %4251 = vmatprep.mubr.msk.bf16.mxu1 %vm4915_vm1, %v6149_v3  ;;  %4255 = vmatprep.subr.bf16.mxu0 %v6149_v3  ;;  %s4194_s0 = sshll.u32 %s6266_s16, 4  ;;  %v1617_v45 = vsel %vm1435_vm0, %v1605_v44, 0  ;;  %v1663_v51 = vld [vmem:[%s5005_s24] sm:$0xff]  ;;  %v1664_v55 = vld [vmem:[%s5005_s24 + $0x8] sm:$0xff]  ;;  %v4920_v57 = vmov 2   ;;  %v4921_v58 = vmov 4  }
  0x67   : > { %4448 = vset.pattern.permute.xlu1 %v6151_v52  ;;  %v1763_v53 = vld [vmem:[%s4970_s21] sm:$0xff]  ;;  %4449 = vset.pattern.permute.xlu0 %v6148_v54  ;;  %v1764_v56 = vld [vmem:[%s4970_s21 + $0x8] sm:$0xff]  ;;  %v4922_v59 = vmov 5   ;;  %v4923_v60 = vmov 6   ;;  %s6161_s22 = smov 12   ;;  %vm1943_vm10 = vcmask 1045504   ;;  %s1410_s13 = scalar_lea.vmem %s4955_s9, %s4194_s0 }
  0x68   : > { %v4132_v62 = vld [vmem:[%s4995_s14] ss:$0 sm:$0xff]  ;;  %s6167_s26 = smov 8   ;;  %vm2173_vm11 = vcmask 80896   ;;  %s6162_s28 = smov 4   ;;  %vm2180_vm12 = vcmask 1044480  }
  0x69   : > { %s1405_s4 = scalar_lea.vmem %s6204_s5, %s4194_s0  ;;  %s6165_s2 = smov 16   ;;  %vm1902_vm13 = vcmask 64512   ;;  %vm1905_vm14 = vcmask 97280   ;;  %vm1910_vm15 = vcmask 162816  }
  0x6a   : > { %v5201_v5 = vld [vmem:[%s1405_s4] sm:$0xff]  ;;  %v5203_v6 = vld [vmem:[%s1405_s4 + $0x8] sm:$0xff]  ;;  %s4928_s15 = smov 20   ;;  %s6163_s10 = smov 24  }
  0x6b   : > { %v1422_v7 = vpack.c.bf16 %v5203_v6, %v5201_v5  ;;  %v4128_v9 = vld [vmem:[%s6205_s3] ss:$0 sm:$0xff]  ;;  %s6206_s11 = sld [smem:[#allocation13_spill]]  ;;  %s6249_s5 = smov 56  }
  0x6c   : > { %s6207_s0 = sld [smem:[#allocation9_spill]] }
  0x6d   : > { %4246 = vmatmul.mubr.msk.bf16.vlgmr.msra.gmra.mxu0 %vm1431_vm2, %v1422_v7  ;;  %s6208_s4 = sld [smem:[#allocation10_spill]] }
  0x6e   : > { %4257 = vmatprep.mubr.msk.bf16.mxu0 %vm4915_vm1, %v6149_v3  ;;  %s6230_s3 = sld [smem:[#allocation25_spill]] }
 0x12d   : > { %v1473_v8 = vpop.f32.mrf.mxu0 }
 0x12e   : > { %v1474_v12 = vadd.f32 %v4128_v9, %v1473_v8  ;;  %v4733_v8 = vld [vmem:[%s5000_s19] sm:$0xff]  }
 0x12f   : > { %v4247_v10 = vpop.f32.mrf.mxu0 }
 0x131   : > { %v1476_v11 = vpop.f32.mrf.mxu0 }
 0x132   : > { %v1477_v13 = vadd.f32 %v4128_v9, %v1476_v11 }
 0x133   : > { %v4248_v14 = vpop.f32.mrf.mxu0 }
 0x134   : > { %v1480_v15 = vpack.c.bf16 %v1477_v13, %v1474_v12 }
 0x136   : > { %1482 = vrot.lane.b32.xlu0 %v1480_v15, %s4916_s18  ;;  %s6209_s18 = sld [smem:[#allocation11_spill]] }
 0x1a8   : > { %v1483_v16 = vpop.permute.xlu0 %1482 }
 0x1a9   : > { %v1488_v17 = vsel %vm1431_vm2, %v1483_v16, 0 }
 0x1aa   : > { %4250 = vmatpush3.bf16.xpose.msra.mxu1 %v1488_v17 }
 0x1ab   : > { %4261 = vmatprep.subr.bf16.mxu1 %v6149_v3 }
 0x1b1   : > { %4252 = vmatmul.mubr.msk.bf16.vlgmr.msra.gmra.mxu1 %vm1431_vm2, %v1480_v15 }
 0x1b2   : > { %4263 = vmatprep.mubr.msk.bf16.mxu1 %vm4915_vm1, %v6149_v3  ;;  %4262 = vmatpush3.bf16.msra.mxu1 %v1617_v45 }
 0x1b3   : > { %4273 = vmatprep.subr.bf16.mxu1 %v6149_v3 }
 0x271   : > { %v1524_v18 = vpop.f32.mrf.mxu1 }
 0x272   : > { %v1531_v19 = vmul.f32 0.5, %v1524_v18 }
 0x273   : > { %v4253_v20 = vpop.f32.mrf.mxu1 }
 0x274   : > { %v1534_v21 = vsel %vm1533_vm3, %v1531_v19, -inf }
 0x275   : > { %1535 = vmax.xlane.f32.xlu0 %v1534_v21  ;;  %v1527_v22 = vpop.f32.mrf.mxu1 }
 0x276   : > { %v1532_v23 = vmul.f32 0.5, %v1527_v22 }
 0x277   : > { %v4254_v24 = vpop.f32.mrf.mxu1 }
 0x278   : > { %v1537_v25 = vsel %vm1533_vm3, %v1532_v23, -inf }
 0x279   : > { %1538 = vmax.xlane.f32.xlu1 %v1537_v25 }
 0x28b   : > { %1783 = vperm.xlu0 %4449, %v1763_v53  }
 0x2fe   : > { %v1536_v26 = vpop.xlane.xlu0 %1535 }
 0x2ff   : > { %v1540_v27 = vsub.f32 %v1531_v19, %v1536_v26 }
 0x301   : > { %v1542_v28 = vmul.f32 1.442695, %v1540_v27 }
 0x302   : > { %v1539_v29 = vpop.xlane.xlu1 %1538 }
 0x303   : > { %4758 = vpow2.f32 %v1542_v28  ;;  %v1541_v30 = vsub.f32 %v1532_v23, %v1539_v29 }
 0x305   : > { %v1544_v31 = vmul.f32 1.442695, %v1541_v30 }
 0x307   : > { %4760 = vpow2.f32 %v1544_v31 }
 0x310   : > { %v4759_v32 = vpop.eup %4758 }
 0x311   : > { %v1546_v33 = vsel %vm1533_vm3, %v4759_v32, 0.0 }
 0x312   : > { %1547 = vadd.xlane.f32.xlu1 %v1546_v33 }
 0x314   : > { %v4761_v34 = vpop.eup %4760 }
 0x315   : > { %v1549_v35 = vsel %vm1533_vm3, %v4761_v34, 0.0 }
 0x316   : > { %1550 = vadd.xlane.f32.xlu1 %v1549_v35  ;;  %v1758_v35 = vlaneseq }
 0x327   : > { %1557 = vrot.lane.b32.xlu1 %v1480_v15, %s4917_s20  ;;  %s6142_s20 = smov 48  }
 0x32b   : > { %1667 = vperm.xlu1 %4448, %v1663_v51  }
 0x32f   : > { %1672 = vperm.xlu1 %4448, %v1664_v55  }
 0x333   : > { %4450 = vset.pattern.permute.xlu1 %v6148_v54 }
 0x334   : > { %1787 = vperm.xlu1 %4450, %v1764_v56  }
 0x338   : > { %4451 = vset.pattern.permute.xlu1 %v4920_v57 }
 0x339   : > { %1798 = vperm.xlu1 %4451, %v1763_v53  }
 0x33d   : > { %1802 = vperm.xlu1 %4451, %v1764_v56  }
 0x341   : > { %4452 = vset.pattern.permute.xlu1 %v4921_v58 }
 0x342   : > { %1813 = vperm.xlu1 %4452, %v1763_v53  }
 0x346   : > { %1817 = vperm.xlu1 %4452, %v1764_v56  }
 0x34a   : > { %4453 = vset.pattern.permute.xlu1 %v4922_v59 }
 0x34b   : > { %1828 = vperm.xlu1 %4453, %v1763_v53  }
 0x34f   : > { %1832 = vperm.xlu1 %4453, %v1764_v56  }
 0x353   : > { %4454 = vset.pattern.permute.xlu1 %v4923_v60 }
 0x354   : > { %1843 = vperm.xlu1 %4454, %v1763_v53  }
 0x358   : > { %1847 = vperm.xlu1 %4454, %v1764_v56  }
 0x35c   : > { %4455 = vset.pattern.permute.xlu1 %v6151_v52 }
 0x35d   : > { %1767 = vperm.xlu1 %4455, %v1763_v53  }
 0x361   : > { %1772 = vperm.xlu1 %4455, %v1764_v56  }
 0x365   : > { %4486 = vset.pattern.permute.xlu1 %v6148_v54 }
 0x39b   : > { %v1548_v36 = vpop.xlane.xlu1 %1547 }
 0x39c   : > { %4762 = vrcp.f32 %v1548_v36 }
 0x39f   : > { %v1551_v37 = vpop.xlane.xlu1 %1550 }
 0x3a0   : > { %4764 = vrcp.f32 %v1551_v37  ;;  %v4137_v37 = vld [vmem:[%s5015_s6] ss:$0 sm:$0xff] }
 0x3a3   : > { %v1558_v38 = vpop.permute.xlu1 %1557 }
 0x3a4   : > { %4256 = vmatpush3.bf16.msra.mxu0 %v1558_v38 }
 0x3a5   : > { %4267 = vmatprep.subr.bf16.mxu0 %v6149_v3 }
 0x3a7   : > { %v1668_v9 = vpop.permute.xlu1 %1667 }
 0x3a9   : > { %v4763_v39 = vpop.eup %4762 }
 0x3aa   : > { %v1553_v41 = vmul.f32 %v4763_v39, %v4759_v32  ;;  %v4136_v32 = vld [vmem:[%s5010_s30] ss:$0 sm:$0xff] }
 0x3ab   : > { %v1673_v14 = vpop.permute.xlu1 %1672 }
 0x3ad   : > { %v4765_v40 = vpop.eup %4764 }
 0x3ae   : > { %v1555_v42 = vmul.f32 %v4765_v40, %v4761_v34 }
 0x3af   : > { %v5245_v21 = vpop.permute.xlu1 %1787 }
 0x3b0   : > { %v1556_v43 = vpack.c.bf16 %v1555_v42, %v1553_v41  ;;  %v5261_v42 = vshrl.u32 %v1758_v35, 7  ;;  %v4735_v35 = vld [vmem:[%s5020_s12] sm:$0xff]  }
 0x3b2   : > { %4258 = vmatmul.mubr.msk.bf16.vlgmr.msra.gmra.mxu0 %vm1533_vm3, %v1556_v43  ;;  %vm1779_vm4 = vcmp.lt.s32.totalorder %v5261_v42, 2  ;;  %vm1794_vm5 = vcmp.lt.s32.totalorder %v5261_v42, 1  ;;  %vm1809_vm6 = vcmp.lt.s32.totalorder %v5261_v42, 7  ;;  %vm1824_vm7 = vcmp.lt.s32.totalorder %v5261_v42, 6 }
 0x3b3   : > { %4269 = vmatprep.mubr.msk.bf16.mxu0 %vm4915_vm1, %v6149_v3  ;;  %vm1839_vm8 = vcmp.lt.s32.totalorder %v5261_v42, 5  ;;  %vm1760_vm9 = vcmp.lt.s32.totalorder %v5261_v42, 3 }
 0x3b4   : > { %v5247_v22 = vpop.permute.xlu1 %1798 }
 0x3b8   : > { %v5249_v26 = vpop.permute.xlu1 %1802 }
 0x3bd   : > { %v5251_v28 = vpop.permute.xlu1 %1813 }
 0x3c1   : > { %v5253_v30 = vpop.permute.xlu1 %1817 }
 0x3c6   : > { %v5258_v39 = vpop.permute.xlu1 %1828 }
 0x3ca   : > { %v5266_v45 = vpop.permute.xlu1 %1832 }
 0x472   : > { %v1597_v46 = vpop.f32.mrf.mxu0 }
 0x474   : > { %v4259_v47 = vpop.f32.mrf.mxu0 }
 0x476   : > { %v1600_v48 = vpop.f32.mrf.mxu0 }
 0x477   : > { %v1604_v49 = vpack.c.bf16 %v1600_v48, %v1597_v46 }
 0x478   : > { %v4260_v50 = vpop.f32.mrf.mxu0 }
 0x479   : > { %4264 = vmatmul.mubr.msk.bf16.vlgmr.msra.gmra.mxu1 %vm1431_vm2, %v1604_v49 }
 0x47a   : > { %4277 = vmatprep.mubr.msk.bf16.mxu1 %vm4915_vm1, %v6149_v3 }
 0x539   : > { %v1653_v61 = vpop.f32.mrf.mxu1 }
 0x53a   : > { %v1654_v1 = vadd.f32 %v4132_v62, %v1653_v61 }
 0x53b   : > { %v4265_v63 = vpop.f32.mrf.mxu1 }
 0x53d   : > { %v1656_v0 = vpop.f32.mrf.mxu1 }
 0x53e   : > { %v1657_v2 = vadd.f32 %v4132_v62, %v1656_v0 }
 0x53f   : > { %v4266_v4 = vpop.f32.mrf.mxu1 }
 0x540   : > { %v1662_v7 = vpack.c.bf16 %v1657_v2, %v1654_v1  ;;  %v5282_v4 = vpop.permute.xlu0 %1783 }
 0x542   : > { %4268 = vmatpush3.bf16.msra.mxu0 %v1662_v7 }
 0x545   : > { %4270 = vmatmul.mubr.msk.bf16.vlgmr.msra.gmra.mxu0 %vm1533_vm3, %v4733_v8 }
 0x605   : > { %v1717_v10 = vpop.f32.mrf.mxu0 }
 0x606   : > { %v1718_v11 = vadd.f32 %v1717_v10, %v1668_v9  ;;  %v5289_v10 = vpop.permute.xlu1 %1843 }
 0x607   : > { %v4271_v12 = vpop.f32.mrf.mxu0 }
 0x608   : > { %v1724_v13 = vsub.f32 0.0, %v1718_v11 }
 0x609   : > { %v1720_v15 = vpop.f32.mrf.mxu0 }
 0x60a   : > { %v1726_v16 = vmul.f32 1.442695, %v1724_v13  ;;  %v1721_v17 = vadd.f32 %v1720_v15, %v1673_v14 }
 0x60b   : > { %v4272_v18 = vpop.f32.mrf.mxu0 }
 0x60c   : > { %4766 = vpow2.f32 %v1726_v16  ;;  %v1725_v19 = vsub.f32 0.0, %v1721_v17  ;;  %v4734_v16 = vld [vmem:[%s5020_s12 + $0x8] sm:$0x3f]  }
 0x60e   : > { %v1728_v20 = vmul.f32 1.442695, %v1725_v19 }
 0x610   : > { %4768 = vpow2.f32 %v1728_v20 }
 0x619   : > { %v4767_v23 = vpop.eup %4766 }
 0x61a   : > { %v1730_v24 = vadd.f32 1.0, %v4767_v23 }
 0x61c   : > { %4770 = vrcp.f32 %v1730_v24 }
 0x61d   : > { %v4769_v25 = vpop.eup %4768 }
 0x61e   : > { %v1731_v27 = vadd.f32 1.0, %v4769_v25 }
 0x620   : > { %4772 = vrcp.f32 %v1731_v27 }
 0x629   : > { %v4771_v29 = vpop.eup %4770 }
 0x62a   : > { %v1734_v31 = vmul.f32 %v4771_v29, %v1718_v11 }
 0x62c   : > { %v1736_v33 = vadd.f32 %v1734_v31, %v5201_v5  ;;  %v1945_v31 = vsel %vm1943_vm10, %v4734_v16, 0  ;;  %vm1913_vm10 = vcmask 195584  }
 0x62d   : > { %v4773_v34 = vpop.eup %4772  ;;  %4274 = vmatpush3.bf16.msra.mxu1 %v1945_v31 }
 0x62e   : > { %v1745_v36 = vmul.f32 %v4136_v32, %v1736_v33  ;;  %v1735_v38 = vmul.f32 %v4773_v34, %v1721_v17  ;;  %v5315_v34 = vpop.permute.xlu1 %1847  ;;  %4275 = vmatprep.subr.bf16.mxu1 %v6149_v3 }
 0x630   : > { %v1737_v40 = vadd.f32 %v1735_v38, %v5203_v6  ;;  %v1754_v41 = vadd.f32 %v4137_v37, %v1745_v36  ;;  %v2156_v36 = vld [vmem:[%s1410_s13] sm:$0xff] }
 0x631   : > { %4276 = vmatpush3.bf16.msra.mxu1 %v4735_v35 }
 0x632   : > { %v1746_v43 = vmul.f32 %v4136_v32, %v1737_v40  ;;  %v1777_v5 = vrot.slane %v1754_v41, 6  ;;  %v1792_v47 = vrot.slane %v1754_v41, 7  ;;  %v1807_v50 = vrot.slane %v1754_v41, 1  ;;  %v4736_v32 = vld [vmem:[%s5048_s25] sm:$0xff]   ;;  %4287 = vmatprep.subr.bf16.mxu1 %v6149_v3 }
 0x633   : > { %v1822_v61 = vrot.slane %v1754_v41, 2  ;;  %v1756_v62 = vrot.slane %v1754_v41, 5  ;;  %v1837_v11 = vrot.slane %v1754_v41, 3  ;;  %4283 = vmatprep.mubr.msk.bf16.mxu0 %vm2173_vm11, %v4736_v32 }
 0x634   : > { %v1755_v44 = vadd.f32 %v4137_v37, %v1746_v43  ;;  %v2157_v37 = vld [vmem:[%s1410_s13 + $0x8] sm:$0x3]  ;;  %s6146_s13 = smov 32  }
 0x636   : > { %v1778_v46 = vrot.slane %v1755_v44, 6  ;;  %v1793_v48 = vrot.slane %v1755_v44, 7  ;;  %v1808_v49 = vrot.slane %v1755_v44, 1  ;;  %v1823_v6 = vrot.slane %v1755_v44, 2 }
 0x637   : > { %v4456_v51 = vpack.i.bf16 %v1755_v44, %v1754_v41  ;;  %v1757_v58 = vrot.slane %v1755_v44, 5  ;;  %v1838_v2 = vrot.slane %v1755_v44, 3  ;;  %v2161_v41 = vpack.c.bf16 %v2157_v37, %v2156_v36 }
 0x638   : > { %v1780_v53 = vsel %vm1779_vm4, %v1777_v5, %v1778_v46  ;;  %v1796_v55 = vsel %vm1794_vm5, %v1793_v48, %v1792_v47  ;;  %v1795_v56 = vsel %vm1794_vm5, %v1792_v47, %v1793_v48  ;;  %v1810_v1 = vsel %vm1809_vm6, %v1807_v50, %v1808_v49  ;;  %v5331_v47 = vpop.permute.xlu1 %1767 }
 0x639   : > { %4457 = vrot.lane.b32.xlu0 %v4456_v51, %s6161_s22  ;;  %v1805_v63 = vmul.f32 %v5247_v22, %v1796_v55  ;;  %v1806_v0 = vmul.f32 %v5249_v26, %v1795_v56  ;;  %v1791_v7 = vmul.f32 %v5245_v21, %v1780_v53  ;;  %v1811_v8 = vsel %vm1809_vm6, %v1808_v49, %v1807_v50 }
 0x63a   : > { %v1825_v9 = vsel %vm1824_vm7, %v1822_v61, %v1823_v6  ;;  %v1826_v12 = vsel %vm1824_vm7, %v1823_v6, %v1822_v61  ;;  %v1762_v13 = vsel %vm1760_vm9, %v1757_v58, %v1756_v62  ;;  %v1781_v14 = vsel %vm1779_vm4, %v1778_v46, %v1777_v5  ;;  %4363 = vmatprep.subr.msk.bf16.mxu0 %vm2180_vm12, %v2161_v41  ;;  %v4737_v5 = vld [vmem:[%s5048_s25 + $0x8] ss:$0 sps:$4 sm:$0x33]  }
 0x63b   : > { %v1761_v15 = vsel %vm1760_vm9, %v1756_v62, %v1757_v58  ;;  %v1820_v17 = vmul.f32 %v5251_v28, %v1810_v1  ;;  %v1790_v18 = vmul.f32 %v5282_v4, %v1781_v14  ;;  %v1821_v19 = vmul.f32 %v5253_v30, %v1811_v8 }
 0x63c   : > { %v1835_v20 = vmul.f32 %v5258_v39, %v1825_v9  ;;  %v1840_v23 = vsel %vm1839_vm8, %v1837_v11, %v1838_v2  ;;  %v4466_v24 = vpack.i.bf16 %v1806_v0, %v1805_v63  ;;  %v1836_v25 = vmul.f32 %v5266_v45, %v1826_v12  ;;  %v5333_v49 = vpop.permute.xlu1 %1772 }
 0x63d   : > { %v1841_v27 = vsel %vm1839_vm8, %v1838_v2, %v1837_v11  ;;  %v4461_v29 = vpack.i.bf16 %v1791_v7, %v1790_v18  ;;  %v1850_v33 = vmul.f32 %v5289_v10, %v1840_v23  ;;  %v4471_v40 = vpack.i.bf16 %v1821_v19, %v1820_v17 }
 0x63e   : > { %4467 = vrot.lane.b32.xlu1 %v4466_v24, %s6167_s26  ;;  %v1851_v38 = vmul.f32 %v5315_v34, %v1841_v27  ;;  %v4476_v43 = vpack.i.bf16 %v1836_v25, %v1835_v20  ;;  %v2182_v44 = vsel %vm2180_vm12, %v2161_v41, 0  ;;  %v1775_v55 = vmul.f32 %v5331_v47, %v1762_v13  ;;  %v2162_v41 = vld [vmem:[%s6206_s11] sm:$0xff] }
 0x63f   : > { %4462 = vrot.lane.b32.xlu0 %v4461_v29, %s6162_s28  ;;  %4282 = vmatpush3.bf16.msra.mxu0 %v2182_v44  ;;  %v1776_v56 = vmul.f32 %v5333_v49, %v1761_v15  ;;  %v2163_v44 = vld [vmem:[%s6206_s11 + $0x8] sm:$0xff]  ;;  %vm2116_vm12 = vcmask 785408  }
 0x640   : > { %v4481_v46 = vpack.i.bf16 %v1851_v38, %v1850_v33  ;;  %4295 = vmatprep.subr.bf16.mxu0 %v6149_v3  ;;  %v2164_v33 = vld [vmem:[%s6206_s11 + $0x10] sm:$0xf] }
 0x642   : > { %4472 = vrot.lane.b32.xlu1 %v4471_v40, %s6165_s2  ;;  %4284 = vmatmul.mubr.msk.bf16.vlgmr.msra.gmra.mxu0 %vm2173_vm11, %v4737_v5  ;;  %vm1939_vm11 = vcmask 228352  }
 0x643   : > { %4477 = vrot.lane.b32.xlu0 %v4476_v43, %s4928_s15  ;;  %4297 = vmatprep.mubr.msk.bf16.mxu0 %vm4915_vm1, %v6149_v3 }
 0x646   : > { %4482 = vrot.lane.b32.xlu1 %v4481_v46, %s6163_s10 }
 0x6ab   : > { %v4458_v48 = vpop.permute.xlu0 %4457 }
 0x6ac   : > { %v4460_v62 = vunpack.i.h.bf16 %v4458_v48  ;;  %v4459_v63 = vunpack.i.l.bf16 %v4458_v48 }
 0x6b0   : > { %v4468_v50 = vpop.permute.xlu1 %4467 }
 0x6b1   : > { %v4470_v6 = vunpack.i.h.bf16 %v4468_v50  ;;  %v4469_v51 = vunpack.i.l.bf16 %v4468_v50  ;;  %v4463_v53 = vpop.permute.xlu0 %4462 }
 0x6b2   : > { %v4465_v58 = vunpack.i.h.bf16 %v4463_v53  ;;  %v4464_v61 = vunpack.i.l.bf16 %v4463_v53 }
 0x6b4   : > { %v1900_v0 = vsel %vm1431_vm2, %v1775_v55, %v4464_v61  ;;  %v1901_v1 = vsel %vm1431_vm2, %v1776_v56, %v4465_v58  ;;  %v4473_v2 = vpop.permute.xlu1 %4472 }
 0x6b5   : > { %v1903_v7 = vsel %vm1902_vm13, %v1900_v0, %v4469_v51  ;;  %v1904_v8 = vsel %vm1902_vm13, %v1901_v1, %v4470_v6  ;;  %v4475_v9 = vunpack.i.h.bf16 %v4473_v2  ;;  %v4474_v11 = vunpack.i.l.bf16 %v4473_v2  ;;  %v4478_v12 = vpop.permute.xlu0 %4477 }
 0x6b6   : > { %v1906_v13 = vsel %vm1905_vm14, %v1903_v7, %v4459_v63  ;;  %v1907_v14 = vsel %vm1905_vm14, %v1904_v8, %v4460_v62  ;;  %v4480_v15 = vunpack.i.h.bf16 %v4478_v12  ;;  %v4479_v16 = vunpack.i.l.bf16 %v4478_v12 }
 0x6b7   : > { %v1908_v17 = vsel %vm1533_vm3, %v1906_v13, %v4474_v11  ;;  %v1909_v18 = vsel %vm1533_vm3, %v1907_v14, %v4475_v9  ;;  %v4738_v13 = vld [vmem:[%s5058_s17] sm:$0xff]  }
 0x6b8   : > { %v4483_v19 = vpop.permute.xlu1 %4482  ;;  %v1911_v24 = vsel %vm1910_vm15, %v1908_v17, %v4479_v16  ;;  %v1912_v25 = vsel %vm1910_vm15, %v1909_v18, %v4480_v15  ;;  %v4138_v14 = vld [vmem:[%s6207_s0] ss:$0 sm:$0xff]  ;;  %s6144_s0 = smov 64  }
 0x6b9   : > { %v4485_v20 = vunpack.i.h.bf16 %v4483_v19  ;;  %v4484_v23 = vunpack.i.l.bf16 %v4483_v19 }
 0x6bb   : > { %v1914_v27 = vsel %vm1913_vm10, %v1911_v24, %v4484_v23  ;;  %v1915_v29 = vsel %vm1913_vm10, %v1912_v25, %v4485_v20 }
 0x6bc   : > { %v1916_v31 = vpack.c.bf16 %v1915_v29, %v1914_v27 }
 0x6be   : > { %4278 = vmatmul.mubr.msk.bf16.vlgmr.msra.gmra.mxu1 %vm1939_vm11, %v1916_v31 }
 0x6bf   : > { %4291 = vmatprep.mubr.msk.bf16.mxu1 %vm4915_vm1, %v6149_v3 }
 0x702   : > { %v4285_v32 = vpop.f32.mrf.mxu0 }
 0x703   : > { %v2227_v35 = vadd.f32 %v4285_v32, %v2164_v33 }
 0x704   : > { %v2218_v36 = vpop.f32.mrf.mxu0 }
 0x705   : > { %v2234_v37 = vsub.f32 0.0, %v2227_v35  ;;  %v2219_v5 = vadd.f32 %v2218_v36, %v2162_v41  ;;  %v4142_v36 = vld [vmem:[%s6208_s4] ss:$0 sm:$0xff]  ;;  %s6137_s4 = smov 80  }
 0x706   : > { %v4286_v38 = vpop.f32.mrf.mxu0 }
 0x707   : > { %v2239_v40 = vmul.f32 1.442695, %v2234_v37  ;;  %v2232_v48 = vsub.f32 0.0, %v2219_v5  ;;  %v4143_v38 = vld [vmem:[%s6209_s18] ss:$0 sm:$0xff]  ;;  %s6139_s18 = smov 96  }
 0x708   : > { %v2221_v43 = vpop.f32.mrf.mxu0 }
 0x709   : > { %v2222_v46 = vadd.f32 %v2221_v43, %v2163_v44  ;;  %4774 = vpow2.f32 %v2239_v40  ;;  %v2235_v6 = vmul.f32 1.442695, %v2232_v48 }
 0x70b   : > { %v2233_v50 = vsub.f32 0.0, %v2222_v46  ;;  %4776 = vpow2.f32 %v2235_v6 }
 0x70d   : > { %v2237_v51 = vmul.f32 1.442695, %v2233_v50 }
 0x70f   : > { %4778 = vpow2.f32 %v2237_v51 }
 0x716   : > { %v4775_v53 = vpop.eup %4774 }
 0x717   : > { %v2243_v55 = vadd.f32 1.0, %v4775_v53 }
 0x718   : > { %v4777_v56 = vpop.eup %4776 }
 0x719   : > { %4780 = vrcp.f32 %v2243_v55  ;;  %v2241_v61 = vadd.f32 1.0, %v4777_v56 }
 0x71b   : > { %4782 = vrcp.f32 %v2241_v61 }
 0x71c   : > { %v4779_v58 = vpop.eup %4778 }
 0x71d   : > { %v2242_v62 = vadd.f32 1.0, %v4779_v58 }
 0x71f   : > { %4784 = vrcp.f32 %v2242_v62 }
 0x726   : > { %v4781_v63 = vpop.eup %4780 }
 0x727   : > { %v2249_v0 = vmul.f32 %v4781_v63, %v2227_v35 }
 0x728   : > { %v4783_v2 = vpop.eup %4782 }
 0x729   : > { %v2253_v1 = vpack.c.bf16 %v2249_v0, %v2249_v0  ;;  %v2247_v9 = vmul.f32 %v4783_v2, %v2219_v5 }
 0x72b   : > { %v2265_v7 = vsel %vm1435_vm0, %v2253_v1, 0 }
 0x72c   : > { %v4785_v8 = vpop.eup %4784  ;;  %4288 = vmatpush3.bf16.msra.mxu1 %v2265_v7 }
 0x72d   : > { %v2248_v11 = vmul.f32 %v4785_v8, %v2222_v46  ;;  %4289 = vmatprep.subr.bf16.mxu1 %v6149_v3 }
 0x72f   : > { %v2252_v12 = vpack.c.bf16 %v2248_v11, %v2247_v9 }
 0x731   : > { %4290 = vmatpush3.bf16.msra.mxu1 %v2252_v12 }
 0x732   : > { %4301 = vmatprep.subr.bf16.mxu1 %v6149_v3 }
 0x734   : > { %4292 = vmatmul.mubr.msk.bf16.vlgmr.msra.gmra.mxu1 %vm1910_vm15, %v4738_v13 }
 0x735   : > { %4303 = vmatprep.mubr.msk.bf16.mxu1 %vm4915_vm1, %v6149_v3 }
 0x77e   : > { %v1981_v15 = vpop.f32.mrf.mxu1 }
 0x77f   : > { %v1982_v16 = vadd.f32 %v4138_v14, %v1981_v15 }
 0x780   : > { %v4279_v17 = vpop.f32.mrf.mxu1 }
 0x781   : > { %v1988_v18 = vsub.f32 0.0, %v1982_v16 }
 0x782   : > { %v1984_v19 = vpop.f32.mrf.mxu1 }
 0x783   : > { %v1990_v20 = vmul.f32 1.442695, %v1988_v18  ;;  %v1985_v23 = vadd.f32 %v4138_v14, %v1984_v19 }
 0x784   : > { %v4280_v24 = vpop.f32.mrf.mxu1 }
 0x785   : > { %4786 = vpow2.f32 %v1990_v20  ;;  %v1989_v25 = vsub.f32 0.0, %v1985_v23 }
 0x787   : > { %v1992_v27 = vmul.f32 1.442695, %v1989_v25 }
 0x789   : > { %4788 = vpow2.f32 %v1992_v27 }
 0x792   : > { %v4787_v29 = vpop.eup %4786 }
 0x793   : > { %v1994_v31 = vadd.f32 1.0, %v4787_v29 }
 0x795   : > { %4790 = vrcp.f32 %v1994_v31 }
 0x796   : > { %v4789_v32 = vpop.eup %4788 }
 0x797   : > { %v1995_v33 = vadd.f32 1.0, %v4789_v32 }
 0x799   : > { %4792 = vrcp.f32 %v1995_v33 }
 0x7a2   : > { %v4791_v35 = vpop.eup %4790 }
 0x7a3   : > { %v1998_v37 = vmul.f32 %v4791_v35, %v1982_v16 }
 0x7a5   : > { %v2007_v40 = vmul.f32 %v4142_v36, %v1998_v37 }
 0x7a6   : > { %v4793_v41 = vpop.eup %4792 }
 0x7a7   : > { %v2016_v43 = vadd.f32 %v4143_v38, %v2007_v40  ;;  %v1999_v44 = vmul.f32 %v4793_v41, %v1985_v23 }
 0x7a9   : > { %v2008_v5 = vmul.f32 %v4142_v36, %v1999_v44  ;;  %2072 = vrot.lane.b32.xlu0 %v2016_v43, %s6142_s20  ;;  %v2024_v48 = vrot.slane %v2016_v43, 6  ;;  %v2030_v55 = vrot.slane %v2016_v43, 7  ;;  %v2018_v1 = vrot.slane %v2016_v43, 5 }
 0x7aa   : > { %v2036_v2 = vrot.slane %v2016_v43, 1  ;;  %v2042_v13 = vrot.slane %v2016_v43, 2  ;;  %v2048_v17 = vrot.slane %v2016_v43, 3 }
 0x7ab   : > { %v2017_v46 = vadd.f32 %v4143_v38, %v2008_v5 }
 0x7ad   : > { %2074 = vrot.lane.b32.xlu1 %v2017_v46, %s6142_s20  ;;  %v2025_v50 = vrot.slane %v2017_v46, 6  ;;  %v2031_v6 = vrot.slane %v2017_v46, 7  ;;  %v2019_v56 = vrot.slane %v2017_v46, 5  ;;  %v2037_v0 = vrot.slane %v2017_v46, 1  ;;  %s6213_s20 = sld [smem:[#allocation5_spill]] }
 0x7ae   : > { %v2043_v12 = vrot.slane %v2017_v46, 2  ;;  %v2049_v16 = vrot.slane %v2017_v46, 3 }
 0x7af   : > { %v2027_v51 = vsel %vm1779_vm4, %v2025_v50, %v2024_v48  ;;  %v2026_v53 = vsel %vm1779_vm4, %v2024_v48, %v2025_v50  ;;  %v2033_v62 = vsel %vm1794_vm5, %v2031_v6, %v2030_v55  ;;  %v2032_v63 = vsel %vm1794_vm5, %v2030_v55, %v2031_v6 }
 0x7b0   : > { %v2028_v58 = vmul.f32 %v2027_v51, %v5282_v4  ;;  %v2029_v61 = vmul.f32 %v2026_v53, %v5245_v21  ;;  %v2021_v7 = vsel %vm1760_vm9, %v2019_v56, %v2018_v1  ;;  %v2034_v4 = vmul.f32 %v2033_v62, %v5247_v22 }
 0x7b1   : > { %v2035_v21 = vmul.f32 %v2032_v63, %v5249_v26  ;;  %v2020_v8 = vsel %vm1760_vm9, %v2018_v1, %v2019_v56  ;;  %v2038_v9 = vsel %vm1809_vm6, %v2036_v2, %v2037_v0  ;;  %v2039_v11 = vsel %vm1809_vm6, %v2037_v0, %v2036_v2 }
 0x7b2   : > { %2056 = vrot.lane.b32.xlu0 %v2028_v58, %s6165_s2  ;;  %2058 = vrot.lane.b32.xlu1 %v2029_v61, %s6165_s2  ;;  %v2040_v22 = vmul.f32 %v2038_v9, %v5251_v28  ;;  %v2041_v26 = vmul.f32 %v2039_v11, %v5253_v30  ;;  %v2044_v14 = vsel %vm1824_vm7, %v2042_v13, %v2043_v12  ;;  %vm2104_vm4 = vcmask 261120  }
 0x7b3   : > { %v2045_v15 = vsel %vm1824_vm7, %v2043_v12, %v2042_v13  ;;  %v2046_v18 = vmul.f32 %v2044_v14, %v5258_v39  ;;  %v2050_v28 = vsel %vm1839_vm8, %v2048_v17, %v2049_v16  ;;  %v2051_v30 = vsel %vm1839_vm8, %v2049_v16, %v2048_v17  ;;  %v4145_v14 = vld [vmem:[#allocation2] ss:$0 sm:$0xff] }
 0x7b4   : > { %v2047_v19 = vmul.f32 %v2045_v15, %v5266_v45  ;;  %v2052_v20 = vmul.f32 %v2050_v28, %v5289_v10  ;;  %v2053_v23 = vmul.f32 %v2051_v30, %v5315_v34  ;;  %v2022_v10 = vmul.f32 %v2021_v7, %v5331_v47 }
 0x7b5   : > { %v2023_v34 = vmul.f32 %v2020_v8, %v5333_v49  ;;  %vm6141_vm7 = vcmask 392192   ;;  %vm2110_vm8 = vcmask 523264   ;;  %vm2113_vm9 = vcmask 654336  }
 0x7b6   : > { %2064 = vrot.lane.b32.xlu0 %v2034_v4, %s6146_s13  ;;  %2066 = vrot.lane.b32.xlu1 %v2035_v21, %s6146_s13  ;;  %v4935_v21 = vmov 3   ;;  %v4937_v8 = vmov 8  }
 0x7ba   : > { %2080 = vrot.lane.b32.xlu0 %v2040_v22, %s6144_s0  ;;  %2082 = vrot.lane.b32.xlu1 %v2041_v26, %s6144_s0  ;;  %s4196_s0 = sshll.u32 %s6266_s16, 5 }
 0x7bb   : > { %s5460_s13 = scalar_lea.vmem %s6213_s20, %s4196_s0  ;;  %s6214_s20 = sld [smem:[#allocation15_spill]] }
 0x7bc   : > { %v5465_v30 = vld [vmem:[%s5460_s13] sm:$0xff]  ;;  %s6215_s0 = smov 32  }
 0x7be   : > { %2088 = vrot.lane.b32.xlu0 %v2046_v18, %s6137_s4  ;;  %2090 = vrot.lane.b32.xlu1 %v2047_v19, %s6137_s4  ;;  %s6210_s4 = sld [smem:[#allocation12_spill]] }
 0x7c2   : > { %2096 = vrot.lane.b32.xlu0 %v2052_v20, %s6139_s18  ;;  %2098 = vrot.lane.b32.xlu1 %v2053_v23, %s6139_s18  ;;  %s6211_s18 = sld [smem:[#allocation7_spill]] }
 0x7c4   : > { %v4144_v50 = vld [vmem:[%s6210_s4] ss:$0 sm:$0xff]  ;;  %s6212_s4 = sld [smem:[#allocation14_spill]] }
 0x7c8   : > { %v2559_v1 = vld [vmem:[%s6211_s18 + $0x8] sm:$0xff]  ;;  %v2561_v2 = vld [vmem:[%s6211_s18 + $0x18] sm:$0xff]  ;;  %v2558_v7 = vld [vmem:[%s6211_s18] sm:$0xff] }
 0x7c9   : > { %v2560_v4 = vld [vmem:[%s6211_s18 + $0x10] sm:$0xff] }
 0x7f4   : > { %v5411_v39 = vpop.f32.mrf.mxu1 }
 0x7f6   : > { %v4293_v45 = vpop.f32.mrf.mxu1 }
 0x7f7   : > { %v5470_v45 = vld [vmem:[%s5460_s13 + $0x18] sm:$0xff] }
 0x7f8   : > { %v5413_v24 = vpop.f32.mrf.mxu1 }
 0x7fa   : > { %v4294_v25 = vpop.f32.mrf.mxu1 }
 0x81b   : > { %v2073_v29 = vpop.permute.xlu0 %2072 }
 0x81f   : > { %v2075_v27 = vpop.permute.xlu1 %2074 }
 0x824   : > { %v2057_v31 = vpop.permute.xlu0 %2056  ;;  %v2059_v32 = vpop.permute.xlu1 %2058 }
 0x825   : > { %v2102_v38 = vsel %vm1533_vm3, %v2022_v10, %v2057_v31  ;;  %v2103_v40 = vsel %vm1533_vm3, %v2023_v34, %v2059_v32  ;;  %v5482_v31 = vld [vmem:[%s5460_s13 + $0x8] sm:$0xff] }
 0x828   : > { %v2065_v33 = vpop.permute.xlu0 %2064  ;;  %v2067_v35 = vpop.permute.xlu1 %2066 }
 0x829   : > { %v2105_v41 = vsel %vm2104_vm4, %v2102_v38, %v2065_v33  ;;  %v2106_v43 = vsel %vm2104_vm4, %v2103_v40, %v2067_v35  ;;  %v2606_v33 = vrot.slane %v5465_v30, 1  ;;  %v2607_v35 = vrot.slane %v5482_v31, 1 }
 0x82a   : > { %v2108_v47 = vsel %vm6141_vm7, %v2105_v41, %v2073_v29  ;;  %v2109_v49 = vsel %vm6141_vm7, %v2106_v43, %v2075_v27  ;;  %vm2128_vm7 = vcmask 916480   ;;  %v5477_v27 = vld [vmem:[%s5460_s13 + $0x10] sm:$0xff] }
 0x82b   : > { %v5500_v41 = vsel %vm1809_vm6, %v2606_v33, %v2607_v35  ;;  %v2608_v43 = vrot.slane %v5477_v27, 1 }
 0x82c   : > { %v2081_v36 = vpop.permute.xlu0 %2080  ;;  %v2083_v37 = vpop.permute.xlu1 %2082 }
 0x82d   : > { %v2111_v46 = vsel %vm2110_vm8, %v2108_v47, %v2081_v36  ;;  %v2112_v48 = vsel %vm2110_vm8, %v2109_v49, %v2083_v37  ;;  %v2609_v36 = vrot.slane %v5470_v45, 1 }
 0x82f   : > { %v5505_v47 = vsel %vm1809_vm6, %v2609_v36, %v2606_v33  ;;  %v4531_v33 = vpack.i.bf16 %v5482_v31, %v5465_v30 }
 0x830   : > { %v2089_v44 = vpop.permute.xlu0 %2088  ;;  %v2091_v5 = vpop.permute.xlu1 %2090 }
 0x831   : > { %v2114_v6 = vsel %vm2113_vm9, %v2111_v46, %v2089_v44  ;;  %v2115_v51 = vsel %vm2113_vm9, %v2112_v48, %v2091_v5 }
 0x834   : > { %v2097_v53 = vpop.permute.xlu0 %2096  ;;  %v2099_v55 = vpop.permute.xlu1 %2098 }
 0x835   : > { %v2117_v56 = vsel %vm2116_vm12, %v2114_v6, %v2097_v53  ;;  %v2118_v58 = vsel %vm2116_vm12, %v2115_v51, %v2099_v55  ;;  %v5516_v51 = vsel %vm1809_vm6, %v2607_v35, %v2608_v43 }
 0x836   : > { %v2126_v61 = vmul.f32 %v4144_v50, %v2117_v56  ;;  %v2127_v62 = vmul.f32 %v4144_v50, %v2118_v58  ;;  %v2550_v56 = vrot.slane %v5465_v30, 7  ;;  %v2553_v58 = vrot.slane %v5470_v45, 7 }
 0x838   : > { %v2129_v63 = vsel %vm2128_vm7, %v2126_v61, 0.0  ;;  %v2132_v0 = vsel %vm2128_vm7, %v2127_v62, 0.0  ;;  %v5524_v61 = vsel %vm1809_vm6, %v2608_v43, %v2609_v36 }
 0x839   : > { %2130 = vadd.xlane.f32.xlu0 %v2129_v63  ;;  %2133 = vadd.xlane.f32.xlu1 %v2132_v0 }
 0x84a   : > { %2591 = vperm.xlu1 %4486, %v2559_v1  }
 0x84e   : > { %2599 = vperm.xlu1 %4486, %v2561_v2  }
 0x84f   : > { %2587 = vperm.xlu0 %4449, %v2558_v7  }
 0x852   : > { %4488 = vset.pattern.permute.xlu1 %v4920_v57 }
 0x853   : > { %2595 = vperm.xlu0 %4449, %v2560_v4   ;;  %2619 = vperm.xlu1 %4488, %v2559_v1  }
 0x857   : > { %4487 = vset.pattern.permute.xlu0 %v4920_v57  ;;  %2623 = vperm.xlu1 %4488, %v2560_v4   ;;  %v4936_v57 = vmov 7  }
 0x858   : > { %2615 = vperm.xlu0 %4487, %v2558_v7  }
 0x85b   : > { %4489 = vset.pattern.permute.xlu1 %v4935_v21 }
 0x85c   : > { %2627 = vperm.xlu0 %4487, %v2561_v2   ;;  %2635 = vperm.xlu1 %4489, %v2558_v7  }
 0x860   : > { %4490 = vset.pattern.permute.xlu0 %v4935_v21  ;;  %2643 = vperm.xlu1 %4489, %v2560_v4  }
 0x861   : > { %2639 = vperm.xlu0 %4490, %v2559_v1  }
 0x864   : > { %2647 = vperm.xlu1 %4489, %v2561_v2  }
 0x865   : > { %4491 = vset.pattern.permute.xlu0 %v4922_v59 }
 0x866   : > { %2655 = vperm.xlu0 %4491, %v2558_v7  }
 0x868   : > { %4492 = vset.pattern.permute.xlu1 %v4922_v59  ;;  %v2254_v59 = vld [vmem:[%s6212_s4] sm:$0xff] }
 0x869   : > { %2659 = vperm.xlu1 %4492, %v2559_v1   ;;  %v5447_v9 = vadd.f32 %v5411_v39, %v2254_v59 }
 0x86a   : > { %2667 = vperm.xlu0 %4491, %v2561_v2  }
 0x86b   : > { %v2308_v12 = vsub.f32 0.0, %v5447_v9 }
 0x86d   : > { %2663 = vperm.xlu1 %4492, %v2560_v4   ;;  %v2310_v22 = vmul.f32 1.442695, %v2308_v12 }
 0x86e   : > { %4494 = vset.pattern.permute.xlu0 %v4923_v60 }
 0x86f   : > { %2679 = vperm.xlu0 %4494, %v2559_v1   ;;  %4794 = vpow2.f32 %v2310_v22 }
 0x871   : > { %4493 = vset.pattern.permute.xlu1 %v4923_v60  ;;  %v2255_v60 = vld [vmem:[%s6212_s4 + $0x8] sm:$0xff]  ;;  %s6248_s4 = sld [smem:[#allocation32_spill]] }
 0x872   : > { %2675 = vperm.xlu1 %4493, %v2558_v7   ;;  %v5450_v11 = vadd.f32 %v5413_v24, %v2255_v60  ;;  %v5538_v60 = vsel %vm1794_vm5, %v2553_v58, %v2550_v56 }
 0x873   : > { %4495 = vset.pattern.permute.xlu0 %v4936_v57 }
 0x874   : > { %2695 = vperm.xlu0 %4495, %v2558_v7   ;;  %v2309_v13 = vsub.f32 0.0, %v5450_v11 }
 0x876   : > { %2683 = vperm.xlu1 %4493, %v2560_v4   ;;  %v2312_v26 = vmul.f32 1.442695, %v2309_v13 }
 0x878   : > { %2707 = vperm.xlu0 %4495, %v2561_v2   ;;  %4796 = vpow2.f32 %v2312_v26 }
 0x87a   : > { %2687 = vperm.xlu1 %4493, %v2561_v2  }
 0x87c   : > { %4498 = vset.pattern.permute.xlu0 %v4937_v8  ;;  %v4795_v44 = vpop.eup %4794 }
 0x87d   : > { %2719 = vperm.xlu0 %4498, %v2559_v1   ;;  %v2314_v50 = vadd.f32 1.0, %v4795_v44 }
 0x87e   : > { %4496 = vset.pattern.permute.xlu1 %v4936_v57  ;;  %v2552_v57 = vrot.slane %v5477_v27, 7 }
 0x87f   : > { %2699 = vperm.xlu1 %4496, %v2559_v1  }
 0x881   : > { %4499 = vset.pattern.permute.xlu0 %v6151_v52 }
 0x882   : > { %2564 = vperm.xlu0 %4499, %v2558_v7  }
 0x883   : > { %2703 = vperm.xlu1 %4496, %v2560_v4  }
 0x885   : > { %v4797_v5 = vpop.eup %4796 }
 0x886   : > { %2579 = vperm.xlu0 %4499, %v2561_v2   ;;  %v2315_v53 = vadd.f32 1.0, %v4797_v5 }
 0x887   : > { %4497 = vset.pattern.permute.xlu1 %v4937_v8 }
 0x888   : > { %2715 = vperm.xlu1 %4497, %v2558_v7  }
 0x88c   : > { %2723 = vperm.xlu1 %4497, %v2560_v4  }
 0x890   : > { %2727 = vperm.xlu1 %4497, %v2561_v2  }
 0x894   : > { %4500 = vset.pattern.permute.xlu1 %v6151_v52 }
 0x895   : > { %2569 = vperm.xlu1 %4500, %v2559_v1   ;;  %v2551_v1 = vrot.slane %v5482_v31, 7 }
 0x897   : > { %v5543_v12 = vsel %vm1794_vm5, %v2550_v56, %v2551_v1  ;;  %v5549_v26 = vsel %vm1794_vm5, %v2551_v1, %v2552_v57 }
 0x899   : > { %2574 = vperm.xlu1 %4500, %v2560_v4  }
 0x8c2   : > { %v2131_v15 = vpop.xlane.xlu0 %2130  ;;  %v2134_v16 = vpop.xlane.xlu1 %2133 }
 0x8c3   : > { %v5455_v17 = vadd.f32 %v4145_v14, %v2131_v15  ;;  %v5457_v18 = vadd.f32 %v4145_v14, %v2134_v16 }
 0x8c5   : > { %v2144_v19 = vsub.f32 0.0, %v5455_v17  ;;  %v2145_v28 = vsub.f32 0.0, %v5457_v18 }
 0x8c6   : > { %v5467_v20 = vpop.permute.xlu1 %2591 }
 0x8c7   : > { %v2146_v23 = vmul.f32 1.442695, %v2144_v19  ;;  %v2148_v39 = vmul.f32 1.442695, %v2145_v28  ;;  %v2603_v24 = vmul.f32 %v5467_v20, %v5465_v30  ;;  %v5560_v19 = vsel %vm1794_vm5, %v2552_v57, %v2553_v58  ;;  %v4739_v57 = vld [vmem:[%s6214_s20] sm:$0xff]   ;;  %s6220_s20 = sld [smem:[#allocation16_spill]] }
 0x8c9   : > { %4798 = vpow2.f32 %v2146_v23 }
 0x8ca   : > { %4800 = vpow2.f32 %v2148_v39  ;;  %v5474_v25 = vpop.permute.xlu0 %2587  ;;  %v5479_v29 = vpop.permute.xlu1 %2599 }
 0x8cb   : > { %v2602_v32 = vmul.f32 %v5474_v25, %v5470_v45  ;;  %v2605_v10 = vmul.f32 %v5479_v29, %v5477_v27  ;;  %4802 = vrcp.f32 %v2314_v50 }
 0x8cc   : > { %4804 = vrcp.f32 %v2315_v53 }
 0x8cd   : > { %v4501_v34 = vpack.i.bf16 %v2603_v24, %v2602_v32 }
 0x8ce   : > { %v5491_v37 = vpop.permute.xlu0 %2595  ;;  %v5493_v38 = vpop.permute.xlu1 %2619 }
 0x8cf   : > { %v2604_v40 = vmul.f32 %v5491_v37, %v5482_v31  ;;  %4502 = vrot.lane.b32.xlu1 %v4501_v34, %s6162_s28  ;;  %v2631_v46 = vmul.f32 %v5493_v38, %v5500_v41 }
 0x8d1   : > { %v4506_v49 = vpack.i.bf16 %v2605_v10, %v2604_v40  ;;  %v4536_v40 = vpack.i.bf16 %v5470_v45, %v5477_v27 }
 0x8d2   : > { %v5509_v48 = vpop.permute.xlu1 %2623 }
 0x8d3   : > { %v5511_v6 = vpop.permute.xlu0 %2615  ;;  %4507 = vrot.lane.b32.xlu0 %v4506_v49, %s6162_s28  ;;  %v2632_v63 = vmul.f32 %v5509_v48, %v5516_v51  ;;  %s6223_s28 = sld [smem:[#allocation18_spill]] }
 0x8d4   : > { %v2630_v55 = vmul.f32 %v5511_v6, %v5505_v47 }
 0x8d6   : > { %v4799_v62 = vpop.eup %4798  ;;  %v4511_v0 = vpack.i.bf16 %v2631_v46, %v2630_v55 }
 0x8d7   : > { %v4801_v2 = vpop.eup %4800  ;;  %v2150_v7 = vadd.f32 1.0, %v4799_v62  ;;  %v5529_v4 = vpop.permute.xlu0 %2627 }
 0x8d8   : > { %v5531_v21 = vpop.permute.xlu1 %2635  ;;  %v2151_v8 = vadd.f32 1.0, %v4801_v2  ;;  %v2633_v59 = vmul.f32 %v5529_v4, %v5524_v61  ;;  %4512 = vrot.lane.b32.xlu1 %v4511_v0, %s6167_s26  ;;  %v4803_v34 = vpop.eup %4802 }
 0x8d9   : > { %4806 = vrcp.f32 %v2150_v7  ;;  %v2650_v22 = vmul.f32 %v5531_v21, %v5538_v60  ;;  %v4805_v43 = vpop.eup %4804  ;;  %v2318_v50 = vmul.f32 %v4803_v34, %v5447_v9 }
 0x8da   : > { %4808 = vrcp.f32 %v2151_v8  ;;  %v4516_v13 = vpack.i.bf16 %v2633_v59, %v2632_v63  ;;  %v2319_v58 = vmul.f32 %v4805_v43, %v5450_v11 }
 0x8dc   : > { %v5551_v14 = vpop.permute.xlu1 %2643  ;;  %v5553_v15 = vpop.permute.xlu0 %2639  ;;  %4517 = vrot.lane.b32.xlu0 %v4516_v13, %s6167_s26  ;;  %s6228_s26 = smov 80  }
 0x8dd   : > { %v2651_v16 = vmul.f32 %v5553_v15, %v5543_v12  ;;  %v2652_v28 = vmul.f32 %v5551_v14, %v5549_v26 }
 0x8df   : > { %v4521_v39 = vpack.i.bf16 %v2651_v16, %v2650_v22 }
 0x8e0   : > { %v5564_v23 = vpop.permute.xlu1 %2647 }
 0x8e1   : > { %v2653_v24 = vmul.f32 %v5564_v23, %v5560_v19  ;;  %4522 = vrot.lane.b32.xlu1 %v4521_v39, %s6161_s22  ;;  %v5569_v32 = vpop.permute.xlu0 %2655 }
 0x8e2   : > { %v2670_v10 = vmul.f32 %v5569_v32, %v5500_v41 }
 0x8e3   : > { %v4526_v35 = vpack.i.bf16 %v2653_v24, %v2652_v28 }
 0x8e4   : > { %v5576_v36 = vpop.permute.xlu1 %2659 }
 0x8e5   : > { %4527 = vrot.lane.b32.xlu0 %v4526_v35, %s6161_s22  ;;  %v2671_v44 = vmul.f32 %v5576_v36, %v5516_v51  ;;  %4532 = vrot.lane.b32.xlu1 %v4531_v33, %s6165_s2  ;;  %v5583_v5 = vpop.permute.xlu0 %2667  ;;  %s6222_s22 = sld [smem:[#allocation17_spill]] }
 0x8e6   : > { %v4807_v49 = vpop.eup %4806  ;;  %v2673_v56 = vmul.f32 %v5583_v5, %v5505_v47 }
 0x8e7   : > { %v4809_v46 = vpop.eup %4808  ;;  %v2154_v53 = vmul.f32 %v4807_v49, %v5455_v17  ;;  %v4541_v55 = vpack.i.bf16 %v2671_v44, %v2670_v10 }
 0x8e8   : > { %v2155_v62 = vmul.f32 %v4809_v46, %v5457_v18  ;;  %v5592_v63 = vpop.permute.xlu1 %2663 }
 0x8e9   : > { %4537 = vrot.lane.b32.xlu0 %v4536_v40, %s6165_s2  ;;  %v2320_v0 = vadd.f32 %v2318_v50, %v2154_v53  ;;  %v2672_v1 = vmul.f32 %v5592_v63, %v5524_v61  ;;  %4542 = vrot.lane.b32.xlu1 %v4541_v55, %s4928_s15 }
 0x8ea   : > { %v2321_v9 = vadd.f32 %v2319_v58, %v2155_v62  ;;  %v5597_v17 = vpop.permute.xlu0 %2679 }
 0x8eb   : > { %v4546_v2 = vpack.i.bf16 %v2673_v56, %v2672_v1  ;;  %v2691_v7 = vmul.f32 %v5597_v17, %v5549_v26 }
 0x8ec   : > { %v2324_v11 = vpack.c.bf16 %v2321_v9, %v2320_v0 }
 0x8ed   : > { %4547 = vrot.lane.b32.xlu0 %v4546_v2, %s4928_s15  ;;  %v5602_v18 = vpop.permute.xlu1 %2675  ;;  %s4938_s15 = smov 28  }
 0x8ee   : > { %v2690_v8 = vmul.f32 %v5602_v18, %v5543_v12  ;;  %4296 = vmatpush3.bf16.msra.mxu0 %v2324_v11 }
 0x8ef   : > { %4307 = vmatprep.subr.bf16.mxu0 %v6149_v3  ;;  %v5614_v22 = vpop.permute.xlu0 %2695 }
 0x8f0   : > { %v4551_v59 = vpack.i.bf16 %v2691_v7, %v2690_v8  ;;  %v2710_v33 = vmul.f32 %v5614_v22, %v5482_v31 }
 0x8f1   : > { %4298 = vmatmul.mubr.msk.bf16.vlgmr.msra.gmra.mxu0 %vm1533_vm3, %v4739_v57  ;;  %v5609_v13 = vpop.permute.xlu1 %2683 }
 0x8f2   : > { %4552 = vrot.lane.b32.xlu1 %v4551_v59, %s6163_s10  ;;  %4309 = vmatprep.mubr.msk.bf16.mxu0 %vm4915_vm1, %v6149_v3  ;;  %v2692_v16 = vmul.f32 %v5609_v13, %v5560_v19 }
 0x8f3   : > { %v5624_v35 = vpop.permute.xlu0 %2707 }
 0x8f4   : > { %v2713_v43 = vmul.f32 %v5624_v35, %v5465_v30 }
 0x8f5   : > { %v5618_v28 = vpop.permute.xlu1 %2687 }
 0x8f6   : > { %v2693_v39 = vmul.f32 %v5618_v28, %v5538_v60 }
 0x8f8   : > { %v4556_v24 = vpack.i.bf16 %v2693_v39, %v2692_v16  ;;  %v5637_v31 = vpop.permute.xlu0 %2719 }
 0x8f9   : > { %v2731_v50 = vmul.f32 %v5637_v31, %v5524_v61 }
 0x8fa   : > { %4557 = vrot.lane.b32.xlu0 %v4556_v24, %s6163_s10  ;;  %v5627_v10 = vpop.permute.xlu1 %2699  ;;  %s6224_s10 = sld [smem:[#allocation24_spill]] }
 0x8fb   : > { %v2711_v34 = vmul.f32 %v5627_v10, %v5477_v27 }
 0x8fd   : > { %v4561_v40 = vpack.i.bf16 %v2711_v34, %v2710_v33 }
 0x8fe   : > { %v5633_v44 = vpop.permute.xlu1 %2703 }
 0x8ff   : > { %v2712_v49 = vmul.f32 %v5633_v44, %v5470_v45  ;;  %4562 = vrot.lane.b32.xlu1 %v4561_v40, %s4938_s15 }
 0x901   : > { %v4566_v46 = vpack.i.bf16 %v2713_v43, %v2712_v49 }
 0x903   : > { %4567 = vrot.lane.b32.xlu0 %v4566_v46, %s4938_s15  ;;  %v5641_v53 = vpop.permute.xlu1 %2715  ;;  %s6221_s15 = sld [smem:[#allocation23_spill]] }
 0x904   : > { %v2730_v27 = vmul.f32 %v5641_v53, %v5516_v51  ;;  %v5659_v51 = vpop.permute.xlu0 %2564 }
 0x905   : > { %6218 = vst [vmem:[#allocation36_spill] sm:$0xff] %v5659_v51  ;;  %v2582_v24 = vmul.f32 %v5659_v51, %v5560_v19 }
 0x906   : > { %v4571_v30 = vpack.i.bf16 %v2731_v50, %v2730_v27 }
 0x907   : > { %v5645_v55 = vpop.permute.xlu1 %2723 }
 0x908   : > { %4572 = vrot.lane.b32.xlu1 %v4571_v30, %s6215_s0  ;;  %v2732_v45 = vmul.f32 %v5645_v55, %v5505_v47  ;;  %v5661_v9 = vpop.permute.xlu0 %2579 }
 0x909   : > { %6219 = vst [vmem:[#allocation37_spill] sm:$0xff] %v5661_v9  ;;  %v2585_v49 = vmul.f32 %v5661_v9, %v5549_v26 }
 0x90b   : > { %v5650_v56 = vpop.permute.xlu1 %2727 }
 0x90c   : > { %v2733_v58 = vmul.f32 %v5650_v56, %v5500_v41 }
 0x90e   : > { %v4576_v61 = vpack.i.bf16 %v2733_v58, %v2732_v45 }
 0x910   : > { %4577 = vrot.lane.b32.xlu0 %v4576_v61, %s6215_s0  ;;  %v5655_v62 = vpop.permute.xlu1 %2569 }
 0x911   : > { %6216 = vst [vmem:[#allocation34_spill] sm:$0xff] %v5655_v62  ;;  %v2583_v39 = vmul.f32 %v5655_v62, %v5538_v60 }
 0x914   : > { %v5657_v0 = vpop.permute.xlu1 %2574 }
 0x915   : > { %6217 = vst [vmem:[#allocation35_spill] sm:$0xff] %v5657_v0  ;;  %v2584_v27 = vmul.f32 %v5657_v0, %v5543_v12 }
 0x941   : > { %v4503_v1 = vpop.permute.xlu1 %4502 }
 0x942   : > { %v4505_v33 = vunpack.i.h.bf16 %v4503_v1  ;;  %v4504_v34 = vunpack.i.l.bf16 %v4503_v1 }
 0x944   : > { %v2863_v54 = vsel %vm1431_vm2, %v2583_v39, %v4505_v33  ;;  %v2862_v19 = vsel %vm1431_vm2, %v2582_v24, %v4504_v34 }
 0x945   : > { %v4508_v7 = vpop.permute.xlu0 %4507 }
 0x946   : > { %v4510_v30 = vunpack.i.h.bf16 %v4508_v7  ;;  %v4509_v51 = vunpack.i.l.bf16 %v4508_v7 }
 0x948   : > { %v2865_v62 = vsel %vm1431_vm2, %v2585_v49, %v4510_v30 }
 0x94a   : > { %v4513_v2 = vpop.permute.xlu1 %4512 }
 0x94b   : > { %v4515_v40 = vunpack.i.h.bf16 %v4513_v2  ;;  %v4514_v43 = vunpack.i.l.bf16 %v4513_v2 }
 0x94d   : > { %v2866_v2 = vsel %vm1902_vm13, %v2862_v19, %v4514_v43  ;;  %v2867_v26 = vsel %vm1902_vm13, %v2863_v54, %v4515_v40  ;;  %v2864_v19 = vsel %vm1431_vm2, %v2584_v27, %v4509_v51 }
 0x94e   : > { %v5663_v11 = vpop.permute.xlu0 %4517 }
 0x94f   : > { %v4520_v33 = vunpack.i.h.bf16 %v5663_v11  ;;  %v4519_v54 = vunpack.i.l.bf16 %v5663_v11 }
 0x953   : > { %v4523_v47 = vpop.permute.xlu1 %4522 }
 0x954   : > { %v4525_v46 = vunpack.i.h.bf16 %v4523_v47  ;;  %v4524_v50 = vunpack.i.l.bf16 %v4523_v47 }
 0x956   : > { %v2870_v9 = vsel %vm1905_vm14, %v2866_v2, %v4524_v50  ;;  %v2871_v12 = vsel %vm1905_vm14, %v2867_v26, %v4525_v46  ;;  %v2869_v26 = vsel %vm1902_vm13, %v2865_v62, %v4520_v33 }
 0x957   : > { %v4533_v57 = vpop.permute.xlu1 %4532  ;;  %v5665_v8 = vpop.permute.xlu0 %4527 }
 0x958   : > { %v4535_v45 = vunpack.i.h.bf16 %v4533_v57  ;;  %v4534_v58 = vunpack.i.l.bf16 %v4533_v57  ;;  %v4529_v50 = vunpack.i.l.bf16 %v5665_v8 }
 0x95a   : > { %v2874_v39 = vsel %vm1533_vm3, %v2870_v9, %v4534_v58  ;;  %v2875_v24 = vsel %vm1533_vm3, %v2871_v12, %v4535_v45  ;;  %v4530_v9 = vunpack.i.h.bf16 %v5665_v8 }
 0x95b   : > { %v4543_v41 = vpop.permute.xlu1 %4542  ;;  %v5667_v59 = vpop.permute.xlu0 %4537 }
 0x95c   : > { %v4545_v1 = vunpack.i.h.bf16 %v4543_v41  ;;  %v4544_v3 = vunpack.i.l.bf16 %v4543_v41  ;;  %v4540_v11 = vunpack.i.h.bf16 %v5667_v59 }
 0x95e   : > { %v2879_v34 = vsel %vm1910_vm15, %v2875_v24, %v4545_v1 }
 0x95f   : > { %v4548_v61 = vpop.permute.xlu0 %4547 }
 0x960   : > { %v4550_v1 = vunpack.i.h.bf16 %v4548_v61  ;;  %v4549_v2 = vunpack.i.l.bf16 %v4548_v61 }
 0x964   : > { %v4553_v16 = vpop.permute.xlu1 %4552 }
 0x965   : > { %v4555_v52 = vunpack.i.h.bf16 %v4553_v16  ;;  %v4554_v47 = vunpack.i.l.bf16 %v4553_v16  ;;  %v2878_v16 = vsel %vm1910_vm15, %v2874_v39, %v4544_v3  ;;  %v4539_v3 = vunpack.i.l.bf16 %v5667_v59 }
 0x966   : > { %v2873_v59 = vsel %vm1905_vm14, %v2869_v26, %v4530_v9  ;;  %v2325_v9 = vld [vmem:[%s6220_s20] sm:$0xff] }
 0x967   : > { %v2882_v43 = vsel %vm1913_vm10, %v2878_v16, %v4554_v47  ;;  %v2883_v46 = vsel %vm1913_vm10, %v2879_v34, %v4555_v52  ;;  %v2877_v51 = vsel %vm1533_vm3, %v2873_v59, %v4540_v11  ;;  %v2326_v11 = vld [vmem:[%s6220_s20 + $0x8] sm:$0xff] }
 0x968   : > { %v2881_v27 = vsel %vm1910_vm15, %v2877_v51, %v4550_v1 }
 0x96c   : > { %v4558_v41 = vpop.permute.xlu0 %4557 }
 0x96d   : > { %v4560_v47 = vunpack.i.h.bf16 %v4558_v41  ;;  %v4559_v12 = vunpack.i.l.bf16 %v4558_v41 }
 0x96f   : > { %v2885_v33 = vsel %vm1913_vm10, %v2881_v27, %v4560_v47  ;;  %v2388_v27 = vld [vmem:[%s6222_s22] sm:$0xf]  ;;  %s6225_s22 = smov 64  }
 0x971   : > { %v4563_v60 = vpop.permute.xlu1 %4562 }
 0x972   : > { %v4565_v0 = vunpack.i.h.bf16 %v4563_v60  ;;  %v4564_v57 = vunpack.i.l.bf16 %v4563_v60 }
 0x974   : > { %v2886_v30 = vsel %vm1939_vm11, %v2882_v43, %v4564_v57  ;;  %v2887_v45 = vsel %vm1939_vm11, %v2883_v46, %v4565_v0  ;;  %v2868_v0 = vsel %vm1902_vm13, %v2864_v19, %v4519_v54 }
 0x975   : > { %v4568_v58 = vpop.permute.xlu0 %4567  ;;  %v2872_v57 = vsel %vm1905_vm14, %v2868_v0, %v4529_v50 }
 0x976   : > { %v4570_v39 = vunpack.i.h.bf16 %v4568_v58  ;;  %v4569_v24 = vunpack.i.l.bf16 %v4568_v58  ;;  %v2876_v16 = vsel %vm1533_vm3, %v2872_v57, %v4539_v3 }
 0x977   : > { %v2880_v62 = vsel %vm1910_vm15, %v2876_v16, %v4549_v2  ;;  %v4740_v16 = vld [vmem:[%s6221_s15 + $0x10] ss:$0 sps:$4 sm:$0x33]   ;;  %vm2923_vm15 = vcmask 293888  }
 0x978   : > { %v2884_v41 = vsel %vm1913_vm10, %v2880_v62, %v4559_v12  ;;  %v2931_v62 = vsel %vm1435_vm0, %v4740_v16, 0 }
 0x979   : > { %v2888_v43 = vsel %vm1939_vm11, %v2884_v41, %v4569_v24  ;;  %v2390_v41 = vld [vmem:[%s6223_s28] sm:$0xff]  ;;  %s6169_s28 = smov 112  }
 0x97a   : > { %v4573_v40 = vpop.permute.xlu1 %4572 }
 0x97b   : > { %v4575_v49 = vunpack.i.h.bf16 %v4573_v40  ;;  %v4574_v7 = vunpack.i.l.bf16 %v4573_v40  ;;  %v2889_v40 = vsel %vm1939_vm11, %v2885_v33, %v4570_v39  ;;  %v4742_v33 = vld [vmem:[%s6221_s15] sm:$0xff]   ;;  %vm6236_vm11 = vcmask 392192  }
 0x97d   : > { %v5699_v60 = vsel %vm2104_vm4, %v2886_v30, %v4574_v7  ;;  %v2891_v52 = vsel %vm2104_vm4, %v2887_v45, %v4575_v49 }
 0x97e   : > { %v2894_v8 = vpack.c.bf16 %v2891_v52, %v5699_v60 }
 0x982   : > { %v4578_v61 = vpop.permute.xlu0 %4577 }
 0x983   : > { %v4580_v54 = vunpack.i.h.bf16 %v4578_v61  ;;  %v4579_v34 = vunpack.i.l.bf16 %v4578_v61  ;;  %v4741_v61 = vld [vmem:[%s6221_s15 + $0x8] sm:$0xff]  }
 0x985   : > { %v2893_v46 = vsel %vm2104_vm4, %v2889_v40, %v4580_v54  ;;  %v2892_v49 = vsel %vm2104_vm4, %v2888_v43, %v4579_v34 }
 0x986   : > { %v2895_v7 = vpack.c.bf16 %v2893_v46, %v2892_v49 }
 0x9b1   : > { %v2369_v50 = vpop.f32.mrf.mxu0 }
 0x9b2   : > { %v2370_v30 = vadd.f32 %v2369_v50, %v2325_v9 }
 0x9b3   : > { %v4299_v45 = vpop.f32.mrf.mxu0 }
 0x9b4   : > { %v2376_v3 = vsub.f32 0.0, %v2370_v30 }
 0x9b5   : > { %v2372_v58 = vpop.f32.mrf.mxu0 }
 0x9b6   : > { %v2378_v60 = vmul.f32 1.442695, %v2376_v3  ;;  %v2373_v52 = vadd.f32 %v2372_v58, %v2326_v11 }
 0x9b7   : > { %v4300_v19 = vpop.f32.mrf.mxu0 }
 0x9b8   : > { %4810 = vpow2.f32 %v2378_v60  ;;  %v2377_v1 = vsub.f32 0.0, %v2373_v52 }
 0x9ba   : > { %v2380_v2 = vmul.f32 1.442695, %v2377_v1 }
 0x9bc   : > { %4812 = vpow2.f32 %v2380_v2 }
 0x9c5   : > { %v4811_v26 = vpop.eup %4810 }
 0x9c6   : > { %v2382_v0 = vadd.f32 1.0, %v4811_v26 }
 0x9c8   : > { %4814 = vrcp.f32 %v2382_v0 }
 0x9c9   : > { %v4813_v47 = vpop.eup %4812 }
 0x9ca   : > { %v2383_v12 = vadd.f32 1.0, %v4813_v47 }
 0x9cc   : > { %4816 = vrcp.f32 %v2383_v12 }
 0x9d5   : > { %v4815_v59 = vpop.eup %4814 }
 0x9d6   : > { %v2386_v39 = vmul.f32 %v4815_v59, %v2370_v30 }
 0x9d9   : > { %v4817_v57 = vpop.eup %4816 }
 0x9da   : > { %v2387_v24 = vmul.f32 %v4817_v57, %v2373_v52 }
 0x9dc   : > { %v2389_v51 = vpack.c.bf16 %v2387_v24, %v2386_v39 }
 0x9de   : > { %4302 = vmatpush3.bf16.msra.mxu1 %v2389_v51 }
 0x9df   : > { %4364 = vmatprep.subr.msk.bf16.mxu1 %vm1435_vm0, %v4740_v16  ;;  %vm2446_vm0 = vcmask 1043456  }
 0x9e1   : > { %4304 = vmatmul.mubr.msk.bf16.vlgmr.msra.gmra.mxu1 %vm1533_vm3, %v2388_v27 }
 0x9e2   : > { %4314 = vmatpush3.bf16.msra.mxu1 %v2931_v62  ;;  %4319 = vmatprep.mubr.msk.bf16.mxu1 %vm2923_vm15, %v2894_v8  ;;  %v4158_v8 = vld [vmem:[%s6224_s10] ss:$0 sm:$0xff]  ;;  %s6226_s10 = smov 48  }
 0x9e3   : > { %4315 = vmatprep.subr.bf16.mxu1 %v4741_v61 }
 0x9e6   : > { %4316 = vmatpush3.bf16.msra.mxu1 %v4741_v61 }
 0x9e7   : > { %4317 = vmatprep.subr.bf16.mxu1 %v4742_v33 }
 0x9ea   : > { %4318 = vmatpush3.bf16.msra.mxu1 %v4742_v33 }
 0x9ed   : > { %4320 = vmatmul.mubr.msk.bf16.vlgmr.msra.gmra.mxu1 %vm2923_vm15, %v2895_v7  ;;  %vm6237_vm15 = vmmov %vm6236_vm11 }
 0xaa1   : > { %v2428_v54 = vpop.f32.mrf.mxu1 }
 0xaa2   : > { %v5728_v34 = vadd.f32 %v2428_v54, %v2390_v41 }
 0xaa3   : > { %v4305_v40 = vpop.f32.mrf.mxu1 }
 0xaa4   : > { %v2434_v43 = vsub.f32 0.0, %v5728_v34 }
 0xaa5   : > { %v2431_v46 = vpop.f32.mrf.mxu1 }
 0xaa6   : > { %v2435_v49 = vmul.f32 1.442695, %v2434_v43 }
 0xaa7   : > { %v4306_v9 = vpop.f32.mrf.mxu1 }
 0xaa8   : > { %4818 = vpow2.f32 %v2435_v49 }
 0xaad   : > { %v4321_v50 = vpop.f32.mrf.mxu1 }
 0xaae   : > { %v5732_v45 = vadd.f32 %v4321_v50, %v4158_v8 }
 0xaaf   : > { %v2967_v30 = vpop.f32.mrf.mxu1 }
 0xab0   : > { %v5734_v11 = vadd.f32 %v4158_v8, %v2967_v30  ;;  %v3000_v60 = vrot.slane %v5732_v45, 1  ;;  %v2997_v47 = vmul.f32 %v5732_v45, %v5479_v29  ;;  %v3023_v61 = vmul.f32 %v5732_v45, %v5627_v10 }
 0xab1   : > { %v4322_v3 = vpop.f32.mrf.mxu1  ;;  %v2984_v41 = vrot.slane %v5732_v45, 7 }
 0xab2   : > { %v5736_v7 = vadd.f32 %v4322_v3, %v4158_v8  ;;  %v2995_v1 = vmul.f32 %v5734_v11, %v5467_v20  ;;  %v2982_v26 = vrot.slane %v5734_v11, 7  ;;  %v2998_v27 = vrot.slane %v5734_v11, 1 }
 0xab3   : > { %v2970_v58 = vpop.f32.mrf.mxu1 }
 0xab4   : > { %v2971_v52 = vadd.f32 %v4158_v8, %v2970_v58  ;;  %v2994_v19 = vmul.f32 %v5736_v7, %v5474_v25  ;;  %v2985_v0 = vrot.slane %v5736_v7, 7  ;;  %v3001_v12 = vrot.slane %v5736_v7, 1 }
 0xab5   : > { %v4819_v2 = vpop.eup %4818 }
 0xab6   : > { %v2437_v59 = vadd.f32 1.0, %v4819_v2  ;;  %v2983_v57 = vrot.slane %v2971_v52, 7  ;;  %v4586_v39 = vpack.i.bf16 %v2971_v52, %v5734_v11  ;;  %v4581_v24 = vpack.i.bf16 %v2995_v1, %v2994_v19 }
 0xab7   : > { %v2996_v16 = vmul.f32 %v2971_v52, %v5491_v37  ;;  %v3022_v51 = vmul.f32 %v2971_v52, %v5614_v22  ;;  %v2999_v62 = vrot.slane %v2971_v52, 1  ;;  %v3005_v43 = vsel %vm1809_vm6, %v3001_v12, %v2998_v27 }
 0xab8   : > { %4820 = vrcp.f32 %v2437_v59  ;;  %4587 = vrot.lane.b32.xlu0 %v4586_v39, %s6225_s22  ;;  %4582 = vrot.lane.b32.xlu1 %v4581_v24, %s6165_s2  ;;  %v5758_v33 = vsel %vm1794_vm5, %v2982_v26, %v2983_v57  ;;  %v5767_v46 = vsel %vm1794_vm5, %v2985_v0, %v2982_v26  ;;  %v5774_v8 = vsel %vm1794_vm5, %v2983_v57, %v2984_v41 }
 0xab9   : > { %v4596_v54 = vpack.i.bf16 %v2997_v47, %v2996_v16  ;;  %v3004_v40 = vsel %vm1809_vm6, %v2998_v27, %v2999_v62  ;;  %v4591_v49 = vpack.i.bf16 %v3023_v61, %v3022_v51  ;;  %v3011_v50 = vmul.f32 %v5758_v33, %v5553_v15 }
 0xaba   : > { %v3007_v9 = vmul.f32 %v3004_v40, %v5493_v38  ;;  %v3003_v30 = vsel %vm1809_vm6, %v2999_v62, %v3000_v60  ;;  %v3006_v3 = vmul.f32 %v3005_v43, %v5511_v6  ;;  %v3010_v58 = vmul.f32 %v5767_v46, %v5531_v21 }
 0xabb   : > { %v3018_v52 = vmul.f32 %v5758_v33, %v5602_v18  ;;  %v3019_v19 = vmul.f32 %v5774_v8, %v5597_v17  ;;  %v3014_v26 = vmul.f32 %v3004_v40, %v5569_v32  ;;  %v3015_v47 = vmul.f32 %v3003_v30, %v5576_v36 }
 0xabc   : > { %4597 = vrot.lane.b32.xlu0 %v4596_v54, %s6165_s2  ;;  %4592 = vrot.lane.b32.xlu1 %v4591_v49, %s6169_s28  ;;  %v4601_v1 = vpack.i.bf16 %v3007_v9, %v3006_v3  ;;  %v4606_v2 = vpack.i.bf16 %v3011_v50, %v3010_v58  ;;  %v3002_v59 = vsel %vm1809_vm6, %v3000_v60, %v3001_v12  ;;  %s6227_s2 = smov 96   ;;  %s6229_s28 = sld [smem:[#allocation19_spill]] }
 0xabd   : > { %v4621_v57 = vpack.i.bf16 %v3019_v19, %v3018_v52  ;;  %v4611_v39 = vpack.i.bf16 %v3015_v47, %v3014_v26  ;;  %v3016_v24 = vmul.f32 %v3002_v59, %v5592_v63  ;;  %v3017_v16 = vmul.f32 %v3005_v43, %v5583_v5  ;;  %v4743_v26 = vld [vmem:[%s6230_s3 + $0x38] sm:$0xff]  }
 0xabe   : > { %v5796_v51 = vmul.f32 %v3005_v43, %v5645_v55  ;;  %v5799_v27 = vmul.f32 %v3004_v40, %v5650_v56  ;;  %v5805_v60 = vsel %vm1794_vm5, %v2984_v41, %v2985_v0  ;;  %v3012_v62 = vmul.f32 %v5774_v8, %v5551_v14 }
 0xabf   : > { %v4626_v43 = vpack.i.bf16 %v3017_v16, %v3016_v24  ;;  %v4616_v40 = vpack.i.bf16 %v5736_v7, %v5732_v45  ;;  %v3008_v49 = vmul.f32 %v3003_v30, %v5509_v48  ;;  %v3013_v0 = vmul.f32 %v5805_v60, %v5564_v23  ;;  %v4746_v24 = vld [vmem:[%s6230_s3 + $0x20] sm:$0xff]   ;;  %v4747_v16 = vld [vmem:[%s6230_s3 + $0x18] sm:$0xff]  }
 0xac0   : > { %4602 = vrot.lane.b32.xlu0 %v4601_v1, %s6215_s0  ;;  %4607 = vrot.lane.b32.xlu1 %v4606_v2, %s6226_s10  ;;  %v3173_v61 = vpack.c.bf16 %v5799_v27, %v5796_v51  ;;  %v3009_v9 = vmul.f32 %v3002_v59, %v5529_v4  ;;  %v3026_v50 = vmul.f32 %v3003_v30, %v5641_v53  ;;  %v6231_v47 = vmov 0  }
 0xac1   : > { %v3024_v45 = vmul.f32 %v5736_v7, %v5633_v44  ;;  %v3020_v52 = vmul.f32 %v5805_v60, %v5609_v13  ;;  %v3021_v19 = vmul.f32 %v5767_v46, %v5618_v28  ;;  %v3027_v2 = vmul.f32 %v3002_v59, %v5637_v31  ;;  %v4744_v59 = vld [vmem:[%s6230_s3 + $0x30] sm:$0xff]  }
 0xac2   : > { %v4631_v58 = vpack.i.bf16 %v3009_v9, %v3008_v49  ;;  %v2440_v1 = vld [vmem:[%s6229_s28] sm:$0x1]  ;;  %v3025_v7 = vmul.f32 %v5734_v11, %v5624_v35  ;;  %v4745_v11 = vld [vmem:[%s6230_s3 + $0x28] sm:$0xff]   ;;  %s6242_s28 = sld [smem:[#allocation27_spill]] }
 0xac3   : > { %v3171_v30 = vpack.c.bf16 %v3027_v2, %v3026_v50 }
 0xac4   : > { %4622 = vrot.lane.b32.xlu0 %v4621_v57, %s6227_s2  ;;  %4612 = vrot.lane.b32.xlu1 %v4611_v39, %s6228_s26  ;;  %v4646_v57 = vpack.i.bf16 %v3025_v7, %v3024_v45  ;;  %v4636_v39 = vpack.i.bf16 %v3021_v19, %v3020_v52  ;;  %v6234_v45 = vld [vmem:[#allocation36_spill] sm:$0xff] }
 0xac5   : > { %v4821_v12 = vpop.eup %4820 }
 0xac6   : > { %v2439_v54 = vmul.f32 %v4821_v12, %v5728_v34  ;;  %v4641_v34 = vpack.i.bf16 %v3013_v0, %v3012_v62  ;;  %v4748_v12 = vld [vmem:[%s6230_s3 + $0x10] sm:$0xff]   ;;  %v4749_v62 = vld [vmem:[%s6230_s3 + $0x8] sm:$0xff]  }
 0xac8   : > { %v2441_v41 = vpack.c.bf16 %v2439_v54, %v2439_v54  ;;  %4627 = vrot.lane.b32.xlu0 %v4626_v43, %s6228_s26  ;;  %4617 = vrot.lane.b32.xlu1 %v4616_v40, %s6225_s22  ;;  %s6232_s26 = smov 112   ;;  %v4750_v54 = vld [vmem:[%s6230_s3] sm:$0xff]   ;;  %v6233_v40 = vmov 0.0  }
 0xac9   : > { %v4751_v43 = vld [vmem:[%s6230_s3 + $0x40] sm:$0xff]   ;;  %s6247_s3 = sld [smem:[#allocation30_spill]] }
 0xaca   : > { %v2448_v3 = vsel %vm2446_vm0, %v2441_v41, 0 }
 0xacb   : > { %4308 = vmatpush3.bf16.msra.mxu0 %v2448_v3  ;;  %v2990_v3 = vmul.f32 %v5805_v60, %v6234_v45 }
 0xacc   : > { %4642 = vrot.lane.b32.xlu0 %v4641_v34, %s6226_s10  ;;  %4632 = vrot.lane.b32.xlu1 %v4631_v58, %s6215_s0  ;;  %v6235_v58 = vld [vmem:[#allocation34_spill] sm:$0xff] }
 0xacd   : > { %3259 = vmatprep.subr.bf16.mxu0 %v6231_v47  ;;  %v2991_v52 = vmul.f32 %v5767_v46, %v6235_v58 }
 0xace   : > { %4310 = vmatmul.mubr.msk.bf16.vlgmr.msra.gmra.mxu0 %vm1902_vm13, %v2440_v1 }
 0xacf   : > { %4174 = vmatprep.mubr.msk.bf16.mxu0 %vm1533_vm3, %v3171_v30  ;;  %3260 = vmatpush1.bf16.msra.mxu0 %v4743_v26 }
 0xad0   : > { %4647 = vrot.lane.b32.xlu0 %v4646_v57, %s6232_s26  ;;  %4637 = vrot.lane.b32.xlu1 %v4636_v39, %s6227_s2  ;;  %s6241_s2 = sld [smem:[#allocation26_spill]]  ;;  %s6243_s26 = smov 8  }
 0xad1   : > { %3261 = vmatprep.subr.bf16.mxu0 %v6231_v47 }
 0xad3   : > { %3262 = vmatpush1.bf16.msra.mxu0 %v4744_v59 }
 0xad4   : > { %3263 = vmatprep.subr.bf16.mxu0 %v6231_v47 }
 0xad7   : > { %3264 = vmatpush1.bf16.msra.mxu0 %v4745_v11 }
 0xad8   : > { %3265 = vmatprep.subr.bf16.mxu0 %v6231_v47 }
 0xadb   : > { %3266 = vmatpush1.bf16.msra.mxu0 %v4746_v24 }
 0xadc   : > { %3267 = vmatprep.subr.bf16.mxu0 %v6231_v47 }
 0xadf   : > { %3268 = vmatpush1.bf16.msra.mxu0 %v4747_v16 }
 0xae0   : > { %3269 = vmatprep.subr.bf16.mxu0 %v6231_v47 }
 0xae3   : > { %3270 = vmatpush1.bf16.msra.mxu0 %v4748_v12 }
 0xae4   : > { %3271 = vmatprep.subr.bf16.mxu0 %v6231_v47 }
 0xae7   : > { %3272 = vmatpush1.bf16.msra.mxu0 %v4749_v62 }
 0xae8   : > { %3273 = vmatprep.subr.bf16.mxu0 %v6231_v47 }
 0xaeb   : > { %3274 = vmatpush1.bf16.msra.mxu0 %v4750_v54 }
 0xaec   : > { %3289 = vmatprep.subr.bf16.mxu0 %v6231_v47 }
 0xaef   : > { %3290 = vmatpush2.bf16.msra.mxu0 %v4751_v43 }
 0xaf0   : > { %4351 = vmatprep.subr.bf16.mxu0 %v6233_v40 }
 0xb2a   : > { %v4588_v49 = vpop.permute.xlu0 %4587  ;;  %v4583_v0 = vpop.permute.xlu1 %4582 }
 0xb2b   : > { %v4585_v34 = vunpack.i.h.bf16 %v4583_v0  ;;  %v4584_v50 = vunpack.i.l.bf16 %v4583_v0  ;;  %v4590_v24 = vunpack.i.h.bf16 %v4588_v49  ;;  %v4589_v16 = vunpack.i.l.bf16 %v4588_v49 }
 0xb2d   : > { %v3142_v57 = vsel %vm1533_vm3, %v2990_v3, %v4584_v50  ;;  %v3143_v39 = vsel %vm1533_vm3, %v2991_v52, %v4585_v34 }
 0xb2e   : > { %v4598_v41 = vpop.permute.xlu0 %4597  ;;  %v4593_v9 = vpop.permute.xlu1 %4592 }
 0xb2f   : > { %v4594_v49 = vunpack.i.l.bf16 %v4593_v9 }
 0xb32   : > { %v4603_v19 = vpop.permute.xlu0 %4602  ;;  %v4608_v1 = vpop.permute.xlu1 %4607 }
 0xb33   : > { %v4605_v2 = vunpack.i.h.bf16 %v4603_v19  ;;  %v4604_v26 = vunpack.i.l.bf16 %v4603_v19  ;;  %v4610_v7 = vunpack.i.h.bf16 %v4608_v1  ;;  %v4609_v30 = vunpack.i.l.bf16 %v4608_v1 }
 0xb34   : > { %v4595_v1 = vunpack.i.h.bf16 %v4593_v9 }
 0xb35   : > { %v3146_v59 = vsel %vm2104_vm4, %v3142_v57, %v4604_v26  ;;  %v3147_v11 = vsel %vm2104_vm4, %v3143_v39, %v4605_v2  ;;  %v4600_v57 = vunpack.i.h.bf16 %v4598_v41  ;;  %v4599_v39 = vunpack.i.l.bf16 %v4598_v41 }
 0xb36   : > { %v3151_v60 = vsel %vm6236_vm11, %v3147_v11, %v4610_v7  ;;  %v3150_v46 = vsel %vm6237_vm15, %v3146_v59, %v4609_v30  ;;  %v4623_v12 = vpop.permute.xlu0 %4622  ;;  %v4613_v62 = vpop.permute.xlu1 %4612  ;;  %vm6240_vm15 = vmmov %vm6236_vm11 }
 0xb37   : > { %v4625_v54 = vunpack.i.h.bf16 %v4623_v12  ;;  %v4624_v43 = vunpack.i.l.bf16 %v4623_v12  ;;  %v4615_v0 = vunpack.i.h.bf16 %v4613_v62  ;;  %v4614_v19 = vunpack.i.l.bf16 %v4613_v62 }
 0xb38   : > { %v3154_v50 = vsel %vm2110_vm8, %v3150_v46, %v4589_v16  ;;  %v3155_v34 = vsel %vm2110_vm8, %v3151_v60, %v4590_v24  ;;  %v6238_v24 = vld [vmem:[#allocation37_spill] sm:$0xff]  ;;  %v6239_v46 = vld [vmem:[#allocation35_spill] sm:$0xff] }
 0xb39   : > { %v3158_v3 = vsel %vm2113_vm9, %v3154_v50, %v4614_v19  ;;  %v3159_v52 = vsel %vm2113_vm9, %v3155_v34, %v4615_v0  ;;  %v2993_v60 = vmul.f32 %v5774_v8, %v6238_v24  ;;  %v2992_v12 = vmul.f32 %v5758_v33, %v6239_v46 }
 0xb3a   : > { %v3162_v2 = vsel %vm2116_vm12, %v3158_v3, %v4624_v43  ;;  %v3163_v26 = vsel %vm2116_vm12, %v3159_v52, %v4625_v54  ;;  %v4628_v7 = vpop.permute.xlu0 %4627  ;;  %v4618_v30 = vpop.permute.xlu1 %4617 }
 0xb3b   : > { %v3166_v59 = vsel %vm2128_vm7, %v3162_v2, %v4594_v49  ;;  %v3167_v11 = vsel %vm2128_vm7, %v3163_v26, %v4595_v1  ;;  %v3145_v41 = vsel %vm1533_vm3, %v2993_v60, %v4600_v57  ;;  %v3144_v50 = vsel %vm1533_vm3, %v2992_v12, %v4599_v39 }
 0xb3c   : > { %v3170_v16 = vpack.c.bf16 %v3167_v11, %v3166_v59  ;;  %v4630_v8 = vunpack.i.h.bf16 %v4628_v7  ;;  %v4629_v34 = vunpack.i.l.bf16 %v4628_v7  ;;  %v4620_v52 = vunpack.i.h.bf16 %v4618_v30 }
 0xb3d   : > { %v4619_v1 = vunpack.i.l.bf16 %v4618_v30 }
 0xb3e   : > { %v4643_v9 = vpop.permute.xlu0 %4642  ;;  %v4633_v62 = vpop.permute.xlu1 %4632  ;;  %3292 = vmatmul.mubr.bf16.vlgmr.msra.gmra.mxu0 %v3170_v16 }
 0xb3f   : > { %v4645_v43 = vunpack.i.h.bf16 %v4643_v9  ;;  %v4644_v0 = vunpack.i.l.bf16 %v4643_v9  ;;  %v4635_v54 = vunpack.i.h.bf16 %v4633_v62  ;;  %v4634_v19 = vunpack.i.l.bf16 %v4633_v62  ;;  %4175 = vmatprep.mubr.msk.bf16.mxu0 %vm1533_vm3, %v3173_v61 }
 0xb41   : > { %v3149_v33 = vsel %vm2104_vm4, %v3145_v41, %v4635_v54  ;;  %v3148_v3 = vsel %vm2104_vm4, %v3144_v50, %v4634_v19  ;;  %v4164_v50 = vld [vmem:[%s6241_s2] ss:$0 sm:$0xff]  ;;  %s6170_s2 = smov 40  }
 0xb42   : > { %v3153_v49 = vsel %vm6236_vm11, %v3149_v33, %v4645_v43  ;;  %v3152_v2 = vsel %vm6240_vm15, %v3148_v3, %v4644_v0  ;;  %v4648_v26 = vpop.permute.xlu0 %4647  ;;  %v4638_v57 = vpop.permute.xlu1 %4637 }
 0xb43   : > { %v4650_v39 = vunpack.i.h.bf16 %v4648_v26  ;;  %v4649_v59 = vunpack.i.l.bf16 %v4648_v26  ;;  %v4640_v11 = vunpack.i.h.bf16 %v4638_v57  ;;  %v4639_v51 = vunpack.i.l.bf16 %v4638_v57 }
 0xb44   : > { %v3156_v27 = vsel %vm2110_vm8, %v3152_v2, %v4619_v1  ;;  %v3157_v61 = vsel %vm2110_vm8, %v3153_v49, %v4620_v52 }
 0xb45   : > { %v3160_v7 = vsel %vm2113_vm9, %v3156_v27, %v4629_v34  ;;  %v3161_v16 = vsel %vm2113_vm9, %v3157_v61, %v4630_v8 }
 0xb46   : > { %v3164_v30 = vsel %vm2116_vm12, %v3160_v7, %v4639_v51  ;;  %v3165_v60 = vsel %vm2116_vm12, %v3161_v16, %v4640_v11 }
 0xb47   : > { %v3168_v12 = vsel %vm2128_vm7, %v3164_v30, %v4649_v59  ;;  %v3169_v9 = vsel %vm2128_vm7, %v3165_v60, %v4650_v39 }
 0xb48   : > { %v3172_v62 = vpack.c.bf16 %v3169_v9, %v3168_v12 }
 0xb4a   : > { %3300 = vmatmul.mubr.bf16.gmra.mxu0 %v3172_v62 }
 0xb4b   : > { %4353 = vmatprep.mubr.msk.bf16.mxu0 %vm4915_vm1, %v6233_v40 }
 0xb8e   : > { %v5899_v43 = vpop.f32.mrf.mxu0 }
 0xb90   : > { %v4311_v0 = vpop.f32.mrf.mxu0 }
 0xb92   : > { %v2487_v54 = vpop.f32.mrf.mxu0 }
 0xb94   : > { %v4312_v19 = vpop.f32.mrf.mxu0 }
 0xbfe   : > { %v3293_v41 = vpop.f32.mrf.mxu0 }
 0xbff   : > { %v3294_v33 = vadd.f32 %v4164_v50, %v3293_v41  ;;  %v4752_v41 = vld [vmem:[%s6242_s28 + $0x20] ss:$0 sps:$4 sm:$0xff]  }
 0xc00   : > { %v3295_v8 = vpop.f32.mrf.mxu0  ;;  %4365 = vmatprep.subr.msk.bf16.mxu1 %vm2446_vm0, %v4752_v41 }
 0xc01   : > { %v3324_v26 = vrot.slane %v3294_v33, 1  ;;  %v3308_v16 = vrot.slane %v3294_v33, 7 }
 0xc02   : > { %v3296_v34 = vpop.f32.mrf.mxu0 }
 0xc03   : > { %v5902_v3 = vadd.f32 %v4164_v50, %v3296_v34 }
 0xc04   : > { %v3298_v52 = vpop.f32.mrf.mxu0 }
 0xc05   : > { %v4651_v1 = vpack.i.bf16 %v5902_v3, %v3294_v33  ;;  %v3325_v49 = vrot.slane %v5902_v3, 1  ;;  %v3309_v39 = vrot.slane %v5902_v3, 7  ;;  %v3322_v11 = vmul.f32 %v5902_v3, %v5491_v37 }
 0xc07   : > { %4652 = vrot.lane.b32.xlu1 %v4651_v1, %s6215_s0  ;;  %v5918_v7 = vsel %vm1809_vm6, %v3324_v26, %v3325_v49  ;;  %v5935_v54 = vsel %vm1794_vm5, %v3308_v16, %v3309_v39 }
 0xc0a   : > { %v3301_v2 = vpop.f32.mrf.mxu0 }
 0xc0b   : > { %v5907_v57 = vadd.f32 %v4164_v50, %v3301_v2 }
 0xc0c   : > { %v3303_v59 = vpop.f32.mrf.mxu0 }
 0xc0d   : > { %v3310_v51 = vrot.slane %v5907_v57, 7  ;;  %v3326_v27 = vrot.slane %v5907_v57, 1  ;;  %v3323_v61 = vmul.f32 %v5907_v57, %v5479_v29  ;;  %v3340_v29 = vmul.f32 %v5918_v7, %v5569_v32 }
 0xc0e   : > { %v3304_v30 = vpop.f32.mrf.mxu0 }
 0xc0f   : > { %v3305_v60 = vadd.f32 %v4164_v50, %v3304_v30  ;;  %v4656_v12 = vpack.i.bf16 %v3323_v61, %v3322_v11  ;;  %v5922_v9 = vsel %vm1809_vm6, %v3325_v49, %v3326_v27  ;;  %v5926_v37 = vsel %vm1794_vm5, %v3309_v39, %v3310_v51 }
 0xc10   : > { %v3306_v62 = vpop.f32.mrf.mxu0  ;;  %v3341_v0 = vmul.f32 %v5922_v9, %v5576_v36  ;;  %v3345_v8 = vmul.f32 %v5926_v37, %v5597_v17  ;;  %v3344_v36 = vmul.f32 %v5935_v54, %v5602_v18  ;;  %v3334_v52 = vmul.f32 %v5922_v9, %v5509_v48 }
 0xc11   : > { %4657 = vrot.lane.b32.xlu0 %v4656_v12, %s6243_s26  ;;  %v3327_v19 = vrot.slane %v3305_v60, 1  ;;  %v4661_v34 = vpack.i.bf16 %v3305_v60, %v5907_v57  ;;  %v3311_v17 = vrot.slane %v3305_v60, 7  ;;  %v3320_v39 = vmul.f32 %v3305_v60, %v5474_v25  ;;  %v4755_v62 = vld [vmem:[%s6242_s28 + $0x8] sm:$0xff]  }
 0xc12   : > { %v4666_v50 = vpack.i.bf16 %v3341_v0, %v3340_v29  ;;  %v4671_v49 = vpack.i.bf16 %v3345_v8, %v3344_v36  ;;  %v3350_v59 = vmul.f32 %v3305_v60, %v5633_v44  ;;  %v3321_v48 = vmul.f32 %v3294_v33, %v5467_v20  ;;  %v4756_v0 = vld [vmem:[%s6242_s28] sm:$0xff]  }
 0xc13   : > { %v3328_v32 = vsel %vm1809_vm6, %v3326_v27, %v3327_v19  ;;  %v3331_v11 = vsel %vm1809_vm6, %v3327_v19, %v3324_v26  ;;  %v4753_v27 = vld [vmem:[%s6242_s28 + $0x18] sm:$0xff]   ;;  %v3351_v18 = vmul.f32 %v3294_v33, %v5624_v35  ;;  %v3571_v25 = vsel %vm2446_vm0, %v4752_v41, 0  ;;  %v3631_v41 = vld [vmem:[%s6247_s3 + $0x8] sm:$0xff] }
 0xc14   : > { %4667 = vrot.lane.b32.xlu1 %v4666_v50, %s6170_s2  ;;  %v3335_v1 = vmul.f32 %v3328_v32, %v5529_v4  ;;  %v5960_v4 = vsel %vm1794_vm5, %v3310_v51, %v3311_v17  ;;  %v4676_v44 = vpack.i.bf16 %v3321_v48, %v3320_v39  ;;  %v3332_v61 = vmul.f32 %v3331_v11, %v5511_v6  ;;  %v4754_v51 = vld [vmem:[%s6242_s28 + $0x10] sm:$0xff]   ;;  %s6171_s2 = smov 56   ;;  %v3705_v50 = vld [vmem:[%s6248_s4] sm:$0xff]  ;;  %s6255_s4 = sld [smem:[#allocation29_spill]] }
 0xc15   : > { %4662 = vrot.lane.b32.xlu0 %v4661_v34, %s6215_s0  ;;  %s6244_s0 = smov 16   ;;  %4324 = vmatpush3.bf16.msra.mxu1 %v3571_v25  ;;  %v4701_v26 = vpack.i.bf16 %v3351_v18, %v3350_v59  ;;  %v3339_v30 = vmul.f32 %v5960_v4, %v5564_v23  ;;  %v5970_v20 = vsel %vm1794_vm5, %v3311_v17, %v3308_v16  ;;  %vm3500_vm5 = vcmask 326656  }
 0xc16   : > { %v4686_v2 = vpack.i.bf16 %v3335_v1, %v3334_v52  ;;  %4325 = vmatprep.subr.bf16.mxu1 %v4753_v27  ;;  %v3333_v35 = vmul.f32 %v5918_v7, %v5493_v38  ;;  %v3338_v6 = vmul.f32 %v5926_v37, %v5551_v14  ;;  %v3336_v23 = vmul.f32 %v5970_v20, %v5531_v21 }
 0xc17   : > { %v3342_v60 = vmul.f32 %v3328_v32, %v5592_v63  ;;  %v3343_v12 = vmul.f32 %v3331_v11, %v5583_v5  ;;  %v3337_v38 = vmul.f32 %v5935_v54, %v5553_v15  ;;  %v3349_v21 = vmul.f32 %v5907_v57, %v5627_v10 }
 0xc18   : > { %4672 = vrot.lane.b32.xlu1 %v4671_v49, %s6226_s10  ;;  %v4681_v33 = vpack.i.bf16 %v3333_v35, %v3332_v61  ;;  %v4706_v16 = vpack.i.bf16 %v3339_v30, %v3338_v6  ;;  %v3346_v63 = vmul.f32 %v5960_v4, %v5609_v13  ;;  %v3347_v5 = vmul.f32 %v5970_v20, %v5618_v28 }
 0xc19   : > { %4687 = vrot.lane.b32.xlu0 %v4686_v2, %s6244_s0  ;;  %4326 = vmatpush3.bf16.msra.mxu1 %v4753_v27  ;;  %v4691_v14 = vpack.i.bf16 %v3337_v38, %v3336_v23  ;;  %v4711_v29 = vpack.i.bf16 %v3343_v12, %v3342_v60  ;;  %v3348_v15 = vmul.f32 %v5902_v3, %v5614_v22  ;;  %vm3509_vm6 = vcmask 457728  }
 0xc1a   : > { %4327 = vmatprep.subr.bf16.mxu1 %v4754_v51  ;;  %v3353_v10 = vmul.f32 %v3328_v32, %v5637_v31  ;;  %v4716_v57 = vpack.i.bf16 %v3347_v5, %v3346_v63  ;;  %v3354_v13 = vmul.f32 %v3331_v11, %v5645_v55  ;;  %v3352_v28 = vmul.f32 %v5922_v9, %v5641_v53  ;;  %v3630_v55 = vld [vmem:[%s6247_s3] sm:$0xff] }
 0xc1b   : > { %v4696_v19 = vpack.i.bf16 %v3349_v21, %v3348_v15  ;;  %v3355_v22 = vmul.f32 %v5918_v7, %v5650_v56  ;;  %v3762_v53 = vld [vmem:[%s5163_s23] sm:$0xff]  ;;  %v3318_v17 = vmul.f32 %v5935_v54, %v6239_v46  ;;  %v3316_v49 = vmul.f32 %v5960_v4, %v6234_v45 }
 0xc1c   : > { %4677 = vrot.lane.b32.xlu1 %v4676_v44, %s6243_s26  ;;  %v4721_v3 = vpack.i.bf16 %v3353_v10, %v3352_v28  ;;  %v3822_v9 = vld [vmem:[#allocation3] sm:$0x1]  ;;  %v3319_v59 = vmul.f32 %v5926_v37, %v6238_v24  ;;  %v3317_v48 = vmul.f32 %v5970_v20, %v6235_v58 }
 0xc1d   : > { %4702 = vrot.lane.b32.xlu0 %v4701_v26, %s6171_s2  ;;  %s6245_s2 = smov 24   ;;  %4328 = vmatpush3.bf16.msra.mxu1 %v4754_v51  ;;  %v4726_v31 = vpack.i.bf16 %v3355_v22, %v3354_v13 }
 0xc1e   : > { %4329 = vmatprep.subr.bf16.mxu1 %v4755_v62 }
 0xc20   : > { %4682 = vrot.lane.b32.xlu1 %v4681_v33, %s6244_s0  ;;  %s6246_s0 = smov 40  }
 0xc21   : > { %4707 = vrot.lane.b32.xlu0 %v4706_v16, %s6245_s2  ;;  %4330 = vmatpush3.bf16.msra.mxu1 %v4755_v62 }
 0xc22   : > { %4331 = vmatprep.subr.bf16.mxu1 %v4756_v0 }
 0xc24   : > { %4692 = vrot.lane.b32.xlu1 %v4691_v14, %s6245_s2  ;;  %s6259_s2 = sld [smem:[#allocation6_spill]] }
 0xc25   : > { %4712 = vrot.lane.b32.xlu0 %v4711_v29, %s6246_s0  ;;  %4332 = vmatpush3.bf16.msra.mxu1 %v4756_v0  ;;  %s6260_s0 = sld [smem:[#allocation21_spill]] }
 0xc26   : > { %4337 = vmatprep.subr.bf16.mxu1 %v6233_v40 }
 0xc28   : > { %4697 = vrot.lane.b32.xlu1 %v4696_v19, %s6249_s5  ;;  %s6254_s5 = sld [smem:[#allocation28_spill]] }
 0xc29   : > { %4717 = vrot.lane.b32.xlu0 %v4716_v57, %s6226_s10  ;;  %s6258_s10 = sld [smem:[#allocation20_spill]] }
 0xc2c   : > { %4722 = vrot.lane.b32.xlu1 %v4721_v3, %s6225_s22 }
 0xc2d   : > { %4727 = vrot.lane.b32.xlu0 %v4726_v31, %s6225_s22  ;;  %s6257_s22 = sld [smem:[#allocation33_spill]] }
 0xc30   : > { %3634 = vperm.xlu1 %4500, %v3630_v55  }
 0xc31   : > { %3639 = vperm.xlu0 %4499, %v3631_v41  }
 0xc34   : > { %3708 = vperm.xlu1 %4500, %v3705_v50  }
 0xc35   : > { %3765 = vperm.xlu0 %4499, %v3762_v53  }
 0xc38   : > { %3825 = vperm.xlu1 %4500, %v3822_v9  }
 0xc79   : > { %v4653_v56 = vpop.permute.xlu1 %4652 }
 0xc7a   : > { %v4655_v25 = vunpack.i.h.bf16 %v4653_v56  ;;  %v4654_v44 = vunpack.i.l.bf16 %v4653_v56 }
 0xc83   : > { %v4658_v7 = vpop.permute.xlu0 %4657 }
 0xc84   : > { %v4660_v2 = vunpack.i.h.bf16 %v4658_v7  ;;  %v4659_v39 = vunpack.i.l.bf16 %v4658_v7 }
 0xc86   : > { %v4668_v8 = vpop.permute.xlu1 %4667  ;;  %v3486_v51 = vsel %vm1902_vm13, %v3318_v17, %v4659_v39  ;;  %v3487_v24 = vsel %vm1902_vm13, %v3319_v59, %v4660_v2 }
 0xc87   : > { %v4663_v34 = vpop.permute.xlu0 %4662  ;;  %v4670_v37 = vunpack.i.h.bf16 %v4668_v8  ;;  %v4669_v35 = vunpack.i.l.bf16 %v4668_v8 }
 0xc88   : > { %v4665_v6 = vunpack.i.h.bf16 %v4663_v34  ;;  %v4664_v58 = vunpack.i.l.bf16 %v4663_v34 }
 0xc8a   : > { %v6014_v32 = vpop.permute.xlu1 %4672 }
 0xc8b   : > { %v4688_v36 = vpop.permute.xlu0 %4687  ;;  %v4675_v10 = vunpack.i.h.bf16 %v6014_v32  ;;  %v4674_v57 = vunpack.i.l.bf16 %v6014_v32 }
 0xc8c   : > { %v4690_v11 = vunpack.i.h.bf16 %v4688_v36  ;;  %v4689_v27 = vunpack.i.l.bf16 %v4688_v36 }
 0xc8e   : > { %v4678_v52 = vpop.permute.xlu1 %4677  ;;  %v3490_v20 = vsel %vm1533_vm3, %v3486_v51, %v4689_v27  ;;  %v3491_v33 = vsel %vm1533_vm3, %v3487_v24, %v4690_v11  ;;  %v4176_v24 = vld [vmem:[%s6254_s5] ss:$0 sm:$0xff]  ;;  %s6261_s5 = sld [smem:[#allocation22_spill]] }
 0xc8f   : > { %v6016_v1 = vpop.permute.xlu0 %4702  ;;  %v4680_v61 = vunpack.i.h.bf16 %v4678_v52  ;;  %v4679_v26 = vunpack.i.l.bf16 %v4678_v52 }
 0xc90   : > { %v4705_v2 = vunpack.i.h.bf16 %v6016_v1  ;;  %v4704_v39 = vunpack.i.l.bf16 %v6016_v1 }
 0xc91   : > { %v3485_v16 = vsel %vm1902_vm13, %v3317_v48, %v4680_v61  ;;  %v3484_v60 = vsel %vm1902_vm13, %v3316_v49, %v4679_v26 }
 0xc92   : > { %v4683_v18 = vpop.permute.xlu1 %4682 }
 0xc93   : > { %v4708_v46 = vpop.permute.xlu0 %4707  ;;  %v4685_v54 = vunpack.i.h.bf16 %v4683_v18  ;;  %v4684_v30 = vunpack.i.l.bf16 %v4683_v18 }
 0xc94   : > { %v4710_v45 = vunpack.i.h.bf16 %v4708_v46  ;;  %v4709_v4 = vunpack.i.l.bf16 %v4708_v46 }
 0xc95   : > { %v3488_v14 = vsel %vm1533_vm3, %v3484_v60, %v4684_v30  ;;  %v3489_v21 = vsel %vm1533_vm3, %v3485_v16, %v4685_v54  ;;  %v4857_v60 = vld [vmem:[%s5460_s13 + $0x18] sm:$0xff] }
 0xc96   : > { %v4693_v23 = vpop.permute.xlu1 %4692  ;;  %v3495_v29 = vsel %vm1913_vm10, %v3491_v33, %v4710_v45  ;;  %v3494_v63 = vsel %vm1913_vm10, %v3490_v20, %v4709_v4  ;;  %v4856_v33 = vld [vmem:[%s5460_s13 + $0x10] sm:$0xff] }
 0xc97   : > { %v4695_v12 = vunpack.i.h.bf16 %v4693_v23  ;;  %v4694_v62 = vunpack.i.l.bf16 %v4693_v23  ;;  %v4713_v38 = vpop.permute.xlu0 %4712  ;;  %v3498_v3 = vsel %vm2104_vm4, %v3494_v63, %v4664_v58  ;;  %v3499_v31 = vsel %vm2104_vm4, %v3495_v29, %v4665_v6  ;;  %v4859_v29 = vld [vmem:[%s5460_s13] sm:$0xff] }
 0xc98   : > { %v4715_v15 = vunpack.i.h.bf16 %v4713_v38  ;;  %v4714_v19 = vunpack.i.l.bf16 %v4713_v38 }
 0xc99   : > { %v3492_v5 = vsel %vm1913_vm10, %v3488_v14, %v4694_v62  ;;  %v3493_v0 = vsel %vm1913_vm10, %v3489_v21, %v4695_v12  ;;  %vm6250_vm10 = vmmov %vm6236_vm11  ;;  %vm3563_vm11 = vcmask 588800   ;;  %v4858_v14 = vld [vmem:[%s5460_s13 + $0x8] sm:$0xff]  ;;  %s6256_s13 = sld [smem:[#allocation31_spill]] }
 0xc9a   : > { %v3496_v13 = vsel %vm2104_vm4, %v3492_v5, %v4654_v44  ;;  %v3497_v28 = vsel %vm2104_vm4, %v3493_v0, %v4655_v25  ;;  %v4698_v22 = vpop.permute.xlu1 %4697  ;;  %v3503_v8 = vsel %vm3500_vm5, %v3498_v3, %v4714_v19  ;;  %v3504_v34 = vsel %vm3500_vm5, %v3499_v31, %v4715_v15  ;;  %vm6251_vm7 = vmmov %vm6250_vm10  ;;  %v4757_v0 = vld [vmem:[%s6255_s4] sm:$0xff]   ;;  %s6263_s4 = smov 4  }
 0xc9b   : > { %v3501_v55 = vsel %vm3500_vm5, %v3496_v13, %v4669_v35  ;;  %v3502_v41 = vsel %vm3500_vm5, %v3497_v28, %v4670_v37  ;;  %v4718_v50 = vpop.permute.xlu0 %4717  ;;  %v4700_v53 = vunpack.i.h.bf16 %v4698_v22  ;;  %v4699_v9 = vunpack.i.l.bf16 %v4698_v22  ;;  %vm6252_vm9 = vmmov %vm6251_vm7 }
 0xc9c   : > { %v4720_v56 = vunpack.i.h.bf16 %v4718_v50  ;;  %v4719_v7 = vunpack.i.l.bf16 %v4718_v50  ;;  %v3505_v32 = vsel %vm6250_vm10, %v3501_v55, %v4674_v57  ;;  %v3506_v36 = vsel %vm6251_vm7, %v3502_v41, %v4675_v10  ;;  %vm6253_vm12 = vmmov %vm6251_vm7 }
 0xc9d   : > { %v3510_v48 = vsel %vm3509_vm6, %v3505_v32, %v4699_v9  ;;  %v3511_v18 = vsel %vm3509_vm6, %v3506_v36, %v4700_v53  ;;  %vm3998_vm5 = vcmask 98304  }
 0xc9e   : > { %v3507_v52 = vsel %vm6252_vm9, %v3503_v8, %v4719_v7  ;;  %v3508_v17 = vsel %vm6253_vm12, %v3504_v34, %v4720_v56  ;;  %v4723_v49 = vpop.permute.xlu1 %4722 }
 0xc9f   : > { %v4725_v59 = vunpack.i.h.bf16 %v4723_v49  ;;  %v4724_v11 = vunpack.i.l.bf16 %v4723_v49  ;;  %v4728_v27 = vpop.permute.xlu0 %4727  ;;  %v3512_v46 = vsel %vm3509_vm6, %v3507_v52, %v4704_v39  ;;  %v3513_v54 = vsel %vm3509_vm6, %v3508_v17, %v4705_v2  ;;  %v3703_v17 = vld [vmem:[%s6256_s13] sm:$0xf]  ;;  %s6264_s13 = smov 12  }
 0xca0   : > { %v4730_v25 = vunpack.i.h.bf16 %v4728_v27  ;;  %v4729_v44 = vunpack.i.l.bf16 %v4728_v27 }
 0xca1   : > { %v3514_v61 = vsel %vm2110_vm8, %v3510_v48, %v4724_v11  ;;  %v3515_v26 = vsel %vm2110_vm8, %v3511_v18, %v4725_v59 }
 0xca2   : > { %v3518_v1 = vpack.c.bf16 %v3515_v26, %v3514_v61  ;;  %v3516_v30 = vsel %vm2110_vm8, %v3512_v46, %v4729_v44  ;;  %v3517_v45 = vsel %vm2110_vm8, %v3513_v54, %v4730_v25 }
 0xca3   : > { %v3519_v4 = vpack.c.bf16 %v3517_v45, %v3516_v30 }
 0xca4   : > { %4333 = vmatprep.mubr.msk.bf16.mxu1 %vm3563_vm11, %v3518_v1  ;;  %v3760_v1 = vld [vmem:[%s6257_s22] sm:$0xf]  ;;  %s1418_s22 = scalar_lea.vmem %s5173_s7, %s6266_s16 }
 0xca5   : > { %4334 = vmatmul.mubr.msk.bf16.vlgmr.msra.gmra.mxu1 %vm3563_vm11, %v3519_v4 }
 0xca6   : > { %4341 = vmatprep.mubr.msk.bf16.mxu1 %vm4915_vm1, %v6233_v40 }
 0xcab   : > { %v3635_v15 = vpop.permute.xlu1 %3634 }
 0xcac   : > { %v3640_v28 = vpop.permute.xlu0 %3639 }
 0xcaf   : > { %v3709_v49 = vpop.permute.xlu1 %3708 }
 0xcb0   : > { %v3766_v30 = vpop.permute.xlu0 %3765 }
 0xd65   : > { %v4335_v51 = vpop.f32.mrf.mxu1 }
 0xd66   : > { %v3616_v35 = vadd.f32 %v4335_v51, %v4176_v24 }
 0xd67   : > { %v3607_v37 = vpop.f32.mrf.mxu1 }
 0xd68   : > { %v3624_v23 = vadd.f32 %v4856_v33, %v3616_v35  ;;  %v3608_v16 = vadd.f32 %v4176_v24, %v3607_v37 }
 0xd69   : > { %v4336_v6 = vpop.f32.mrf.mxu1 }
 0xd6a   : > { %v3619_v58 = vadd.f32 %v4336_v6, %v4176_v24  ;;  %v3622_v63 = vadd.f32 %v4859_v29, %v3608_v16 }
 0xd6b   : > { %v3610_v20 = vpop.f32.mrf.mxu1 }
 0xd6c   : > { %v3625_v12 = vadd.f32 %v4857_v60, %v3619_v58  ;;  %v3611_v62 = vadd.f32 %v4176_v24, %v3610_v20 }
 0xd6e   : > { %v3629_v38 = vpack.c.bf16 %v3625_v12, %v3624_v23  ;;  %v3623_v21 = vadd.f32 %v4858_v14, %v3611_v62  ;;  %v3820_v12 = vld [vmem:[%s5168_s1] sm:$0x1]  ;;  %v3826_v62 = vpop.permute.xlu1 %3825 }
 0xd70   : > { %4338 = vmatpush3.bf16.msra.mxu1 %v3629_v38  ;;  %v3628_v5 = vpack.c.bf16 %v3623_v21, %v3622_v63  ;;  %v6089_v38 = vsub.s32 0, %v5261_v42 }
 0xd71   : > { %4339 = vmatprep.subr.bf16.mxu1 %v6233_v40 }
 0xd72   : > { %v3831_v14 = vrot.slane %v3826_v62, %v6089_v38 }
 0xd74   : > { %4340 = vmatpush3.bf16.msra.mxu1 %v3628_v5 }
 0xd75   : > { %4345 = vmatprep.subr.bf16.mxu1 %v6233_v40 }
 0xd77   : > { %4342 = vmatmul.mubr.msk.bf16.vlgmr.msra.gmra.mxu1 %vm2104_vm4, %v4757_v0  ;;  %vm3944_vm4 = vcmask 3072  }
 0xd78   : > { %4347 = vmatprep.mubr.msk.bf16.mxu1 %vm4915_vm1, %v6233_v40 }
 0xe37   : > { %v3684_v19 = vpop.f32.mrf.mxu1 }
 0xe38   : > { %v3685_v10 = vadd.f32 %v3684_v19, %v3635_v15 }
 0xe39   : > { %v4343_v57 = vpop.f32.mrf.mxu1 }
 0xe3a   : > { %v3691_v13 = vsub.f32 0.0, %v3685_v10 }
 0xe3b   : > { %v3687_v22 = vpop.f32.mrf.mxu1 }
 0xe3c   : > { %v3693_v3 = vmul.f32 1.442695, %v3691_v13  ;;  %v3688_v31 = vadd.f32 %v3687_v22, %v3640_v28 }
 0xe3d   : > { %v4344_v55 = vpop.f32.mrf.mxu1 }
 0xe3e   : > { %4822 = vpow2.f32 %v3693_v3  ;;  %v3692_v41 = vsub.f32 0.0, %v3688_v31  ;;  %v2442_v3 = vld [vmem:[%s6258_s10] sm:$0x3] }
 0xe40   : > { %v3695_v50 = vmul.f32 1.442695, %v3692_v41 }
 0xe42   : > { %4824 = vpow2.f32 %v3695_v50 }
 0xe4b   : > { %v4823_v53 = vpop.eup %4822 }
 0xe4c   : > { %v3697_v9 = vadd.f32 1.0, %v4823_v53 }
 0xe4e   : > { %4826 = vrcp.f32 %v3697_v9 }
 0xe4f   : > { %v4825_v56 = vpop.eup %4824 }
 0xe50   : > { %v3698_v7 = vadd.f32 1.0, %v4825_v56 }
 0xe52   : > { %4828 = vrcp.f32 %v3698_v7 }
 0xe5b   : > { %v4827_v8 = vpop.eup %4826 }
 0xe5c   : > { %v3701_v32 = vmul.f32 %v4827_v8, %v3685_v10 }
 0xe5f   : > { %v4829_v34 = vpop.eup %4828 }
 0xe60   : > { %v3702_v36 = vmul.f32 %v4829_v34, %v3688_v31  ;;  %v6097_v31 = vadd.f32 %v5899_v43, %v2442_v3 }
 0xe62   : > { %v3704_v52 = vpack.c.bf16 %v3702_v36, %v3701_v32  ;;  %v2500_v55 = vsub.f32 0.0, %v6097_v31 }
 0xe64   : > { %4346 = vmatpush3.bf16.msra.mxu1 %v3704_v52  ;;  %v2501_v41 = vmul.f32 1.442695, %v2500_v55  ;;  %v6262_v52 = vmov 1  }
 0xe65   : > { %4357 = vmatprep.subr.bf16.mxu1 %v6233_v40 }
 0xe67   : > { %4348 = vmatmul.mubr.msk.bf16.vlgmr.msra.gmra.mxu1 %vm1533_vm3, %v3703_v17  ;;  %v2490_v17 = vld [vmem:[%s6259_s2] sm:$0x1] }
 0xe68   : > { %4359 = vmatprep.mubr.msk.bf16.mxu1 %vm4915_vm1, %v6233_v40  ;;  %vm3930_vm1 = vcmask 27648  }
 0xf27   : > { %v3748_v2 = vpop.f32.mrf.mxu1 }
 0xf28   : > { %v3749_v39 = vadd.f32 %v3748_v2, %v3709_v49  ;;  %v2492_v49 = vmin.f32 %v6097_v31, 20.0 }
 0xf29   : > { %v4349_v59 = vpop.f32.mrf.mxu1 }
 0xf2a   : > { %v3754_v11 = vsub.f32 0.0, %v3749_v39  ;;  %v2493_v2 = vmul.f32 1.442695, %v2492_v49 }
 0xf2b   : > { %v3751_v27 = vpop.f32.mrf.mxu1 }
 0xf2c   : > { %v3755_v48 = vmul.f32 1.442695, %v3754_v11  ;;  %v4156_v11 = vld [vmem:[%s6260_s0] ss:$0 sm:$0xff] }
 0xf2d   : > { %v4350_v18 = vpop.f32.mrf.mxu1 }
 0xf2e   : > { %4830 = vpow2.f32 %v3755_v48  ;;  %v4157_v18 = vld [vmem:[%s6261_s5] ss:$0 sm:$0xff] }
 0xf3b   : > { %v4831_v25 = vpop.eup %4830 }
 0xf3c   : > { %v3757_v44 = vadd.f32 1.0, %v4831_v25 }
 0xf3e   : > { %4832 = vrcp.f32 %v3757_v44 }
 0xf4b   : > { %v4833_v61 = vpop.eup %4832 }
 0xf4c   : > { %v3759_v26 = vmul.f32 %v4833_v61, %v3749_v39 }
 0xf4e   : > { %v3761_v46 = vpack.c.bf16 %v3759_v26, %v3759_v26 }
 0xf50   : > { %v3772_v54 = vsel %vm2446_vm0, %v3761_v46, 0 }
 0xf51   : > { %4352 = vmatpush3.bf16.msra.mxu0 %v3772_v54 }
 0xf54   : > { %4354 = vmatmul.mubr.msk.bf16.vlgmr.msra.gmra.mxu0 %vm1902_vm13, %v3760_v1 }
0x1014   : > { %v3808_v45 = vpop.f32.mrf.mxu0 }
0x1015   : > { %v3809_v4 = vadd.f32 %v3808_v45, %v3766_v30 }
0x1016   : > { %v4355_v51 = vpop.f32.mrf.mxu0 }
0x1017   : > { %v3814_v24 = vsub.f32 0.0, %v3809_v4 }
0x1018   : > { %v3811_v37 = vpop.f32.mrf.mxu0 }
0x1019   : > { %v3815_v35 = vmul.f32 1.442695, %v3814_v24 }
0x101a   : > { %v4356_v6 = vpop.f32.mrf.mxu0 }
0x101b   : > { %4834 = vpow2.f32 %v3815_v35 }
0x1028   : > { %v4835_v58 = vpop.eup %4834 }
0x1029   : > { %v3817_v20 = vadd.f32 1.0, %v4835_v58 }
0x102b   : > { %4836 = vrcp.f32 %v3817_v20 }
0x1038   : > { %v4837_v33 = vpop.eup %4836 }
0x1039   : > { %v3819_v23 = vmul.f32 %v4837_v33, %v3809_v4 }
0x103b   : > { %v3821_v16 = vpack.c.bf16 %v3819_v23, %v3819_v23 }
0x103d   : > { %v3836_v60 = vsel %vm2446_vm0, %v3821_v16, 0  ;;  %vm2491_vm0 = vcmp.gt.f32.partialorder %v6097_v31, 20.0 }
0x103e   : > { %4358 = vmatpush3.bf16.msra.mxu1 %v3836_v60 }
0x1041   : > { %4360 = vmatmul.mubr.msk.bf16.vlgmr.msra.gmra.mxu1 %vm1902_vm13, %v3820_v12 }
0x1101   : > { %v3872_v21 = vpop.f32.mrf.mxu1 }
0x1102   : > { %v3873_v29 = vadd.f32 %v3872_v21, %v3831_v14 }
0x1103   : > { %v4361_v63 = vpop.f32.mrf.mxu1 }
0x1104   : > { %v3878_v5 = vsub.f32 0.0, %v3873_v29 }
0x1105   : > { %v3875_v0 = vpop.f32.mrf.mxu1 }
0x1106   : > { %v3879_v15 = vmul.f32 1.442695, %v3878_v5 }
0x1107   : > { %v4362_v19 = vpop.f32.mrf.mxu1 }
0x1108   : > { %4838 = vpow2.f32 %v3879_v15 }
0x1115   : > { %v4839_v10 = vpop.eup %4838 }
0x1116   : > { %v3881_v57 = vadd.f32 1.0, %v4839_v10 }
0x1118   : > { %4840 = vrcp.f32 %v3881_v57 }
0x1119   : > { %4842 = vpow2.f32 %v2501_v41 }
0x1125   : > { %v4841_v13 = vpop.eup %4840 }
0x1126   : > { %v3883_v28 = vmul.f32 %v4841_v13, %v3873_v29  ;;  %v4843_v50 = vpop.eup %4842 }
0x1127   : > { %v2503_v53 = vadd.f32 1.0, %v4843_v50 }
0x1128   : > { %v6092_v22 = vmul.f32 1.4285715, %v3883_v28 }
0x1129   : > { %4844 = vrcp.f32 %v2503_v53 }
0x112a   : > { %3886 = vxpose.xlu0.b32.start.end [1/1] (short) (narrow) %v6092_v22, 8  ;;  %v3921_v9 = vrot.slane %v6092_v22, %v6089_v38  ;;  %4846 = vpow2.f32 %v2493_v2 }
0x1136   : > { %v4845_v32 = vpop.eup %4844 }
0x1137   : > { %v2505_v36 = vmul.f32 %v4845_v32, %v6097_v31 }
0x11a6   : > { %v3902_v42 = vpop.trf.xlu0 }
0x11a7   : > { %3924 = vperm.xlu1 %4500, %v3902_v42  }
0x1222   : > { %v3925_v56 = vpop.permute.xlu1 %3924 }
0x1223   : > { %vm3927_vm3 = vcmp.ge.f32.partialorder %v3921_v9, %v3925_v56 }
0x1224   : > { %v4189_v7 = vsel %vm3927_vm3, 1.0, %v6233_v40 }
0x1225   : > { %v3934_v8 = vmul.f32 %v4189_v7, %v3921_v9  ;;  %v3931_v34 = vsel %vm3930_vm1, %v4189_v7, 0.0 }
0x1226   : > { %3932 = vadd.xlane.f32.xlu1 %v3931_v34 }
0x1227   : > { %v3935_v43 = vsel %vm3930_vm1, %v3934_v8, 0.0 }
0x1228   : > { %3936 = vadd.xlane.f32.xlu0 %v3935_v43 }
0x1237   : > { %2509 = vperm.xlu1 %4500, %v2505_v36  }
0x123b   : > { %4731 = vset.pattern.permute.xlu1 %v6262_v52 }
0x123c   : > { %2537 = vperm.xlu1 %4731, %v2490_v17  }
0x1240   : > { %4732 = vset.pattern.permute.xlu1 %v6231_v47  ;;  %v4847_v47 = vpop.eup %4846 }
0x1241   : > { %v2495_v24 = vadd.f32 1.0, %v4847_v47 }
0x12af   : > { %v3933_v39 = vpop.xlane.xlu1 %3932 }
0x12b0   : > { %v3938_v59 = vmul.f32 %v3933_v39, %v3902_v42 }
0x12b1   : > { %v3937_v48 = vpop.xlane.xlu0 %3936 }
0x12b2   : > { %v3939_v27 = vadd.f32 1.0, %v3938_v59 }
0x12b3   : > { %v2510_v25 = vpop.permute.xlu1 %2509 }
0x12b4   : > { %vm3940_vm8 = vcmp.gt.f32.partialorder %v3939_v27, %v3937_v48  ;;  %v2518_v44 = vmul.f32 %v4156_v11, %v2510_v25 }
0x12b5   : > { %v4190_v61 = vsel %vm3940_vm8, 1.0, %v6233_v40 }
0x12b6   : > { %v3943_v26 = vmul.f32 %v4190_v61, %v3902_v42  ;;  %v3952_v46 = vsel %vm3944_vm4, %v4190_v61, 0.0  ;;  %v2526_v54 = vadd.f32 %v4157_v18, %v2518_v44 }
0x12b7   : > { %v3953_v1 = vrot.slane %v3952_v46, 4  ;;  %v2538_v19 = vpop.permute.xlu1 %2537 }
0x12b8   : > { %v3945_v30 = vsel %vm3944_vm4, %v3943_v26, 0.0  ;;  %v2528_v45 = vmin.f32 %v2526_v54, 20.0  ;;  %v2543_v57 = vrot.slane %v2538_v19, %v6089_v38  ;;  %vm2527_vm15 = vcmp.gt.f32.partialorder %v2526_v54, 20.0 }
0x12b9   : > { %v3946_v4 = vrot.slane %v3945_v30, 4  ;;  %v3954_v51 = vadd.f32 %v3953_v1, %v3952_v46 }
0x12ba   : > { %v2529_v37 = vmul.f32 1.442695, %v2528_v45 }
0x12bb   : > { %v3947_v35 = vadd.f32 %v3946_v4, %v3945_v30  ;;  %v3955_v6 = vrot.slane %v3954_v51, 2 }
0x12bc   : > { %4848 = vpow2.f32 %v2529_v37 }
0x12bd   : > { %v3956_v58 = vadd.f32 %v3955_v6, %v3954_v51  ;;  %4850 = vlog2.f32 %v2495_v24  ;;  %v3948_v20 = vrot.slane %v3947_v35, 2 }
0x12bf   : > { %v3957_v33 = vrot.slane %v3956_v58, 1  ;;  %v3949_v40 = vadd.f32 %v3948_v20, %v3947_v35 }
0x12c1   : > { %v3958_v23 = vadd.f32 %v3957_v33, %v3956_v58  ;;  %v3950_v16 = vrot.slane %v3949_v40, 1 }
0x12c3   : > { %4852 = vrcp.f32 %v3958_v23  ;;  %v3951_v14 = vadd.f32 %v3950_v16, %v3949_v40 }
0x12c5   : > { %v4191_v29 = vadd.f32 -1.0, %v3951_v14 }
0x12c9   : > { %v4849_v60 = vpop.eup %4848 }
0x12ca   : > { %v2531_v12 = vadd.f32 1.0, %v4849_v60  ;;  %v4851_v62 = vpop.eup %4850 }
0x12cb   : > { %v2497_v21 = vmul.f32 0.6931472, %v4851_v62 }
0x12cc   : > { %4854 = vlog2.f32 %v2531_v12 }
0x12cd   : > { %v2498_v0 = vsel %vm2491_vm0, %v6097_v31, %v2497_v21 }
0x12ce   : > { %v2499_v15 = vmul.f32 %v2498_v0, %v2490_v17 }
0x12d0   : > { %v4853_v63 = vpop.eup %4852  ;;  %v3991_v7 = vrot.slane %v2499_v15, %v6089_v38 }
0x12d1   : > { %v3961_v5 = vmul.f32 %v4853_v63, %v4191_v29 }
0x12d3   : > { %3964 = vperm.xlu1 %4732, %v3961_v5  }
0x12d7   : > { %3971 = vperm.xlu1 %4732, %v2499_v15  }
0x12d9   : > { %v4855_v10 = vpop.eup %4854 }
0x12da   : > { %v2533_v13 = vmul.f32 0.6931472, %v4855_v10 }
0x12dc   : > { %v2534_v28 = vsel %vm2527_vm15, %v2526_v54, %v2533_v13 }
0x12dd   : > { %v2544_v42 = vmul.f32 %v2543_v57, %v2534_v28 }
0x12df   : > { %v2545_v3 = vadd.f32 1e-05, %v2544_v42 }
0x12e1   : > { %v3984_v55 = vrot.slane %v2545_v3, 1 }
0x12e3   : > { %3985 = vrot.lane.b32.xlu0 %v3984_v55, %s6243_s26 }
0x134e   : > { %v3965_v41 = vpop.permute.xlu1 %3964 }
0x134f   : > { %v3967_v31 = vsub.f32 %v6092_v22, %v3965_v41 }
0x1351   : > { %v3968_v53 = vmax.f32 %v3967_v31, 0.0 }
0x1352   : > { %v3972_v50 = vpop.permute.xlu1 %3971 }
0x1353   : > { %v3977_v9 = vrot.slane %v3972_v50, %v6089_v38 }
0x1355   : > { %v3978_v56 = vmul.f32 %v3977_v9, %v3968_v53  ;;  %v3986_v43 = vpop.permute.xlu0 %3985 }
0x1357   : > { %3980 = vrot.lane.b32.xlu1 %v3978_v56, %s6263_s4 }
0x135b   : > { %3992 = vrot.lane.b32.xlu1 %v3991_v7, %s6264_s13 }
0x13c9   : > { %v3981_v8 = vpop.permute.xlu1 %3980 }
0x13ca   : > { %v3995_v34 = vsel %vm1431_vm2, %v3968_v53, %v3981_v8 }
0x13cb   : > { %v3996_v32 = vsel %vm1902_vm13, %v3995_v34, %v3986_v43 }
0x13cd   : > { %v3993_v22 = vpop.permute.xlu1 %3992 }
0x13ce   : > { %v3997_v36 = vsel %vm1905_vm14, %v3996_v32, %v3993_v22 }
0x13cf   : > { %3999 = vst.msk [vmem:[%s1418_s22] sm:$0x1] %vm3998_vm5, %v3997_v36 }
0x13d0 PF: > { %s107_s27 = sadd.s32 1, %s4866_s27  }
0x13d1   : > { %p104_p4 = scmp.ge.s32.totalorder %s107_s27, 4  }
0x13d3   :  { %106 = sbr.rel (!%p104_p4) target bundleno = 89 (0x59), region = 286 }

</bundles_post_ra>
